<compile_context>
chip_gen: v5e
topology: v5e:2x2
jax: 0.10.0
libtpu: 0.0.40
codegen_flags: <defaults>
</compile_context>

<pallas_src>
import functools

import jax
import jax.numpy as jnp
from jax.experimental import pallas as pl
from jax.experimental.pallas import tpu as pltpu


def _round_up(x, m):
    return (x + m - 1) // m * m


def _fc_tiling(K, max_tile_k=4096):
    """K-tiling for the Linear layer: tile_k and zero-padded K."""
    tile_k = min(_round_up(K, 512), max_tile_k)
    k_pad = _round_up(K, tile_k)
    return tile_k, k_pad


# ----------------------------------------------------------------------------
# Pallas kernels
# ----------------------------------------------------------------------------
def _conv_mm_relu_kernel(x_ref, w_ref, b_ref, o_ref):
    """One row tile of a 2x2 valid conv as a single fused-im2col matmul + ReLU.

    x_ref : (tile, 4*Cin)  im2col rows (the 4 taps concatenated along lanes)
    w_ref : (4*Cin, Cout)
    b_ref : (1, Cout)
    o_ref : (tile, Cout)
    """
    acc = jnp.dot(x_ref[...], w_ref[...], preferred_element_type=jnp.float32)
    o_ref[...] = jnp.maximum(acc + b_ref[...], 0.0)


def _conv1_relu_pool_kernel(s00_ref, s01_ref, s10_ref, s11_ref,
                            w_ref, b_ref, o_ref):
    """Fused Conv2d(3,16,(2,2)) + ReLU + MaxPool2d((2,2)) for one row tile.

    s??_ref : (tile, 4*Cin) im2col slab for pool-window tap (ph, pw)
    w_ref   : (4*Cin, Cout), b_ref : (1, Cout), o_ref : (tile, Cout)
    """
    w = w_ref[...]
    b = b_ref[...]

    def conv_tap(s_ref):
        acc = jnp.dot(s_ref[...], w, preferred_element_type=jnp.float32)
        return jnp.maximum(acc + b, 0.0)

    o_ref[...] = jnp.maximum(
        jnp.maximum(conv_tap(s00_ref), conv_tap(s01_ref)),
        jnp.maximum(conv_tap(s10_ref), conv_tap(s11_ref)),
    )


def _linear_kernel(x_ref, w_ref, b_ref, o_ref, acc_ref):
    """K-tiled matmul + bias.  grid = (n_col_tiles, k_tiles); k is a reduction."""
    k = pl.program_id(1)

    @pl.when(k == 0)
    def _():
        acc_ref[...] = jnp.zeros_like(acc_ref)

    acc_ref[...] += jnp.dot(x_ref[...], w_ref[...],
                            preferred_element_type=jnp.float32)

    @pl.when(k == pl.num_programs(1) - 1)
    def _():
        o_ref[...] = acc_ref[...] + b_ref[...]


# ----------------------------------------------------------------------------
# Wrappers (glue: im2col slicing, padding, BlockSpecs)
# ----------------------------------------------------------------------------
def conv1_relu_pool(x, w, b, *, tile_rows=512):
    """Fused Conv2d(Cin->Cout,(2,2)) + ReLU + MaxPool2d((2,2)) on NHWC input."""
    B, H, W, Cin = x.shape
    Cout = w.shape[-1]
    Ho, Wo = H - 1, W - 1
    Hp, Wp = Ho // 2, Wo // 2
    Np = B * Hp * Wp
    K = 4 * Cin

    def tap_slab(ph, pw):
        # im2col for the conv outputs feeding pool-window tap (ph, pw)
        cols = []
        for dh in (0, 1):
            for dw in (0, 1):
                sl = x[:, ph + dh::2, pw + dw::2, :][:, :Hp, :Wp, :]
                cols.append(sl.reshape(Np, Cin))
        return jnp.concatenate(cols, axis=-1)          # (Np, 4*Cin)

    slabs = [tap_slab(ph, pw) for ph in (0, 1) for pw in (0, 1)]

    tile = min(tile_rows, _round_up(Np, 8))
    Npad = _round_up(Np, tile)
    if Npad != Np:
        slabs = [jnp.pad(s, ((0, Npad - Np), (0, 0))) for s in slabs]

    w_fused = w.reshape(K, Cout)                       # tap order matches concat
    bias = b.reshape(1, Cout)

    row_spec = pl.BlockSpec((tile, K), lambda i: (i, 0))
    out = pl.pallas_call(
        _conv1_relu_pool_kernel,
        grid=(Npad // tile,),
        in_specs=[row_spec] * 4 + [
            pl.BlockSpec((K, Cout), lambda i: (0, 0)),
            pl.BlockSpec((1, Cout), lambda i: (0, 0)),
        ],
        out_specs=pl.BlockSpec((tile, Cout), lambda i: (i, 0)),
        out_shape=jax.ShapeDtypeStruct((Npad, Cout), jnp.float32),
        compiler_params=pltpu.CompilerParams(dimension_semantics=("parallel",)),
    )(*slabs, w_fused, bias)
    return out[:Np].reshape(B, Hp, Wp, Cout)


def conv2x2_relu(x, w, b, *, tile_rows=512):
    """2x2 valid conv + ReLU.  x: (B,H,W,Cin), w: (2,2,Cin,Cout) HWIO, b: (Cout,)."""
    B, H, W, Cin = x.shape
    Cout = w.shape[-1]
    Ho, Wo = H - 1, W - 1
    N = B * Ho * Wo
    K = 4 * Cin

    # fused im2col: (N, 4*Cin), tap order (0,0),(0,1),(1,0),(1,1)
    patches = jnp.concatenate(
        [x[:, dh:dh + Ho, dw:dw + Wo, :].reshape(N, Cin)
         for dh in (0, 1) for dw in (0, 1)], axis=-1)

    tile = min(tile_rows, _round_up(N, 8))
    Npad = _round_up(N, tile)
    if Npad != N:
        patches = jnp.pad(patches, ((0, Npad - N), (0, 0)))

    w_fused = w.reshape(K, Cout)                       # matches concat tap order
    bias = b.reshape(1, Cout)

    out = pl.pallas_call(
        _conv_mm_relu_kernel,
        grid=(Npad // tile,),
        in_specs=[
            pl.BlockSpec((tile, K), lambda i: (i, 0)),
            pl.BlockSpec((K, Cout), lambda i: (0, 0)),
            pl.BlockSpec((1, Cout), lambda i: (0, 0)),
        ],
        out_specs=pl.BlockSpec((tile, Cout), lambda i: (i, 0)),
        out_shape=jax.ShapeDtypeStruct((Npad, Cout), jnp.float32),
        compiler_params=pltpu.CompilerParams(dimension_semantics=("parallel",)),
    )(patches, w_fused, bias)
    return out[:N].reshape(B, Ho, Wo, Cout)


def linear_fc(x, w_padded, b, *, tile_n=256):
    """out = x @ wf + b, K-tiled with a VMEM accumulator.

    x        : (B, K) float      (cast to bf16 for the MXU)
    w_padded : (K_pad, Nout) bf16 (rows zero-padded to the K tiling)
    b        : (Nout,) f32
    """
    Bsz, K = x.shape
    K_pad, Nout = w_padded.shape
    tile_k, expected_pad = _fc_tiling(K)
    assert K_pad == expected_pad, (K, K_pad, expected_pad)
    if Nout % tile_n != 0:
        tile_n = Nout
    M_pad = _round_up(max(Bsz, 8), 8)

    xb = x.astype(jnp.bfloat16)
    if (M_pad != Bsz) or (K_pad != K):
        xb = jnp.pad(xb, ((0, M_pad - Bsz), (0, K_pad - K)))

    out = pl.pallas_call(
        _linear_kernel,
        grid=(Nout // tile_n, K_pad // tile_k),
        in_specs=[
            pl.BlockSpec((M_pad, tile_k), lambda j, k: (0, k)),
            pl.BlockSpec((tile_k, tile_n), lambda j, k: (k, j)),
            pl.BlockSpec((1, tile_n), lambda j, k: (0, j)),
        ],
        out_specs=pl.BlockSpec((M_pad, tile_n), lambda j, k: (0, j)),
        out_shape=jax.ShapeDtypeStruct((M_pad, Nout), jnp.float32),
        scratch_shapes=[pltpu.VMEM((M_pad, tile_n), jnp.float32)],
        compiler_params=pltpu.CompilerParams(
            dimension_semantics=("parallel", "arbitrary")),
    )(xb, w_padded, b.reshape(1, Nout))
    return out[:Bsz]


# ----------------------------------------------------------------------------
# One-time parameter repack for the Pallas forward
# ----------------------------------------------------------------------------
def prepare_params(params, H, W):
    """Fold the NCHW-flatten permutation into wf's row order (so the Pallas path
    can flatten NHWC directly), zero-pad wf to the FC K tiling, cast to bf16."""
    H1, W1 = H - 1, W - 1
    Hp, Wp = H1 // 2, W1 // 2
    H2, W2 = Hp - 1, Wp - 1
    H3, W3 = H2 - 1, W2 - 1
    Cout = 64

    wf = params["wf"]
    input_dim, out_dim = wf.shape
    assert input_dim == Cout * H3 * W3
    # NCHW flat index (c, h, w)  ->  NHWC flat index (h, w, c)
    wf_nhwc = (wf.reshape(Cout, H3, W3, out_dim)
                 .transpose(1, 2, 0, 3)
                 .reshape(input_dim, out_dim))
    _, k_pad = _fc_tiling(input_dim)
    if k_pad != input_dim:
        wf_nhwc = jnp.pad(wf_nhwc, ((0, k_pad - input_dim), (0, 0)))

    prepared = dict(params)
    del prepared["wf"]
    prepared["wf_packed"] = wf_nhwc.astype(jnp.bfloat16)
    return prepared


@jax.jit
def embedding_network_forward(prepared, image_nhwc):
    """Forward pass of EmbeddingNetwork.  image_nhwc = obs.image, (B, H, W, 3)."""
    x = image_nhwc.astype(jnp.float32)
    x = conv1_relu_pool(x, prepared["w1"], prepared["b1"])   # (B, Hp, Wp, 16)
    x = conv2x2_relu(x, prepared["w2"], prepared["b2"])      # (B, H2, W2, 32)
    x = conv2x2_relu(x, prepared["w3"], prepared["b3"])      # (B, H3, W3, 64)
    # NHWC flatten -- wf's rows were pre-permuted to match, no transpose needed.
    feat = x.reshape(x.shape[0], -1)
    return linear_fc(feat, prepared["wf_packed"], prepared["bf"])


# ----------------------------------------------------------------------------
# Deterministic parameter init (shapes follow the module's __init__; the
# Linear input_dim is derived from the spatial size used here).
# ----------------------------------------------------------------------------
def init_params(key, H, W, output_dim=512):
    H1, W1 = H - 1, W - 1
    Hp, Wp = H1 // 2, W1 // 2
    H2, W2 = Hp - 1, Wp - 1
    H3, W3 = H2 - 1, W2 - 1
    input_dim = 64 * H3 * W3

    ks = jax.random.split(key, 8)

    def u(k, shape, fan_in):
        lim = 1.0 / jnp.sqrt(jnp.float32(fan_in))
        return jax.random.uniform(k, shape, jnp.float32, -lim, lim)

    params = dict(
        w1=u(ks[0], (2, 2, 3, 16), 2 * 2 * 3),   b1=u(ks[1], (16,), 2 * 2 * 3),
        w2=u(ks[2], (2, 2, 16, 32), 2 * 2 * 16), b2=u(ks[3], (32,), 2 * 2 * 16),
        w3=u(ks[4], (2, 2, 32, 64), 2 * 2 * 32), b3=u(ks[5], (64,), 2 * 2 * 32),
        wf=u(ks[6], (input_dim, output_dim), input_dim),
        bf=u(ks[7], (output_dim,), input_dim),
    )
    return params, input_dim


# ----------------------------------------------------------------------------
# Pure-JAX reference (module semantics: NCHW flatten, f32 throughout)
# ----------------------------------------------------------------------------
def reference_forward(params, image_nhwc):
    dn = ("NHWC", "HWIO", "NHWC")
    hi = jax.lax.Precision.HIGHEST

    def conv(x, w, b):
        y = jax.lax.conv_general_dilated(x, w, (1, 1), "VALID",
                                         dimension_numbers=dn, precision=hi)
        return jax.nn.relu(y + b)

    def pool(x):
        Hp, Wp = x.shape[1] // 2, x.shape[2] // 2
        cands = [x[:, dh:2 * Hp:2, dw:2 * Wp:2, :] for dh in (0, 1) for dw in (0, 1)]
        return functools.reduce(jnp.maximum, cands)

    x = image_nhwc.astype(jnp.float32)
    x = conv(x, params["w1"], params["b1"])
    x = pool(x)
    x = conv(x, params["w2"], params["b2"])
    x = conv(x, params["w3"], params["b3"])
    feat = jnp.transpose(x, (0, 3, 1, 2)).reshape(x.shape[0], -1)   # NCHW flatten
    return jnp.dot(feat, params["wf"], precision=hi) + params["bf"]


if __name__ == "__main__":
    B, H, W = 2, 16, 16          # small shapes; real module uses 56x56 -> input_dim=40000
    OUTPUT_DIM = 512

    key = jax.random.PRNGKey(0)
    kp, kx = jax.random.split(key)
    params, input_dim = init_params(kp, H, W, OUTPUT_DIM)     # input_dim = 1600 here
    prepared = prepare_params(params, H, W)                   # one-time repack
    image = jax.random.normal(kx, (B, H, W, 3), jnp.float32)  # obs.image (NHWC)

    out = embedding_network_forward(prepared, image)
    out = jax.block_until_ready(out)
    assert out.shape == (B, OUTPUT_DIM)

    ref = reference_forward(params, image)
    # Tolerance accounts for bf16 FC weights/activations (f32 accumulation).
    if not jnp.allclose(out, ref, atol=2e-2, rtol=2e-2):
        raise AssertionError("Pallas output does not match JAX reference")

    print("KERNEL_OK")
</pallas_src>

<mosaic_0001>
module attributes {stable_mosaic.version = 11 : i64} {
  func.func @_conv1_relu_pool_kernel(%arg0: i32, %arg1: memref<104x12xf32, #tpu.memory_space<vmem>>, %arg2: memref<104x12xf32, #tpu.memory_space<vmem>>, %arg3: memref<104x12xf32, #tpu.memory_space<vmem>>, %arg4: memref<104x12xf32, #tpu.memory_space<vmem>>, %arg5: memref<12x16xf32, #tpu.memory_space<vmem>>, %arg6: memref<1x16xf32, #tpu.memory_space<vmem>>, %arg7: memref<104x16xf32, #tpu.memory_space<vmem>>) attributes {dimension_semantics = [#tpu.dimension_semantics<parallel>], iteration_bounds = array<i64: 1>, scalar_prefetch = 0 : i64, scratch_operands = 0 : i64, tpu.core_type = #tpu.core_type<tc>, window_params = [{transform_indices = @transform_0, window_bounds = array<i64: 104, 12>}, {transform_indices = @transform_1, window_bounds = array<i64: 104, 12>}, {transform_indices = @transform_2, window_bounds = array<i64: 104, 12>}, {transform_indices = @transform_3, window_bounds = array<i64: 104, 12>}, {pipeline_mode = #tpu.pipeline_mode<synchronous>, transform_indices = @transform_4, window_bounds = array<i64: 12, 16>}, {pipeline_mode = #tpu.pipeline_mode<synchronous>, transform_indices = @transform_5, window_bounds = array<i64: 1, 16>}, {transform_indices = @transform_6, window_bounds = array<i64: 104, 16>}]} {
    %c0 = arith.constant 0 : index
    %c0_0 = arith.constant 0 : index
    %0 = vector.load %arg5[%c0, %c0_0] : memref<12x16xf32, #tpu.memory_space<vmem>>, vector<12x16xf32>
    %c0_1 = arith.constant 0 : index
    %c0_2 = arith.constant 0 : index
    %1 = vector.load %arg6[%c0_1, %c0_2] : memref<1x16xf32, #tpu.memory_space<vmem>>, vector<1x16xf32>
    %c0_3 = arith.constant 0 : index
    %c0_4 = arith.constant 0 : index
    %2 = vector.load %arg1[%c0_3, %c0_4] : memref<104x12xf32, #tpu.memory_space<vmem>>, vector<104x12xf32>
    %cst = arith.constant dense<0.000000e+00> : vector<104x16xf32>
    %3 = tpu.matmul %2, %0, %cst {dimension_numbers = #tpu.dot_dimension_numbers<[1], [0], [0], [1], [0, 0, 1, 1], [], []>} : vector<104x12xf32>, vector<12x16xf32>, vector<104x16xf32> -> vector<104x16xf32>
    %4 = vector.broadcast %1 : vector<1x16xf32> to vector<104x16xf32>
    %5 = arith.addf %3, %4 : vector<104x16xf32>
    %cst_5 = arith.constant 0.000000e+00 : f32
    %6 = vector.broadcast %cst_5 : f32 to vector<104x16xf32>
    %7 = arith.maximumf %5, %6 : vector<104x16xf32>
    %c0_6 = arith.constant 0 : index
    %c0_7 = arith.constant 0 : index
    %8 = vector.load %arg2[%c0_6, %c0_7] : memref<104x12xf32, #tpu.memory_space<vmem>>, vector<104x12xf32>
    %cst_8 = arith.constant dense<0.000000e+00> : vector<104x16xf32>
    %9 = tpu.matmul %8, %0, %cst_8 {dimension_numbers = #tpu.dot_dimension_numbers<[1], [0], [0], [1], [0, 0, 1, 1], [], []>} : vector<104x12xf32>, vector<12x16xf32>, vector<104x16xf32> -> vector<104x16xf32>
    %10 = vector.broadcast %1 : vector<1x16xf32> to vector<104x16xf32>
    %11 = arith.addf %9, %10 : vector<104x16xf32>
    %cst_9 = arith.constant 0.000000e+00 : f32
    %12 = vector.broadcast %cst_9 : f32 to vector<104x16xf32>
    %13 = arith.maximumf %11, %12 : vector<104x16xf32>
    %14 = arith.maximumf %7, %13 : vector<104x16xf32>
    %c0_10 = arith.constant 0 : index
    %c0_11 = arith.constant 0 : index
    %15 = vector.load %arg3[%c0_10, %c0_11] : memref<104x12xf32, #tpu.memory_space<vmem>>, vector<104x12xf32>
    %cst_12 = arith.constant dense<0.000000e+00> : vector<104x16xf32>
    %16 = tpu.matmul %15, %0, %cst_12 {dimension_numbers = #tpu.dot_dimension_numbers<[1], [0], [0], [1], [0, 0, 1, 1], [], []>} : vector<104x12xf32>, vector<12x16xf32>, vector<104x16xf32> -> vector<104x16xf32>
    %17 = vector.broadcast %1 : vector<1x16xf32> to vector<104x16xf32>
    %18 = arith.addf %16, %17 : vector<104x16xf32>
    %cst_13 = arith.constant 0.000000e+00 : f32
    %19 = vector.broadcast %cst_13 : f32 to vector<104x16xf32>
    %20 = arith.maximumf %18, %19 : vector<104x16xf32>
    %c0_14 = arith.constant 0 : index
    %c0_15 = arith.constant 0 : index
    %21 = vector.load %arg4[%c0_14, %c0_15] : memref<104x12xf32, #tpu.memory_space<vmem>>, vector<104x12xf32>
    %cst_16 = arith.constant dense<0.000000e+00> : vector<104x16xf32>
    %22 = tpu.matmul %21, %0, %cst_16 {dimension_numbers = #tpu.dot_dimension_numbers<[1], [0], [0], [1], [0, 0, 1, 1], [], []>} : vector<104x12xf32>, vector<12x16xf32>, vector<104x16xf32> -> vector<104x16xf32>
    %23 = vector.broadcast %1 : vector<1x16xf32> to vector<104x16xf32>
    %24 = arith.addf %22, %23 : vector<104x16xf32>
    %cst_17 = arith.constant 0.000000e+00 : f32
    %25 = vector.broadcast %cst_17 : f32 to vector<104x16xf32>
    %26 = arith.maximumf %24, %25 : vector<104x16xf32>
    %27 = arith.maximumf %20, %26 : vector<104x16xf32>
    %28 = arith.maximumf %14, %27 : vector<104x16xf32>
    %c0_18 = arith.constant 0 : index
    %c0_19 = arith.constant 0 : index
    %29 = vector.load %arg7[%c0_18, %c0_19] : memref<104x16xf32, #tpu.memory_space<vmem>>, vector<104x16xf32>
    tpu.vector_store %arg7[%c0_18, %c0_19], %28 {strides = array<i32>} : memref<104x16xf32, #tpu.memory_space<vmem>>, vector<104x16xf32>,
    return
  }
  func.func @transform_0(%arg0: i32) -> (i32, i32) {
    %c0_i32 = arith.constant 0 : i32
    %c0_i32_0 = arith.constant 0 : i32
    return %arg0, %c0_i32 : i32, i32
  }
  func.func @transform_1(%arg0: i32) -> (i32, i32) {
    %c0_i32 = arith.constant 0 : i32
    %c0_i32_0 = arith.constant 0 : i32
    return %arg0, %c0_i32 : i32, i32
  }
  func.func @transform_2(%arg0: i32) -> (i32, i32) {
    %c0_i32 = arith.constant 0 : i32
    %c0_i32_0 = arith.constant 0 : i32
    return %arg0, %c0_i32 : i32, i32
  }
  func.func @transform_3(%arg0: i32) -> (i32, i32) {
    %c0_i32 = arith.constant 0 : i32
    %c0_i32_0 = arith.constant 0 : i32
    return %arg0, %c0_i32 : i32, i32
  }
  func.func @transform_4(%arg0: i32) -> (i32, i32) {
    %c0_i32 = arith.constant 0 : i32
    %c0_i32_0 = arith.constant 0 : i32
    %c0_i32_1 = arith.constant 0 : i32
    return %c0_i32, %c0_i32_0 : i32, i32
  }
  func.func @transform_5(%arg0: i32) -> (i32, i32) {
    %c0_i32 = arith.constant 0 : i32
    %c0_i32_0 = arith.constant 0 : i32
    %c0_i32_1 = arith.constant 0 : i32
    return %c0_i32, %c0_i32_0 : i32, i32
  }
  func.func @transform_6(%arg0: i32) -> (i32, i32) {
    %c0_i32 = arith.constant 0 : i32
    %c0_i32_0 = arith.constant 0 : i32
    return %arg0, %c0_i32 : i32, i32
  }
}

module attributes {stable_mosaic.version = 11 : i64} {
  func.func @_conv_mm_relu_kernel(%arg0: i32, %arg1: memref<72x64xf32, #tpu.memory_space<vmem>>, %arg2: memref<64x32xf32, #tpu.memory_space<vmem>>, %arg3: memref<1x32xf32, #tpu.memory_space<vmem>>, %arg4: memref<72x32xf32, #tpu.memory_space<vmem>>) attributes {dimension_semantics = [#tpu.dimension_semantics<parallel>], iteration_bounds = array<i64: 1>, scalar_prefetch = 0 : i64, scratch_operands = 0 : i64, tpu.core_type = #tpu.core_type<tc>, window_params = [{transform_indices = @transform_0, window_bounds = array<i64: 72, 64>}, {pipeline_mode = #tpu.pipeline_mode<synchronous>, transform_indices = @transform_1, window_bounds = array<i64: 64, 32>}, {pipeline_mode = #tpu.pipeline_mode<synchronous>, transform_indices = @transform_2, window_bounds = array<i64: 1, 32>}, {transform_indices = @transform_3, window_bounds = array<i64: 72, 32>}]} {
    %c0 = arith.constant 0 : index
    %c0_0 = arith.constant 0 : index
    %0 = vector.load %arg1[%c0, %c0_0] : memref<72x64xf32, #tpu.memory_space<vmem>>, vector<72x64xf32>
    %c0_1 = arith.constant 0 : index
    %c0_2 = arith.constant 0 : index
    %1 = vector.load %arg2[%c0_1, %c0_2] : memref<64x32xf32, #tpu.memory_space<vmem>>, vector<64x32xf32>
    %cst = arith.constant dense<0.000000e+00> : vector<72x32xf32>
    %2 = tpu.matmul %0, %1, %cst {dimension_numbers = #tpu.dot_dimension_numbers<[1], [0], [0], [1], [0, 0, 1, 1], [], []>} : vector<72x64xf32>, vector<64x32xf32>, vector<72x32xf32> -> vector<72x32xf32>
    %c0_3 = arith.constant 0 : index
    %c0_4 = arith.constant 0 : index
    %3 = vector.load %arg3[%c0_3, %c0_4] : memref<1x32xf32, #tpu.memory_space<vmem>>, vector<1x32xf32>
    %4 = vector.broadcast %3 : vector<1x32xf32> to vector<72x32xf32>
    %5 = arith.addf %2, %4 : vector<72x32xf32>
    %cst_5 = arith.constant 0.000000e+00 : f32
    %6 = vector.broadcast %cst_5 : f32 to vector<72x32xf32>
    %7 = arith.maximumf %5, %6 : vector<72x32xf32>
    %c0_6 = arith.constant 0 : index
    %c0_7 = arith.constant 0 : index
    %8 = vector.load %arg4[%c0_6, %c0_7] : memref<72x32xf32, #tpu.memory_space<vmem>>, vector<72x32xf32>
    tpu.vector_store %arg4[%c0_6, %c0_7], %7 {strides = array<i32>} : memref<72x32xf32, #tpu.memory_space<vmem>>, vector<72x32xf32>,
    return
  }
  func.func @transform_0(%arg0: i32) -> (i32, i32) {
    %c0_i32 = arith.constant 0 : i32
    %c0_i32_0 = arith.constant 0 : i32
    return %arg0, %c0_i32 : i32, i32
  }
  func.func @transform_1(%arg0: i32) -> (i32, i32) {
    %c0_i32 = arith.constant 0 : i32
    %c0_i32_0 = arith.constant 0 : i32
    %c0_i32_1 = arith.constant 0 : i32
    return %c0_i32, %c0_i32_0 : i32, i32
  }
  func.func @transform_2(%arg0: i32) -> (i32, i32) {
    %c0_i32 = arith.constant 0 : i32
    %c0_i32_0 = arith.constant 0 : i32
    %c0_i32_1 = arith.constant 0 : i32
    return %c0_i32, %c0_i32_0 : i32, i32
  }
  func.func @transform_3(%arg0: i32) -> (i32, i32) {
    %c0_i32 = arith.constant 0 : i32
    %c0_i32_0 = arith.constant 0 : i32
    return %arg0, %c0_i32 : i32, i32
  }
}

module attributes {stable_mosaic.version = 11 : i64} {
  func.func @_conv_mm_relu_kernel(%arg0: i32, %arg1: memref<56x128xf32, #tpu.memory_space<vmem>>, %arg2: memref<128x64xf32, #tpu.memory_space<vmem>>, %arg3: memref<1x64xf32, #tpu.memory_space<vmem>>, %arg4: memref<56x64xf32, #tpu.memory_space<vmem>>) attributes {dimension_semantics = [#tpu.dimension_semantics<parallel>], iteration_bounds = array<i64: 1>, scalar_prefetch = 0 : i64, scratch_operands = 0 : i64, tpu.core_type = #tpu.core_type<tc>, window_params = [{transform_indices = @transform_0, window_bounds = array<i64: 56, 128>}, {pipeline_mode = #tpu.pipeline_mode<synchronous>, transform_indices = @transform_1, window_bounds = array<i64: 128, 64>}, {pipeline_mode = #tpu.pipeline_mode<synchronous>, transform_indices = @transform_2, window_bounds = array<i64: 1, 64>}, {transform_indices = @transform_3, window_bounds = array<i64: 56, 64>}]} {
    %c0 = arith.constant 0 : index
    %c0_0 = arith.constant 0 : index
    %0 = vector.load %arg1[%c0, %c0_0] : memref<56x128xf32, #tpu.memory_space<vmem>>, vector<56x128xf32>
    %c0_1 = arith.constant 0 : index
    %c0_2 = arith.constant 0 : index
    %1 = vector.load %arg2[%c0_1, %c0_2] : memref<128x64xf32, #tpu.memory_space<vmem>>, vector<128x64xf32>
    %cst = arith.constant dense<0.000000e+00> : vector<56x64xf32>
    %2 = tpu.matmul %0, %1, %cst {dimension_numbers = #tpu.dot_dimension_numbers<[1], [0], [0], [1], [0, 0, 1, 1], [], []>} : vector<56x128xf32>, vector<128x64xf32>, vector<56x64xf32> -> vector<56x64xf32>
    %c0_3 = arith.constant 0 : index
    %c0_4 = arith.constant 0 : index
    %3 = vector.load %arg3[%c0_3, %c0_4] : memref<1x64xf32, #tpu.memory_space<vmem>>, vector<1x64xf32>
    %4 = vector.broadcast %3 : vector<1x64xf32> to vector<56x64xf32>
    %5 = arith.addf %2, %4 : vector<56x64xf32>
    %cst_5 = arith.constant 0.000000e+00 : f32
    %6 = vector.broadcast %cst_5 : f32 to vector<56x64xf32>
    %7 = arith.maximumf %5, %6 : vector<56x64xf32>
    %c0_6 = arith.constant 0 : index
    %c0_7 = arith.constant 0 : index
    %8 = vector.load %arg4[%c0_6, %c0_7] : memref<56x64xf32, #tpu.memory_space<vmem>>, vector<56x64xf32>
    tpu.vector_store %arg4[%c0_6, %c0_7], %7 {strides = array<i32>} : memref<56x64xf32, #tpu.memory_space<vmem>>, vector<56x64xf32>,
    return
  }
  func.func @transform_0(%arg0: i32) -> (i32, i32) {
    %c0_i32 = arith.constant 0 : i32
    %c0_i32_0 = arith.constant 0 : i32
    return %arg0, %c0_i32 : i32, i32
  }
  func.func @transform_1(%arg0: i32) -> (i32, i32) {
    %c0_i32 = arith.constant 0 : i32
    %c0_i32_0 = arith.constant 0 : i32
    %c0_i32_1 = arith.constant 0 : i32
    return %c0_i32, %c0_i32_0 : i32, i32
  }
  func.func @transform_2(%arg0: i32) -> (i32, i32) {
    %c0_i32 = arith.constant 0 : i32
    %c0_i32_0 = arith.constant 0 : i32
    %c0_i32_1 = arith.constant 0 : i32
    return %c0_i32, %c0_i32_0 : i32, i32
  }
  func.func @transform_3(%arg0: i32) -> (i32, i32) {
    %c0_i32 = arith.constant 0 : i32
    %c0_i32_0 = arith.constant 0 : i32
    return %arg0, %c0_i32 : i32, i32
  }
}

module attributes {stable_mosaic.version = 11 : i64} {
  func.func @_linear_kernel(%arg0: i32, %arg1: i32, %arg2: memref<8x2048xbf16, #tpu.memory_space<vmem>>, %arg3: memref<2048x256xbf16, #tpu.memory_space<vmem>>, %arg4: memref<1x256xf32, #tpu.memory_space<vmem>>, %arg5: memref<8x256xf32, #tpu.memory_space<vmem>>, %arg6: memref<8x256xf32, #tpu.memory_space<vmem>>) attributes {dimension_semantics = [#tpu.dimension_semantics<parallel>, #tpu.dimension_semantics<arbitrary>], iteration_bounds = array<i64: 2, 1>, scalar_prefetch = 0 : i64, scratch_operands = 1 : i64, tpu.core_type = #tpu.core_type<tc>, window_params = [{transform_indices = @transform_0, window_bounds = array<i64: 8, 2048>}, {transform_indices = @transform_1, window_bounds = array<i64: 2048, 256>}, {transform_indices = @transform_2, window_bounds = array<i64: 1, 256>}, {transform_indices = @transform_3, window_bounds = array<i64: 8, 256>}]} {
    %c0_i32 = arith.constant 0 : i32
    %0 = arith.cmpi eq, %arg1, %c0_i32 : i32
    %1 = arith.extui %0 : i1 to i32
    %c0_i32_0 = arith.constant 0 : i32
    %2 = arith.cmpi ne, %1, %c0_i32_0 : i32
    scf.if %2 {
      %cst_10 = arith.constant 0.000000e+00 : f32
      %12 = vector.broadcast %cst_10 : f32 to vector<8x256xf32>
      %c0_11 = arith.constant 0 : index
      %c0_12 = arith.constant 0 : index
      %13 = vector.load %arg6[%c0_11, %c0_12] : memref<8x256xf32, #tpu.memory_space<vmem>>, vector<8x256xf32>
      tpu.vector_store %arg6[%c0_11, %c0_12], %12 {strides = array<i32>} : memref<8x256xf32, #tpu.memory_space<vmem>>, vector<8x256xf32>,
    } else {
    }
    %c0 = arith.constant 0 : index
    %c0_1 = arith.constant 0 : index
    %3 = vector.load %arg6[%c0, %c0_1] : memref<8x256xf32, #tpu.memory_space<vmem>>, vector<8x256xf32>
    %c0_2 = arith.constant 0 : index
    %c0_3 = arith.constant 0 : index
    %4 = vector.load %arg2[%c0_2, %c0_3] : memref<8x2048xbf16, #tpu.memory_space<vmem>>, vector<8x2048xbf16>
    %c0_4 = arith.constant 0 : index
    %c0_5 = arith.constant 0 : index
    %5 = vector.load %arg3[%c0_4, %c0_5] : memref<2048x256xbf16, #tpu.memory_space<vmem>>, vector<2048x256xbf16>
    %cst = arith.constant dense<0.000000e+00> : vector<8x256xf32>
    %6 = tpu.matmul %4, %5, %cst {dimension_numbers = #tpu.dot_dimension_numbers<[1], [0], [0], [1], [0, 0, 1, 1], [], []>} : vector<8x2048xbf16>, vector<2048x256xbf16>, vector<8x256xf32> -> vector<8x256xf32>
    %7 = arith.addf %3, %6 : vector<8x256xf32>
    %c0_6 = arith.constant 0 : index
    %c0_7 = arith.constant 0 : index
    %8 = vector.load %arg6[%c0_6, %c0_7] : memref<8x256xf32, #tpu.memory_space<vmem>>, vector<8x256xf32>
    tpu.vector_store %arg6[%c0_6, %c0_7], %7 {strides = array<i32>} : memref<8x256xf32, #tpu.memory_space<vmem>>, vector<8x256xf32>,
    %c0_i32_8 = arith.constant 0 : i32
    %9 = arith.cmpi eq, %arg1, %c0_i32_8 : i32
    %10 = arith.extui %9 : i1 to i32
    %c0_i32_9 = arith.constant 0 : i32
    %11 = arith.cmpi ne, %10, %c0_i32_9 : i32
    scf.if %11 {
      %c0_10 = arith.constant 0 : index
      %c0_11 = arith.constant 0 : index
      %12 = vector.load %arg6[%c0_10, %c0_11] : memref<8x256xf32, #tpu.memory_space<vmem>>, vector<8x256xf32>
      %c0_12 = arith.constant 0 : index
      %c0_13 = arith.constant 0 : index
      %13 = vector.load %arg4[%c0_12, %c0_13] : memref<1x256xf32, #tpu.memory_space<vmem>>, vector<1x256xf32>
      %14 = vector.broadcast %13 : vector<1x256xf32> to vector<8x256xf32>
      %15 = arith.addf %12, %14 : vector<8x256xf32>
      %c0_14 = arith.constant 0 : index
      %c0_15 = arith.constant 0 : index
      %16 = vector.load %arg5[%c0_14, %c0_15] : memref<8x256xf32, #tpu.memory_space<vmem>>, vector<8x256xf32>
      tpu.vector_store %arg5[%c0_14, %c0_15], %15 {strides = array<i32>} : memref<8x256xf32, #tpu.memory_space<vmem>>, vector<8x256xf32>,
    } else {
    }
    return
  }
  func.func @transform_0(%arg0: i32, %arg1: i32) -> (i32, i32) {
    %c0_i32 = arith.constant 0 : i32
    %c0_i32_0 = arith.constant 0 : i32
    return %c0_i32, %arg1 : i32, i32
  }
  func.func @transform_1(%arg0: i32, %arg1: i32) -> (i32, i32) {
    %c0_i32 = arith.constant 0 : i32
    return %arg1, %arg0 : i32, i32
  }
  func.func @transform_2(%arg0: i32, %arg1: i32) -> (i32, i32) {
    %c0_i32 = arith.constant 0 : i32
    %c0_i32_0 = arith.constant 0 : i32
    return %c0_i32, %arg0 : i32, i32
  }
  func.func @transform_3(%arg0: i32, %arg1: i32) -> (i32, i32) {
    %c0_i32 = arith.constant 0 : i32
    %c0_i32_0 = arith.constant 0 : i32
    return %c0_i32, %arg0 : i32, i32
  }
}

</mosaic_0001>

<bundles_post_ra>
// kernel: embedding_network_forward.5
= control target key start
LH: loop header
LB: loop body
LE: loop exit
PB: predicated region body
PF: predicated region fallthrough
CT: control target
= control target key end

     0   :  { %vm35_vm0 = vcmask 523264   ;;  %vm116_vm1 = vcmask 261120   ;;  %s283_s1 = inlined_call_operand.vmem [shape: f32[64,32], index: 1, kind: input, shape index: {}]   ;;  %s284_s2 = inlined_call_operand.vmem [shape: f32[1,32], index: 2, kind: input, shape index: {}]   ;;  %s285_s0 = inlined_call_operand.vmem [shape: f32[72,64], index: 0, kind: input, shape index: {}]   ;;  %s286_s3 = inlined_call_operand.vmem [shape: f32[72,32], index: 3, kind: output, shape index: {}]  }
   0x1   :  { %v30_v0 = vld [vmem:[%s283_s1 + $0x38] sm:$0xff]  ;;  %v29_v1 = vld [vmem:[%s283_s1 + $0x30] sm:$0xff]  ;;  %v28_v2 = vld [vmem:[%s283_s1 + $0x28] sm:$0xff] }
   0x2   :  { %140 = vmatpush.msra.mxu2 %v30_v0  ;;  %141 = vmatpush.msra.mxu3 %v30_v0  ;;  %v27_v3 = vld [vmem:[%s283_s1 + $0x20] sm:$0xff]  ;;  %v26_v4 = vld [vmem:[%s283_s1 + $0x18] sm:$0xff]  ;;  %v25_v5 = vld [vmem:[%s283_s1 + $0x10] sm:$0xff] }
   0x3   :  { %71 = vmatpush.msra.mxu0 %v30_v0  ;;  %139 = vmatpush.msra.mxu1 %v30_v0  ;;  %v24_v6 = vld [vmem:[%s283_s1 + $0x8] sm:$0xff]  ;;  %v23_v7 = vld [vmem:[%s283_s1] sm:$0xff]  ;;  %v21_v9 = vld [vmem:[%s285_s0 + $0x38] sm:$0xff] }
   0x4   :  { %143 = vmatpush.msra.mxu2 %v29_v1  ;;  %144 = vmatpush.msra.mxu3 %v29_v1  ;;  %v18_v8 = vld [vmem:[%s285_s0 + $0x20] sm:$0xff]  ;;  %v16_v11 = vld [vmem:[%s285_s0 + $0x10] sm:$0xff]  ;;  %v19_v12 = vld [vmem:[%s285_s0 + $0x28] sm:$0xff] }
   0x5   :  { %72 = vmatpush.msra.mxu0 %v29_v1  ;;  %142 = vmatpush.msra.mxu1 %v29_v1  ;;  %v14_v10 = vld [vmem:[%s285_s0] sm:$0xff]  ;;  %v15_v14 = vld [vmem:[%s285_s0 + $0x8] sm:$0xff]  ;;  %v17_v15 = vld [vmem:[%s285_s0 + $0x18] sm:$0xff] }
   0x6   :  { %146 = vmatpush.msra.mxu2 %v28_v2  ;;  %147 = vmatpush.msra.mxu3 %v28_v2  ;;  %v22_v13 = vld [vmem:[%s285_s0 + $0x40] sm:$0xff]  ;;  %v20_v16 = vld [vmem:[%s285_s0 + $0x30] sm:$0xff] }
   0x7   :  { %73 = vmatpush.msra.mxu0 %v28_v2  ;;  %145 = vmatpush.msra.mxu1 %v28_v2  ;;  %v163_v17 = vld [vmem:[%s284_s2] ss:$0 sm:$0xff] }
   0x8   :  { %149 = vmatpush.msra.mxu2 %v27_v3  ;;  %150 = vmatpush.msra.mxu3 %v27_v3 }
   0x9   :  { %74 = vmatpush.msra.mxu0 %v27_v3  ;;  %148 = vmatpush.msra.mxu1 %v27_v3 }
   0xa   :  { %152 = vmatpush.msra.mxu2 %v26_v4  ;;  %153 = vmatpush.msra.mxu3 %v26_v4 }
   0xb   :  { %75 = vmatpush.msra.mxu0 %v26_v4  ;;  %151 = vmatpush.msra.mxu1 %v26_v4 }
   0xc   :  { %155 = vmatpush.msra.mxu2 %v25_v5  ;;  %156 = vmatpush.msra.mxu3 %v25_v5 }
   0xd   :  { %76 = vmatpush.msra.mxu0 %v25_v5  ;;  %154 = vmatpush.msra.mxu1 %v25_v5 }
   0xe   :  { %158 = vmatpush.msra.mxu2 %v24_v6  ;;  %159 = vmatpush.msra.mxu3 %v24_v6 }
   0xf   :  { %77 = vmatpush.msra.mxu0 %v24_v6  ;;  %157 = vmatpush.msra.mxu1 %v24_v6 }
  0x10   :  { %161 = vmatpush.msra.mxu2 %v23_v7  ;;  %162 = vmatpush.msra.mxu3 %v23_v7 }
  0x11   :  { %134 = vmatmul.msk.f32.vlgmr.msra.gmra.mxu2 %vm35_vm0, %v18_v8  ;;  %137 = vmatmul.msk.f32.vlgmr.msra.gmra.mxu3 %vm35_vm0, %v21_v9 }
  0x12   :  { %78 = vmatpush.msra.mxu0 %v23_v7  ;;  %160 = vmatpush.msra.mxu1 %v23_v7 }
  0x13   :  { %130 = vmatmul.msk.f32.vlgmr.msra.gmra.mxu0 %vm35_vm0, %v14_v10  ;;  %132 = vmatmul.msk.f32.vlgmr.msra.gmra.mxu1 %vm35_vm0, %v16_v11 }
  0x19   :  { %135 = vmatmul.msk.f32.gmra.mxu2 %vm35_vm0, %v19_v12  ;;  %138 = vmatmul.msk.f32.gmra.mxu3 %vm35_vm0, %v22_v13 }
  0x1b   :  { %131 = vmatmul.msk.f32.gmra.mxu0 %vm35_vm0, %v15_v14  ;;  %133 = vmatmul.msk.f32.gmra.mxu1 %vm35_vm0, %v17_v15 }
  0x21   :  { %136 = vmatmul.msk.f32.gmra.mxu2 %vm35_vm0, %v20_v16 }
  0x90   :  { %v80_v18 = vpop.f32.mrf.mxu0  ;;  %v86_v19 = vpop.f32.mrf.mxu1 }
  0x91   :  { %v81_v20 = vadd.f32 %v163_v17, %v80_v18  ;;  %v87_v21 = vadd.f32 %v163_v17, %v86_v19 }
  0x93   :  { %v107_v22 = vmax.f32 %v81_v20, 0.0  ;;  %v109_v23 = vmax.f32 %v87_v21, 0.0 }
  0x94   :  { %v92_v24 = vpop.f32.mrf.mxu2  ;;  %v101_v25 = vpop.f32.mrf.mxu3 }
  0x95   :  { %v93_v26 = vadd.f32 %v163_v17, %v92_v24  ;;  %117 = vst.msk [vmem:[%s286_s3] sm:$0xff] %vm116_vm1, %v107_v22  ;;  %v102_v27 = vadd.f32 %v163_v17, %v101_v25 }
  0x96   :  { %119 = vst.msk [vmem:[%s286_s3 + $0x10] sm:$0xff] %vm116_vm1, %v109_v23 }
  0x97   :  { %v111_v28 = vmax.f32 %v93_v26, 0.0  ;;  %v114_v29 = vmax.f32 %v102_v27, 0.0 }
  0x98   :  { %v83_v30 = vpop.f32.mrf.mxu0  ;;  %v89_v31 = vpop.f32.mrf.mxu1 }
  0x99   :  { %121 = vst.msk [vmem:[%s286_s3 + $0x20] sm:$0xff] %vm116_vm1, %v111_v28  ;;  %v84_v32 = vadd.f32 %v163_v17, %v83_v30  ;;  %v90_v33 = vadd.f32 %v163_v17, %v89_v31 }
  0x9a   :  { %124 = vst.msk [vmem:[%s286_s3 + $0x38] sm:$0xff] %vm116_vm1, %v114_v29 }
  0x9b   :  { %v108_v34 = vmax.f32 %v84_v32, 0.0  ;;  %v110_v35 = vmax.f32 %v90_v33, 0.0 }
  0x9c   :  { %v95_v36 = vpop.f32.mrf.mxu2  ;;  %v104_v37 = vpop.f32.mrf.mxu3 }
  0x9d   :  { %v96_v38 = vadd.f32 %v163_v17, %v95_v36  ;;  %118 = vst.msk [vmem:[%s286_s3 + $0x8] sm:$0xff] %vm116_vm1, %v108_v34  ;;  %v105_v39 = vadd.f32 %v163_v17, %v104_v37 }
  0x9e   :  { %120 = vst.msk [vmem:[%s286_s3 + $0x18] sm:$0xff] %vm116_vm1, %v110_v35 }
  0x9f   :  { %v112_v40 = vmax.f32 %v96_v38, 0.0  ;;  %v115_v41 = vmax.f32 %v105_v39, 0.0 }
  0xa1   :  { %122 = vst.msk [vmem:[%s286_s3 + $0x28] sm:$0xff] %vm116_vm1, %v112_v40 }
  0xa2   :  { %125 = vst.msk [vmem:[%s286_s3 + $0x40] sm:$0xff] %vm116_vm1, %v115_v41 }
  0xa4   :  { %v98_v42 = vpop.f32.mrf.mxu2 }
  0xa5   :  { %v99_v43 = vadd.f32 %v163_v17, %v98_v42 }
  0xa7   :  { %v113_v44 = vmax.f32 %v99_v43, 0.0 }
  0xa9   :  { %123 = vst.msk [vmem:[%s286_s3 + $0x30] sm:$0xff] %vm116_vm1, %v113_v44 }

// kernel: embedding_network_forward.4
= control target key start
LH: loop header
LB: loop body
LE: loop exit
PB: predicated region body
PF: predicated region fallthrough
CT: control target
= control target key end

     0   :  { %11 = vsyncpa [#allocation3], 0  ;;  %s674_s24 = smov [#allocation2]   ;;  %s1033_s0 = inlined_call_operand.vmem [shape: f32[104,12], index: 0, kind: input, shape index: {}]   ;;  %s1034_s1 = inlined_call_operand.vmem [shape: f32[104,12], index: 1, kind: input, shape index: {}]   ;;  %s1035_s2 = inlined_call_operand.vmem [shape: f32[104,12], index: 2, kind: input, shape index: {}]   ;;  %s1036_s3 = inlined_call_operand.vmem [shape: f32[104,12], index: 3, kind: input, shape index: {}]   ;;  %s1037_s4 = inlined_call_operand.vmem [shape: f32[12,16], index: 4, kind: input, shape index: {}]   ;;  %s1038_s5 = inlined_call_operand.hbm [shape: f32[1,16], index: 5, kind: input, shape index: {}]   ;;  %s1039_s6 = inlined_call_operand.vmem [shape: f32[104,16], index: 6, kind: output, shape index: {}]  }
   0x1   :  { %s27_s23 = sshll.u32 %s1038_s5, 4  ;;  %s29_s25 = sshll.u32 %s674_s24, 4  ;;  %s28_s23 = int_to_ptr.hbm [resolvable:$true] %s27_s23  ;;  %s30_s25 = int_to_ptr.vmem [resolvable:$true] %s29_s25 }
   0x2   :  { %32 = dma.hbm_to_vmem [thread:$0]  %s28_s23, 16, %s30_s25, [#allocation3]  }
   0x3   :  { %672 = dma.done.wait [#allocation3], 16  }
   0x4   :  { %673 = vsyncadd [#allocation3], 4294967280  ;;  %vm96_vm0 = vcmask 1043456   ;;  %v38_v0 = vld [vmem:[%s1037_s4 + $0x8] sm:$0xf]  ;;  %v37_v1 = vld [vmem:[%s1037_s4] sm:$0xff] }
   0x5   :  { %618 = vmatpush.msk.msra.mxu2 %vm96_vm0, %v38_v0  ;;  %632 = vmatpush.msk.msra.mxu3 %vm96_vm0, %v38_v0  ;;  %vm56_vm1 = vcmask 97280   ;;  %v303_v2 = vld [vmem:[%s1035_s2] sm:$0xff]  ;;  %v304_v6 = vld [vmem:[%s1035_s2 + $0x8] sm:$0xff]  ;;  %v305_v10 = vld [vmem:[%s1035_s2 + $0x10] sm:$0xff]  ;;  %vm571_vm2 = vcmask 130048  }
   0x6   :  { %v424_v3 = vld [vmem:[%s1036_s3] sm:$0xff]  ;;  %590 = vmatpush.msk.msra.mxu0 %vm96_vm0, %v38_v0  ;;  %604 = vmatpush.msk.msra.mxu1 %vm96_vm0, %v38_v0  ;;  %v425_v7 = vld [vmem:[%s1036_s3 + $0x8] sm:$0xff]  ;;  %v426_v11 = vld [vmem:[%s1036_s3 + $0x10] sm:$0xff] }
   0x7   :  { %370 = vmatpush.msra.mxu2 %v37_v1  ;;  %491 = vmatpush.msra.mxu3 %v37_v1  ;;  %v40_v4 = vld [vmem:[%s1033_s0] sm:$0xff]  ;;  %v41_v8 = vld [vmem:[%s1033_s0 + $0x8] sm:$0xff]  ;;  %v42_v12 = vld [vmem:[%s1033_s0 + $0x10] sm:$0xff] }
   0x8   :  { %v169_v5 = vld [vmem:[%s1034_s1] sm:$0xff]  ;;  %619 = vmatmul.msk.f32.vlgmr.msra.gmra.mxu2 %vm56_vm1, %v303_v2  ;;  %633 = vmatmul.msk.f32.vlgmr.msra.gmra.mxu3 %vm56_vm1, %v424_v3  ;;  %v170_v9 = vld [vmem:[%s1034_s1 + $0x8] sm:$0xff]  ;;  %v171_v13 = vld [vmem:[%s1034_s1 + $0x10] sm:$0xff] }
   0x9   :  { %115 = vmatpush.msra.mxu0 %v37_v1  ;;  %236 = vmatpush.msra.mxu1 %v37_v1  ;;  %v306_v14 = vld [vmem:[%s1035_s2 + $0x18] sm:$0xff]  ;;  %v307_v18 = vld [vmem:[%s1035_s2 + $0x20] sm:$0xff]  ;;  %v308_v22 = vld [vmem:[%s1035_s2 + $0x28] sm:$0xff] }
   0xa   :  { %591 = vmatmul.msk.f32.vlgmr.msra.gmra.mxu0 %vm56_vm1, %v40_v4  ;;  %605 = vmatmul.msk.f32.vlgmr.msra.gmra.mxu1 %vm56_vm1, %v169_v5  ;;  %v427_v15 = vld [vmem:[%s1036_s3 + $0x18] sm:$0xff]  ;;  %v428_v19 = vld [vmem:[%s1036_s3 + $0x20] sm:$0xff]  ;;  %v429_v23 = vld [vmem:[%s1036_s3 + $0x28] sm:$0xff] }
   0xb   :  { %v43_v16 = vld [vmem:[%s1033_s0 + $0x18] sm:$0xff]  ;;  %v44_v20 = vld [vmem:[%s1033_s0 + $0x20] sm:$0xff]  ;;  %v45_v24 = vld [vmem:[%s1033_s0 + $0x28] sm:$0xff] }
   0xc   :  { %v172_v17 = vld [vmem:[%s1034_s1 + $0x18] sm:$0xff]  ;;  %v173_v21 = vld [vmem:[%s1034_s1 + $0x20] sm:$0xff]  ;;  %v174_v25 = vld [vmem:[%s1034_s1 + $0x28] sm:$0xff] }
   0xd   :  { %v309_v26 = vld [vmem:[%s1035_s2 + $0x30] sm:$0xff]  ;;  %v310_v30 = vld [vmem:[%s1035_s2 + $0x38] sm:$0xff]  ;;  %v311_v34 = vld [vmem:[%s1035_s2 + $0x40] sm:$0xff] }
   0xe   :  { %v430_v27 = vld [vmem:[%s1036_s3 + $0x30] sm:$0xff]  ;;  %v431_v31 = vld [vmem:[%s1036_s3 + $0x38] sm:$0xff]  ;;  %v432_v35 = vld [vmem:[%s1036_s3 + $0x40] sm:$0xff] }
   0xf   :  { %v46_v28 = vld [vmem:[%s1033_s0 + $0x30] sm:$0xff]  ;;  %v47_v32 = vld [vmem:[%s1033_s0 + $0x38] sm:$0xff]  ;;  %v48_v36 = vld [vmem:[%s1033_s0 + $0x40] sm:$0xff] }
  0x10   :  { %620 = vmatmul.msk.f32.gmra.mxu2 %vm56_vm1, %v304_v6  ;;  %634 = vmatmul.msk.f32.gmra.mxu3 %vm56_vm1, %v425_v7  ;;  %v175_v29 = vld [vmem:[%s1034_s1 + $0x30] sm:$0xff]  ;;  %v176_v33 = vld [vmem:[%s1034_s1 + $0x38] sm:$0xff]  ;;  %v177_v37 = vld [vmem:[%s1034_s1 + $0x40] sm:$0xff] }
  0x11   :  { %v312_v38 = vld [vmem:[%s1035_s2 + $0x48] sm:$0xff]  ;;  %v313_v42 = vld [vmem:[%s1035_s2 + $0x50] sm:$0xff]  ;;  %v314_v46 = vld [vmem:[%s1035_s2 + $0x58] sm:$0xff] }
  0x12   :  { %592 = vmatmul.msk.f32.gmra.mxu0 %vm56_vm1, %v41_v8  ;;  %606 = vmatmul.msk.f32.gmra.mxu1 %vm56_vm1, %v170_v9  ;;  %v433_v39 = vld [vmem:[%s1036_s3 + $0x48] sm:$0xff]  ;;  %v434_v43 = vld [vmem:[%s1036_s3 + $0x50] sm:$0xff]  ;;  %v435_v47 = vld [vmem:[%s1036_s3 + $0x58] sm:$0xff] }
  0x13   :  { %v49_v40 = vld [vmem:[%s1033_s0 + $0x48] sm:$0xff]  ;;  %v50_v44 = vld [vmem:[%s1033_s0 + $0x50] sm:$0xff]  ;;  %v51_v48 = vld [vmem:[%s1033_s0 + $0x58] sm:$0xff] }
  0x14   :  { %v178_v41 = vld [vmem:[%s1034_s1 + $0x48] sm:$0xff]  ;;  %v179_v45 = vld [vmem:[%s1034_s1 + $0x50] sm:$0xff]  ;;  %v180_v49 = vld [vmem:[%s1034_s1 + $0x58] sm:$0xff] }
  0x15   :  { %v315_v50 = vld [vmem:[%s1035_s2 + $0x60] sm:$0xff] }
  0x16   :  { %v436_v51 = vld [vmem:[%s1036_s3 + $0x60] sm:$0xff] }
  0x17   :  { %v52_v52 = vld [vmem:[%s1033_s0 + $0x60] sm:$0xff] }
  0x18   :  { %621 = vmatmul.msk.f32.gmra.mxu2 %vm56_vm1, %v305_v10  ;;  %635 = vmatmul.msk.f32.gmra.mxu3 %vm56_vm1, %v426_v11  ;;  %v181_v53 = vld [vmem:[%s1034_s1 + $0x60] sm:$0xff] }
  0x19   :  { %v927_v54 = vld [vmem:[#allocation2] ss:$0 sm:$0xff] }
  0x1a   :  { %593 = vmatmul.msk.f32.gmra.mxu0 %vm56_vm1, %v42_v12  ;;  %607 = vmatmul.msk.f32.gmra.mxu1 %vm56_vm1, %v171_v13 }
  0x20   :  { %622 = vmatmul.msk.f32.gmra.mxu2 %vm56_vm1, %v306_v14  ;;  %636 = vmatmul.msk.f32.gmra.mxu3 %vm56_vm1, %v427_v15 }
  0x22   :  { %594 = vmatmul.msk.f32.gmra.mxu0 %vm56_vm1, %v43_v16  ;;  %608 = vmatmul.msk.f32.gmra.mxu1 %vm56_vm1, %v172_v17 }
  0x28   :  { %623 = vmatmul.msk.f32.gmra.mxu2 %vm56_vm1, %v307_v18  ;;  %637 = vmatmul.msk.f32.gmra.mxu3 %vm56_vm1, %v428_v19 }
  0x2a   :  { %595 = vmatmul.msk.f32.gmra.mxu0 %vm56_vm1, %v44_v20  ;;  %609 = vmatmul.msk.f32.gmra.mxu1 %vm56_vm1, %v173_v21 }
  0x30   :  { %624 = vmatmul.msk.f32.gmra.mxu2 %vm56_vm1, %v308_v22  ;;  %638 = vmatmul.msk.f32.gmra.mxu3 %vm56_vm1, %v429_v23 }
  0x32   :  { %596 = vmatmul.msk.f32.gmra.mxu0 %vm56_vm1, %v45_v24  ;;  %610 = vmatmul.msk.f32.gmra.mxu1 %vm56_vm1, %v174_v25 }
  0x38   :  { %625 = vmatmul.msk.f32.gmra.mxu2 %vm56_vm1, %v309_v26  ;;  %639 = vmatmul.msk.f32.gmra.mxu3 %vm56_vm1, %v430_v27 }
  0x3a   :  { %597 = vmatmul.msk.f32.gmra.mxu0 %vm56_vm1, %v46_v28  ;;  %611 = vmatmul.msk.f32.gmra.mxu1 %vm56_vm1, %v175_v29 }
  0x40   :  { %626 = vmatmul.msk.f32.gmra.mxu2 %vm56_vm1, %v310_v30  ;;  %640 = vmatmul.msk.f32.gmra.mxu3 %vm56_vm1, %v431_v31 }
  0x42   :  { %598 = vmatmul.msk.f32.gmra.mxu0 %vm56_vm1, %v47_v32  ;;  %612 = vmatmul.msk.f32.gmra.mxu1 %vm56_vm1, %v176_v33 }
  0x48   :  { %627 = vmatmul.msk.f32.gmra.mxu2 %vm56_vm1, %v311_v34  ;;  %641 = vmatmul.msk.f32.gmra.mxu3 %vm56_vm1, %v432_v35 }
  0x4a   :  { %599 = vmatmul.msk.f32.gmra.mxu0 %vm56_vm1, %v48_v36  ;;  %613 = vmatmul.msk.f32.gmra.mxu1 %vm56_vm1, %v177_v37 }
  0x50   :  { %628 = vmatmul.msk.f32.gmra.mxu2 %vm56_vm1, %v312_v38  ;;  %642 = vmatmul.msk.f32.gmra.mxu3 %vm56_vm1, %v433_v39 }
  0x52   :  { %600 = vmatmul.msk.f32.gmra.mxu0 %vm56_vm1, %v49_v40  ;;  %614 = vmatmul.msk.f32.gmra.mxu1 %vm56_vm1, %v178_v41 }
  0x58   :  { %629 = vmatmul.msk.f32.gmra.mxu2 %vm56_vm1, %v313_v42  ;;  %643 = vmatmul.msk.f32.gmra.mxu3 %vm56_vm1, %v434_v43 }
  0x5a   :  { %601 = vmatmul.msk.f32.gmra.mxu0 %vm56_vm1, %v50_v44  ;;  %615 = vmatmul.msk.f32.gmra.mxu1 %vm56_vm1, %v179_v45 }
  0x60   :  { %630 = vmatmul.msk.f32.gmra.mxu2 %vm56_vm1, %v314_v46  ;;  %644 = vmatmul.msk.f32.gmra.mxu3 %vm56_vm1, %v435_v47 }
  0x62   :  { %602 = vmatmul.msk.f32.gmra.mxu0 %vm56_vm1, %v51_v48  ;;  %616 = vmatmul.msk.f32.gmra.mxu1 %vm56_vm1, %v180_v49 }
  0x68   :  { %631 = vmatmul.msk.f32.gmra.mxu2 %vm56_vm1, %v315_v50  ;;  %645 = vmatmul.msk.f32.gmra.mxu3 %vm56_vm1, %v436_v51 }
  0x6a   :  { %603 = vmatmul.msk.f32.gmra.mxu0 %vm56_vm1, %v52_v52  ;;  %617 = vmatmul.msk.f32.gmra.mxu1 %vm56_vm1, %v181_v53 }
  0x87   :  { %v117_v55 = vpop.f32.mrf.mxu0  ;;  %v238_v56 = vpop.f32.mrf.mxu1 }
  0x88   :  { %v118_v57 = vadd.f32 %v927_v54, %v117_v55  ;;  %v239_v58 = vadd.f32 %v927_v54, %v238_v56 }
  0x8a   :  { %v156_v59 = vmax.f32 %v118_v57, 0.0  ;;  %v277_v60 = vmax.f32 %v239_v58, 0.0 }
  0x8b   :  { %v372_v61 = vpop.f32.mrf.mxu2  ;;  %v493_v62 = vpop.f32.mrf.mxu3 }
  0x8c   :  { %v373_v63 = vadd.f32 %v927_v54, %v372_v61  ;;  %v494_v0 = vadd.f32 %v927_v54, %v493_v62  ;;  %v290_v1 = vmax.f32 %v156_v59, %v277_v60 }
  0x8e   :  { %v411_v2 = vmax.f32 %v373_v63, 0.0  ;;  %v532_v3 = vmax.f32 %v494_v0, 0.0 }
  0x8f   :  { %v120_v4 = vpop.f32.mrf.mxu0  ;;  %v241_v5 = vpop.f32.mrf.mxu1 }
  0x90   :  { %v545_v6 = vmax.f32 %v411_v2, %v532_v3  ;;  %v121_v7 = vadd.f32 %v927_v54, %v120_v4  ;;  %v242_v8 = vadd.f32 %v927_v54, %v241_v5 }
  0x92   :  { %v558_v9 = vmax.f32 %v290_v1, %v545_v6  ;;  %v157_v10 = vmax.f32 %v121_v7, 0.0  ;;  %v278_v11 = vmax.f32 %v242_v8, 0.0 }
  0x93   :  { %v375_v12 = vpop.f32.mrf.mxu2  ;;  %v496_v13 = vpop.f32.mrf.mxu3 }
  0x94   :  { %572 = vst.msk [vmem:[%s1039_s6] sm:$0xff] %vm571_vm2, %v558_v9  ;;  %v376_v14 = vadd.f32 %v927_v54, %v375_v12  ;;  %v497_v15 = vadd.f32 %v927_v54, %v496_v13  ;;  %v291_v16 = vmax.f32 %v157_v10, %v278_v11 }
  0x96   :  { %v412_v17 = vmax.f32 %v376_v14, 0.0  ;;  %v533_v18 = vmax.f32 %v497_v15, 0.0 }
  0x97   :  { %v123_v19 = vpop.f32.mrf.mxu0  ;;  %v244_v20 = vpop.f32.mrf.mxu1 }
  0x98   :  { %v546_v21 = vmax.f32 %v412_v17, %v533_v18  ;;  %v124_v22 = vadd.f32 %v927_v54, %v123_v19  ;;  %v245_v23 = vadd.f32 %v927_v54, %v244_v20 }
  0x9a   :  { %v559_v24 = vmax.f32 %v291_v16, %v546_v21  ;;  %v158_v25 = vmax.f32 %v124_v22, 0.0  ;;  %v279_v26 = vmax.f32 %v245_v23, 0.0 }
  0x9b   :  { %v378_v27 = vpop.f32.mrf.mxu2  ;;  %v499_v28 = vpop.f32.mrf.mxu3 }
  0x9c   :  { %573 = vst.msk [vmem:[%s1039_s6 + $0x8] sm:$0xff] %vm571_vm2, %v559_v24  ;;  %v379_v29 = vadd.f32 %v927_v54, %v378_v27  ;;  %v500_v30 = vadd.f32 %v927_v54, %v499_v28  ;;  %v292_v31 = vmax.f32 %v158_v25, %v279_v26 }
  0x9e   :  { %v413_v32 = vmax.f32 %v379_v29, 0.0  ;;  %v534_v33 = vmax.f32 %v500_v30, 0.0 }
  0x9f   :  { %v126_v34 = vpop.f32.mrf.mxu0  ;;  %v247_v35 = vpop.f32.mrf.mxu1 }
  0xa0   :  { %v547_v36 = vmax.f32 %v413_v32, %v534_v33  ;;  %v127_v37 = vadd.f32 %v927_v54, %v126_v34  ;;  %v248_v38 = vadd.f32 %v927_v54, %v247_v35 }
  0xa2   :  { %v560_v39 = vmax.f32 %v292_v31, %v547_v36  ;;  %v159_v40 = vmax.f32 %v127_v37, 0.0  ;;  %v280_v41 = vmax.f32 %v248_v38, 0.0 }
  0xa3   :  { %v381_v42 = vpop.f32.mrf.mxu2  ;;  %v502_v43 = vpop.f32.mrf.mxu3 }
  0xa4   :  { %574 = vst.msk [vmem:[%s1039_s6 + $0x10] sm:$0xff] %vm571_vm2, %v560_v39  ;;  %v382_v44 = vadd.f32 %v927_v54, %v381_v42  ;;  %v503_v45 = vadd.f32 %v927_v54, %v502_v43  ;;  %v293_v46 = vmax.f32 %v159_v40, %v280_v41 }
  0xa6   :  { %v414_v47 = vmax.f32 %v382_v44, 0.0  ;;  %v535_v48 = vmax.f32 %v503_v45, 0.0 }
  0xa7   :  { %v129_v49 = vpop.f32.mrf.mxu0  ;;  %v250_v50 = vpop.f32.mrf.mxu1 }
  0xa8   :  { %v548_v51 = vmax.f32 %v414_v47, %v535_v48  ;;  %v130_v52 = vadd.f32 %v927_v54, %v129_v49  ;;  %v251_v53 = vadd.f32 %v927_v54, %v250_v50 }
  0xaa   :  { %v561_v55 = vmax.f32 %v293_v46, %v548_v51  ;;  %v160_v56 = vmax.f32 %v130_v52, 0.0  ;;  %v281_v57 = vmax.f32 %v251_v53, 0.0 }
  0xab   :  { %v384_v58 = vpop.f32.mrf.mxu2  ;;  %v505_v59 = vpop.f32.mrf.mxu3 }
  0xac   :  { %575 = vst.msk [vmem:[%s1039_s6 + $0x18] sm:$0xff] %vm571_vm2, %v561_v55  ;;  %v385_v60 = vadd.f32 %v927_v54, %v384_v58  ;;  %v506_v61 = vadd.f32 %v927_v54, %v505_v59  ;;  %v294_v62 = vmax.f32 %v160_v56, %v281_v57 }
  0xae   :  { %v415_v63 = vmax.f32 %v385_v60, 0.0  ;;  %v536_v0 = vmax.f32 %v506_v61, 0.0 }
  0xaf   :  { %v132_v1 = vpop.f32.mrf.mxu0  ;;  %v253_v2 = vpop.f32.mrf.mxu1 }
  0xb0   :  { %v549_v3 = vmax.f32 %v415_v63, %v536_v0  ;;  %v133_v4 = vadd.f32 %v927_v54, %v132_v1  ;;  %v254_v5 = vadd.f32 %v927_v54, %v253_v2 }
  0xb2   :  { %v562_v6 = vmax.f32 %v294_v62, %v549_v3  ;;  %v161_v7 = vmax.f32 %v133_v4, 0.0  ;;  %v282_v8 = vmax.f32 %v254_v5, 0.0 }
  0xb3   :  { %v387_v9 = vpop.f32.mrf.mxu2  ;;  %v508_v10 = vpop.f32.mrf.mxu3 }
  0xb4   :  { %576 = vst.msk [vmem:[%s1039_s6 + $0x20] sm:$0xff] %vm571_vm2, %v562_v6  ;;  %v388_v11 = vadd.f32 %v927_v54, %v387_v9  ;;  %v509_v12 = vadd.f32 %v927_v54, %v508_v10  ;;  %v295_v13 = vmax.f32 %v161_v7, %v282_v8 }
  0xb6   :  { %v416_v14 = vmax.f32 %v388_v11, 0.0  ;;  %v537_v15 = vmax.f32 %v509_v12, 0.0 }
  0xb7   :  { %v135_v16 = vpop.f32.mrf.mxu0  ;;  %v256_v17 = vpop.f32.mrf.mxu1 }
  0xb8   :  { %v550_v18 = vmax.f32 %v416_v14, %v537_v15  ;;  %v136_v19 = vadd.f32 %v927_v54, %v135_v16  ;;  %v257_v20 = vadd.f32 %v927_v54, %v256_v17 }
  0xba   :  { %v563_v21 = vmax.f32 %v295_v13, %v550_v18  ;;  %v162_v22 = vmax.f32 %v136_v19, 0.0  ;;  %v283_v23 = vmax.f32 %v257_v20, 0.0 }
  0xbb   :  { %v390_v24 = vpop.f32.mrf.mxu2  ;;  %v511_v25 = vpop.f32.mrf.mxu3 }
  0xbc   :  { %577 = vst.msk [vmem:[%s1039_s6 + $0x28] sm:$0xff] %vm571_vm2, %v563_v21  ;;  %v391_v26 = vadd.f32 %v927_v54, %v390_v24  ;;  %v512_v27 = vadd.f32 %v927_v54, %v511_v25  ;;  %v296_v28 = vmax.f32 %v162_v22, %v283_v23 }
  0xbe   :  { %v417_v29 = vmax.f32 %v391_v26, 0.0  ;;  %v538_v30 = vmax.f32 %v512_v27, 0.0 }
  0xbf   :  { %v138_v31 = vpop.f32.mrf.mxu0  ;;  %v259_v32 = vpop.f32.mrf.mxu1 }
  0xc0   :  { %v551_v33 = vmax.f32 %v417_v29, %v538_v30  ;;  %v139_v34 = vadd.f32 %v927_v54, %v138_v31  ;;  %v260_v35 = vadd.f32 %v927_v54, %v259_v32 }
  0xc2   :  { %v564_v36 = vmax.f32 %v296_v28, %v551_v33  ;;  %v163_v37 = vmax.f32 %v139_v34, 0.0  ;;  %v284_v38 = vmax.f32 %v260_v35, 0.0 }
  0xc3   :  { %v393_v39 = vpop.f32.mrf.mxu2  ;;  %v514_v40 = vpop.f32.mrf.mxu3 }
  0xc4   :  { %578 = vst.msk [vmem:[%s1039_s6 + $0x30] sm:$0xff] %vm571_vm2, %v564_v36  ;;  %v394_v41 = vadd.f32 %v927_v54, %v393_v39  ;;  %v515_v42 = vadd.f32 %v927_v54, %v514_v40  ;;  %v297_v43 = vmax.f32 %v163_v37, %v284_v38 }
  0xc6   :  { %v418_v44 = vmax.f32 %v394_v41, 0.0  ;;  %v539_v45 = vmax.f32 %v515_v42, 0.0 }
  0xc7   :  { %v141_v46 = vpop.f32.mrf.mxu0  ;;  %v262_v47 = vpop.f32.mrf.mxu1 }
  0xc8   :  { %v552_v48 = vmax.f32 %v418_v44, %v539_v45  ;;  %v142_v49 = vadd.f32 %v927_v54, %v141_v46  ;;  %v263_v50 = vadd.f32 %v927_v54, %v262_v47 }
  0xca   :  { %v565_v51 = vmax.f32 %v297_v43, %v552_v48  ;;  %v164_v52 = vmax.f32 %v142_v49, 0.0  ;;  %v285_v53 = vmax.f32 %v263_v50, 0.0 }
  0xcb   :  { %v396_v55 = vpop.f32.mrf.mxu2  ;;  %v517_v56 = vpop.f32.mrf.mxu3 }
  0xcc   :  { %579 = vst.msk [vmem:[%s1039_s6 + $0x38] sm:$0xff] %vm571_vm2, %v565_v51  ;;  %v397_v57 = vadd.f32 %v927_v54, %v396_v55  ;;  %v518_v58 = vadd.f32 %v927_v54, %v517_v56  ;;  %v298_v59 = vmax.f32 %v164_v52, %v285_v53 }
  0xce   :  { %v419_v60 = vmax.f32 %v397_v57, 0.0  ;;  %v540_v61 = vmax.f32 %v518_v58, 0.0 }
  0xcf   :  { %v144_v62 = vpop.f32.mrf.mxu0  ;;  %v265_v63 = vpop.f32.mrf.mxu1 }
  0xd0   :  { %v553_v0 = vmax.f32 %v419_v60, %v540_v61  ;;  %v145_v1 = vadd.f32 %v927_v54, %v144_v62  ;;  %v266_v2 = vadd.f32 %v927_v54, %v265_v63 }
  0xd2   :  { %v566_v3 = vmax.f32 %v298_v59, %v553_v0  ;;  %v165_v4 = vmax.f32 %v145_v1, 0.0  ;;  %v286_v5 = vmax.f32 %v266_v2, 0.0 }
  0xd3   :  { %v399_v6 = vpop.f32.mrf.mxu2  ;;  %v520_v7 = vpop.f32.mrf.mxu3 }
  0xd4   :  { %580 = vst.msk [vmem:[%s1039_s6 + $0x40] sm:$0xff] %vm571_vm2, %v566_v3  ;;  %v400_v8 = vadd.f32 %v927_v54, %v399_v6  ;;  %v521_v9 = vadd.f32 %v927_v54, %v520_v7  ;;  %v299_v10 = vmax.f32 %v165_v4, %v286_v5 }
  0xd6   :  { %v420_v11 = vmax.f32 %v400_v8, 0.0  ;;  %v541_v12 = vmax.f32 %v521_v9, 0.0 }
  0xd7   :  { %v147_v13 = vpop.f32.mrf.mxu0  ;;  %v268_v14 = vpop.f32.mrf.mxu1 }
  0xd8   :  { %v554_v15 = vmax.f32 %v420_v11, %v541_v12  ;;  %v148_v16 = vadd.f32 %v927_v54, %v147_v13  ;;  %v269_v17 = vadd.f32 %v927_v54, %v268_v14 }
  0xda   :  { %v567_v18 = vmax.f32 %v299_v10, %v554_v15  ;;  %v166_v19 = vmax.f32 %v148_v16, 0.0  ;;  %v287_v20 = vmax.f32 %v269_v17, 0.0 }
  0xdb   :  { %v402_v21 = vpop.f32.mrf.mxu2  ;;  %v523_v22 = vpop.f32.mrf.mxu3 }
  0xdc   :  { %581 = vst.msk [vmem:[%s1039_s6 + $0x48] sm:$0xff] %vm571_vm2, %v567_v18  ;;  %v403_v23 = vadd.f32 %v927_v54, %v402_v21  ;;  %v524_v24 = vadd.f32 %v927_v54, %v523_v22  ;;  %v300_v25 = vmax.f32 %v166_v19, %v287_v20 }
  0xde   :  { %v421_v26 = vmax.f32 %v403_v23, 0.0  ;;  %v542_v27 = vmax.f32 %v524_v24, 0.0 }
  0xdf   :  { %v150_v28 = vpop.f32.mrf.mxu0  ;;  %v271_v29 = vpop.f32.mrf.mxu1 }
  0xe0   :  { %v555_v30 = vmax.f32 %v421_v26, %v542_v27  ;;  %v151_v31 = vadd.f32 %v927_v54, %v150_v28  ;;  %v272_v32 = vadd.f32 %v927_v54, %v271_v29 }
  0xe2   :  { %v568_v33 = vmax.f32 %v300_v25, %v555_v30  ;;  %v167_v34 = vmax.f32 %v151_v31, 0.0  ;;  %v288_v35 = vmax.f32 %v272_v32, 0.0 }
  0xe3   :  { %v405_v36 = vpop.f32.mrf.mxu2  ;;  %v526_v37 = vpop.f32.mrf.mxu3 }
  0xe4   :  { %582 = vst.msk [vmem:[%s1039_s6 + $0x50] sm:$0xff] %vm571_vm2, %v568_v33  ;;  %v406_v38 = vadd.f32 %v927_v54, %v405_v36  ;;  %v527_v39 = vadd.f32 %v927_v54, %v526_v37  ;;  %v301_v40 = vmax.f32 %v167_v34, %v288_v35 }
  0xe6   :  { %v422_v41 = vmax.f32 %v406_v38, 0.0  ;;  %v543_v42 = vmax.f32 %v527_v39, 0.0 }
  0xe7   :  { %v153_v43 = vpop.f32.mrf.mxu0  ;;  %v274_v44 = vpop.f32.mrf.mxu1 }
  0xe8   :  { %v556_v45 = vmax.f32 %v422_v41, %v543_v42  ;;  %v154_v46 = vadd.f32 %v927_v54, %v153_v43  ;;  %v275_v47 = vadd.f32 %v927_v54, %v274_v44 }
  0xea   :  { %v569_v48 = vmax.f32 %v301_v40, %v556_v45  ;;  %v168_v49 = vmax.f32 %v154_v46, 0.0  ;;  %v289_v50 = vmax.f32 %v275_v47, 0.0 }
  0xeb   :  { %v408_v51 = vpop.f32.mrf.mxu2  ;;  %v529_v52 = vpop.f32.mrf.mxu3 }
  0xec   :  { %583 = vst.msk [vmem:[%s1039_s6 + $0x58] sm:$0xff] %vm571_vm2, %v569_v48  ;;  %v409_v53 = vadd.f32 %v927_v54, %v408_v51  ;;  %v530_v55 = vadd.f32 %v927_v54, %v529_v52  ;;  %v302_v56 = vmax.f32 %v168_v49, %v289_v50 }
  0xee   :  { %v423_v57 = vmax.f32 %v409_v53, 0.0  ;;  %v544_v58 = vmax.f32 %v530_v55, 0.0 }
  0xf0   :  { %v557_v59 = vmax.f32 %v423_v57, %v544_v58 }
  0xf2   :  { %v570_v60 = vmax.f32 %v302_v56, %v557_v59 }
  0xf4   :  { %584 = vst.msk [vmem:[%s1039_s6 + $0x60] sm:$0xff] %vm571_vm2, %v570_v60 }
  0xf5   :  { %589 = vsyncpa [#allocation3], 1 }

// kernel: embedding_network_forward.6
= control target key start
LH: loop header
LB: loop body
LE: loop exit
PB: predicated region body
PF: predicated region fallthrough
CT: control target
= control target key end

     0   :  { %vm86_vm0 = vcmask 523264   ;;  %s267_s1 = inlined_call_operand.vmem [shape: f32[128,64], index: 1, kind: input, shape index: {}]   ;;  %s268_s2 = inlined_call_operand.vmem [shape: f32[1,64], index: 2, kind: input, shape index: {}]   ;;  %s269_s0 = inlined_call_operand.vmem [shape: f32[56,128], index: 0, kind: input, shape index: {}]   ;;  %s270_s3 = inlined_call_operand.vmem [shape: f32[56,64], index: 3, kind: output, shape index: {}]  }
   0x1   :  { %v36_v0 = vld [vmem:[%s267_s1 + $0x78] sm:$0xff]  ;;  %v35_v1 = vld [vmem:[%s267_s1 + $0x70] sm:$0xff]  ;;  %v34_v2 = vld [vmem:[%s267_s1 + $0x68] sm:$0xff] }
   0x2   :  { %99 = vmatpush.msra.mxu2 %v36_v0  ;;  %100 = vmatpush.msra.mxu3 %v36_v0  ;;  %v33_v3 = vld [vmem:[%s267_s1 + $0x60] sm:$0xff]  ;;  %v32_v4 = vld [vmem:[%s267_s1 + $0x58] sm:$0xff]  ;;  %v31_v5 = vld [vmem:[%s267_s1 + $0x50] sm:$0xff] }
   0x3   :  { %41 = vmatpush.msra.mxu0 %v36_v0  ;;  %98 = vmatpush.msra.mxu1 %v36_v0  ;;  %v30_v6 = vld [vmem:[%s267_s1 + $0x48] sm:$0xff]  ;;  %v29_v7 = vld [vmem:[%s267_s1 + $0x40] sm:$0xff]  ;;  %v28_v8 = vld [vmem:[%s267_s1 + $0x38] sm:$0xff] }
   0x4   :  { %102 = vmatpush.msra.mxu2 %v35_v1  ;;  %103 = vmatpush.msra.mxu3 %v35_v1  ;;  %v27_v9 = vld [vmem:[%s267_s1 + $0x30] sm:$0xff]  ;;  %v26_v10 = vld [vmem:[%s267_s1 + $0x28] sm:$0xff]  ;;  %v25_v11 = vld [vmem:[%s267_s1 + $0x20] sm:$0xff] }
   0x5   :  { %42 = vmatpush.msra.mxu0 %v35_v1  ;;  %101 = vmatpush.msra.mxu1 %v35_v1  ;;  %v24_v12 = vld [vmem:[%s267_s1 + $0x18] sm:$0xff]  ;;  %v23_v13 = vld [vmem:[%s267_s1 + $0x10] sm:$0xff]  ;;  %v22_v14 = vld [vmem:[%s267_s1 + $0x8] sm:$0xff] }
   0x6   :  { %105 = vmatpush.msra.mxu2 %v34_v2  ;;  %106 = vmatpush.msra.mxu3 %v34_v2  ;;  %v21_v15 = vld [vmem:[%s267_s1] sm:$0xff]  ;;  %v17_v16 = vld [vmem:[%s269_s0 + $0x18] sm:$0xff]  ;;  %v19_v17 = vld [vmem:[%s269_s0 + $0x28] sm:$0xff] }
   0x7   :  { %43 = vmatpush.msra.mxu0 %v34_v2  ;;  %104 = vmatpush.msra.mxu1 %v34_v2  ;;  %v14_v18 = vld [vmem:[%s269_s0] sm:$0xff]  ;;  %v16_v19 = vld [vmem:[%s269_s0 + $0x10] sm:$0xff]  ;;  %v15_v22 = vld [vmem:[%s269_s0 + $0x8] sm:$0xff] }
   0x8   :  { %108 = vmatpush.msra.mxu2 %v33_v3  ;;  %109 = vmatpush.msra.mxu3 %v33_v3  ;;  %v18_v20 = vld [vmem:[%s269_s0 + $0x20] sm:$0xff]  ;;  %v20_v21 = vld [vmem:[%s269_s0 + $0x30] sm:$0xff] }
   0x9   :  { %44 = vmatpush.msra.mxu0 %v33_v3  ;;  %107 = vmatpush.msra.mxu1 %v33_v3  ;;  %v146_v23 = vld [vmem:[%s268_s2] ss:$0 sm:$0xff] }
   0xa   :  { %111 = vmatpush.msra.mxu2 %v32_v4  ;;  %112 = vmatpush.msra.mxu3 %v32_v4 }
   0xb   :  { %45 = vmatpush.msra.mxu0 %v32_v4  ;;  %110 = vmatpush.msra.mxu1 %v32_v4 }
   0xc   :  { %114 = vmatpush.msra.mxu2 %v31_v5  ;;  %115 = vmatpush.msra.mxu3 %v31_v5 }
   0xd   :  { %46 = vmatpush.msra.mxu0 %v31_v5  ;;  %113 = vmatpush.msra.mxu1 %v31_v5 }
   0xe   :  { %117 = vmatpush.msra.mxu2 %v30_v6  ;;  %118 = vmatpush.msra.mxu3 %v30_v6 }
   0xf   :  { %47 = vmatpush.msra.mxu0 %v30_v6  ;;  %116 = vmatpush.msra.mxu1 %v30_v6 }
  0x10   :  { %120 = vmatpush.msra.mxu2 %v29_v7  ;;  %121 = vmatpush.msra.mxu3 %v29_v7 }
  0x11   :  { %48 = vmatpush.msra.mxu0 %v29_v7  ;;  %119 = vmatpush.msra.mxu1 %v29_v7 }
  0x12   :  { %123 = vmatpush.msra.mxu2 %v28_v8  ;;  %124 = vmatpush.msra.mxu3 %v28_v8 }
  0x13   :  { %49 = vmatpush.msra.mxu0 %v28_v8  ;;  %122 = vmatpush.msra.mxu1 %v28_v8 }
  0x14   :  { %126 = vmatpush.msra.mxu2 %v27_v9  ;;  %127 = vmatpush.msra.mxu3 %v27_v9 }
  0x15   :  { %50 = vmatpush.msra.mxu0 %v27_v9  ;;  %125 = vmatpush.msra.mxu1 %v27_v9 }
  0x16   :  { %129 = vmatpush.msra.mxu2 %v26_v10  ;;  %130 = vmatpush.msra.mxu3 %v26_v10 }
  0x17   :  { %51 = vmatpush.msra.mxu0 %v26_v10  ;;  %128 = vmatpush.msra.mxu1 %v26_v10 }
  0x18   :  { %132 = vmatpush.msra.mxu2 %v25_v11  ;;  %133 = vmatpush.msra.mxu3 %v25_v11 }
  0x19   :  { %52 = vmatpush.msra.mxu0 %v25_v11  ;;  %131 = vmatpush.msra.mxu1 %v25_v11 }
  0x1a   :  { %135 = vmatpush.msra.mxu2 %v24_v12  ;;  %136 = vmatpush.msra.mxu3 %v24_v12 }
  0x1b   :  { %53 = vmatpush.msra.mxu0 %v24_v12  ;;  %134 = vmatpush.msra.mxu1 %v24_v12 }
  0x1c   :  { %138 = vmatpush.msra.mxu2 %v23_v13  ;;  %139 = vmatpush.msra.mxu3 %v23_v13 }
  0x1d   :  { %54 = vmatpush.msra.mxu0 %v23_v13  ;;  %137 = vmatpush.msra.mxu1 %v23_v13 }
  0x1e   :  { %141 = vmatpush.msra.mxu2 %v22_v14  ;;  %142 = vmatpush.msra.mxu3 %v22_v14 }
  0x1f   :  { %55 = vmatpush.msra.mxu0 %v22_v14  ;;  %140 = vmatpush.msra.mxu1 %v22_v14 }
  0x20   :  { %144 = vmatpush.msra.mxu2 %v21_v15  ;;  %145 = vmatpush.msra.mxu3 %v21_v15 }
  0x21   :  { %66 = vmatmul.f32.vlgmr.msra.gmra.mxu2 %v17_v16  ;;  %72 = vmatmul.f32.vlgmr.msra.gmra.mxu3 %v19_v17 }
  0x22   :  { %56 = vmatpush.msra.mxu0 %v21_v15  ;;  %143 = vmatpush.msra.mxu1 %v21_v15 }
  0x23   :  { %57 = vmatmul.f32.vlgmr.msra.gmra.mxu0 %v14_v18  ;;  %63 = vmatmul.f32.vlgmr.msra.gmra.mxu1 %v16_v19 }
  0x29   :  { %69 = vmatmul.f32.gmra.mxu2 %v18_v20  ;;  %75 = vmatmul.f32.gmra.mxu3 %v20_v21 }
  0x2b   :  { %60 = vmatmul.f32.gmra.mxu0 %v15_v22 }
  0xa0   :  { %v58_v24 = vpop.f32.mrf.mxu0  ;;  %v64_v25 = vpop.f32.mrf.mxu1 }
  0xa1   :  { %v59_v26 = vadd.f32 %v146_v23, %v58_v24  ;;  %v65_v27 = vadd.f32 %v146_v23, %v64_v25 }
  0xa3   :  { %v79_v28 = vmax.f32 %v59_v26, 0.0  ;;  %v81_v29 = vmax.f32 %v65_v27, 0.0 }
  0xa4   :  { %v67_v30 = vpop.f32.mrf.mxu2  ;;  %v73_v31 = vpop.f32.mrf.mxu3 }
  0xa5   :  { %87 = vst.msk [vmem:[%s270_s3] sm:$0xff] %vm86_vm0, %v79_v28  ;;  %v68_v32 = vadd.f32 %v146_v23, %v67_v30  ;;  %v74_v33 = vadd.f32 %v146_v23, %v73_v31 }
  0xa6   :  { %89 = vst.msk [vmem:[%s270_s3 + $0x10] sm:$0xff] %vm86_vm0, %v81_v29 }
  0xa7   :  { %v82_v34 = vmax.f32 %v68_v32, 0.0  ;;  %v84_v35 = vmax.f32 %v74_v33, 0.0 }
  0xa8   :  { %v61_v36 = vpop.f32.mrf.mxu0 }
  0xa9   :  { %90 = vst.msk [vmem:[%s270_s3 + $0x18] sm:$0xff] %vm86_vm0, %v82_v34  ;;  %v62_v37 = vadd.f32 %v146_v23, %v61_v36 }
  0xaa   :  { %92 = vst.msk [vmem:[%s270_s3 + $0x28] sm:$0xff] %vm86_vm0, %v84_v35 }
  0xab   :  { %v80_v38 = vmax.f32 %v62_v37, 0.0 }
  0xac   :  { %v70_v39 = vpop.f32.mrf.mxu2  ;;  %v76_v40 = vpop.f32.mrf.mxu3 }
  0xad   :  { %88 = vst.msk [vmem:[%s270_s3 + $0x8] sm:$0xff] %vm86_vm0, %v80_v38  ;;  %v71_v41 = vadd.f32 %v146_v23, %v70_v39  ;;  %v77_v42 = vadd.f32 %v146_v23, %v76_v40 }
  0xaf   :  { %v83_v43 = vmax.f32 %v71_v41, 0.0  ;;  %v85_v44 = vmax.f32 %v77_v42, 0.0 }
  0xb1   :  { %91 = vst.msk [vmem:[%s270_s3 + $0x20] sm:$0xff] %vm86_vm0, %v83_v43 }
  0xb2   :  { %93 = vst.msk [vmem:[%s270_s3 + $0x30] sm:$0xff] %vm86_vm0, %v85_v44 }

// kernel: embedding_network_forward.7
= control target key start
LH: loop header
LB: loop body
LE: loop exit
PB: predicated region body
PF: predicated region fallthrough
CT: control target
= control target key end

     0   :  { %s5894_s12 = smov 0   ;;  %s5896_s13 = smov 0   ;;  %s7120_s0 = inlined_call_operand.vmem [shape: bf16[8,2048], index: 0, kind: input, shape index: {}]   ;;  %s7121_s1 = inlined_call_operand.vmem [shape: bf16[2048,512], index: 1, kind: input, shape index: {}]   ;;  %s7122_s2 = inlined_call_operand.vmem [shape: f32[1,512], index: 2, kind: input, shape index: {}]   ;;  %s7123_s3 = inlined_call_operand.vmem [shape: f32[8,512], index: 3, kind: output, shape index: {}]  }
   0x1   :  { %s5898_s14 = smov 0   ;;  %s5900_s15 = smov 0  }
   0x2   :  { %s5902_s16 = smov 0  }
   0x3 LB: > { %s25_s17 = sadd.s32 1, %s5868_s15  ;;  %p67_p1 = scmp.ne.s32.totalorder %s5860_s13, %s5856_s12  ;;  %s5872_s16 = sphi %s5902_s16, %s13_s16   ;;  %s5868_s15 = sphi %s5900_s15, %s7127_s15   ;;  %s5864_s14 = sphi %s5898_s14, %s7126_s14   ;;  %s5860_s13 = sphi %s5896_s13, %s7125_s13   ;;  %s5856_s12 = sphi %s5894_s12, %s7124_s12  }
   0x4   : > { %p27_p0 = scmp.ge.s32.totalorder %s25_s17, 2  ;;  %p68_p2 = scmp.eq.s32.totalorder %s5872_s16, 0 }
   0x5   : > { %s60_s19 = sadd.s32 1, %s5860_s13  ;;  %p4502_p5 = scmp.ge.s32.totalorder %s5872_s16, 2 }
   0x6   : > { %s7129_s17 = smov (%p27_p0, %s25_s17), 0  ;;  %p69_p3 = por %p68_p2, %p67_p1 }
   0x7   : > { %s56_s18 = ssub.s32 %s5868_s15, %s7129_s17  ;;  %154 = sbr.rel (%p4502_p5) target bundleno = 272 (0x110), region = 20 }
   0x8   : > { %p58_p4 = scmp.eq.s32.totalorder %s56_s18, 0 }
   0xa   : > { %s5929_s20 = scalar_select %p58_p4, %s5860_s13, %s60_s19  }
   0xc   : > { %157 = sbr.rel (!%p69_p3) target bundleno = 272 (0x110), region = 24  ;;  %s159_s21 = sand.u32 (%p69_p3), 1, %s5860_s13  }
   0xd   : > { %s5537_s22 = sshll.u32 (%p69_p3), %s5868_s15, 3  ;;  %s4503_s23 = sshll.u32 (%p69_p3), %s159_s21, 11 }
   0xe   : > { %s5937_s26 = scalar_lea.vmem (%p69_p3), %s7121_s1, %s5537_s22  ;;  %s5942_s27 = scalar_lea.vmem (%p69_p3), [#allocation3], %s4503_s23 }
   0xf   : > { %v707_v0 = vld [vmem:[%s5937_s26] sm:$0xff] (%p69_p3)  ;;  %v709_v1 = vld [vmem:[%s5937_s26 + $0x10] sm:$0xff] (%p69_p3) }
  0x10   : > { %v711_v2 = vld [vmem:[%s5937_s26 + $0x20] sm:$0xff] (%p69_p3)  ;;  %708 = vst [vmem:[%s5942_s27] sm:$0xff] (%p69_p3), %v707_v0  ;;  %v713_v3 = vld [vmem:[%s5937_s26 + $0x30] sm:$0xff] (%p69_p3) }
  0x11   : > { %710 = vst [vmem:[%s5942_s27 + $0x8] sm:$0xff] %v709_v1  ;;  %v715_v4 = vld [vmem:[%s5937_s26 + $0x40] sm:$0xff]  ;;  %v717_v5 = vld [vmem:[%s5937_s26 + $0x50] sm:$0xff] }
  0x12   : > { %712 = vst [vmem:[%s5942_s27 + $0x10] sm:$0xff] %v711_v2  ;;  %v719_v6 = vld [vmem:[%s5937_s26 + $0x60] sm:$0xff]  ;;  %v721_v7 = vld [vmem:[%s5937_s26 + $0x70] sm:$0xff] }
  0x13   : > { %714 = vst [vmem:[%s5942_s27 + $0x18] sm:$0xff] %v713_v3  ;;  %v723_v8 = vld [vmem:[%s5937_s26 + $0x80] sm:$0xff]  ;;  %v725_v9 = vld [vmem:[%s5937_s26 + $0x90] sm:$0xff] }
  0x14   : > { %716 = vst [vmem:[%s5942_s27 + $0x20] sm:$0xff] %v715_v4  ;;  %v727_v10 = vld [vmem:[%s5937_s26 + $0xa0] sm:$0xff]  ;;  %v729_v11 = vld [vmem:[%s5937_s26 + $0xb0] sm:$0xff] }
  0x15   : > { %718 = vst [vmem:[%s5942_s27 + $0x28] sm:$0xff] %v717_v5  ;;  %v731_v12 = vld [vmem:[%s5937_s26 + $0xc0] sm:$0xff]  ;;  %v733_v13 = vld [vmem:[%s5937_s26 + $0xd0] sm:$0xff] }
  0x16   : > { %720 = vst [vmem:[%s5942_s27 + $0x30] sm:$0xff] %v719_v6  ;;  %v735_v14 = vld [vmem:[%s5937_s26 + $0xe0] sm:$0xff]  ;;  %v737_v15 = vld [vmem:[%s5937_s26 + $0xf0] sm:$0xff] }
  0x17   : > { %722 = vst [vmem:[%s5942_s27 + $0x38] sm:$0xff] %v721_v7  ;;  %v739_v16 = vld [vmem:[%s5937_s26 + $0x100] sm:$0xff]  ;;  %v741_v17 = vld [vmem:[%s5937_s26 + $0x110] sm:$0xff] }
  0x18   : > { %724 = vst [vmem:[%s5942_s27 + $0x40] sm:$0xff] %v723_v8  ;;  %v743_v18 = vld [vmem:[%s5937_s26 + $0x120] sm:$0xff]  ;;  %v745_v19 = vld [vmem:[%s5937_s26 + $0x130] sm:$0xff] }
  0x19   : > { %726 = vst [vmem:[%s5942_s27 + $0x48] sm:$0xff] %v725_v9  ;;  %v747_v20 = vld [vmem:[%s5937_s26 + $0x140] sm:$0xff]  ;;  %v749_v21 = vld [vmem:[%s5937_s26 + $0x150] sm:$0xff] }
  0x1a   : > { %728 = vst [vmem:[%s5942_s27 + $0x50] sm:$0xff] %v727_v10  ;;  %v751_v22 = vld [vmem:[%s5937_s26 + $0x160] sm:$0xff]  ;;  %v753_v23 = vld [vmem:[%s5937_s26 + $0x170] sm:$0xff] }
  0x1b   : > { %730 = vst [vmem:[%s5942_s27 + $0x58] sm:$0xff] %v729_v11  ;;  %v755_v24 = vld [vmem:[%s5937_s26 + $0x180] sm:$0xff]  ;;  %v757_v25 = vld [vmem:[%s5937_s26 + $0x190] sm:$0xff] }
  0x1c   : > { %732 = vst [vmem:[%s5942_s27 + $0x60] sm:$0xff] %v731_v12  ;;  %v759_v26 = vld [vmem:[%s5937_s26 + $0x1a0] sm:$0xff]  ;;  %v761_v27 = vld [vmem:[%s5937_s26 + $0x1b0] sm:$0xff] }
  0x1d   : > { %734 = vst [vmem:[%s5942_s27 + $0x68] sm:$0xff] %v733_v13  ;;  %v763_v28 = vld [vmem:[%s5937_s26 + $0x1c0] sm:$0xff]  ;;  %v765_v29 = vld [vmem:[%s5937_s26 + $0x1d0] sm:$0xff] }
  0x1e   : > { %736 = vst [vmem:[%s5942_s27 + $0x70] sm:$0xff] %v735_v14  ;;  %v767_v30 = vld [vmem:[%s5937_s26 + $0x1e0] sm:$0xff]  ;;  %v769_v31 = vld [vmem:[%s5937_s26 + $0x1f0] sm:$0xff] }
  0x1f   : > { %738 = vst [vmem:[%s5942_s27 + $0x78] sm:$0xff] %v737_v15  ;;  %v771_v32 = vld [vmem:[%s5937_s26 + $0x200] sm:$0xff]  ;;  %v773_v33 = vld [vmem:[%s5937_s26 + $0x210] sm:$0xff] }
  0x20   : > { %740 = vst [vmem:[%s5942_s27 + $0x80] sm:$0xff] %v739_v16  ;;  %v775_v34 = vld [vmem:[%s5937_s26 + $0x220] sm:$0xff]  ;;  %v777_v35 = vld [vmem:[%s5937_s26 + $0x230] sm:$0xff] }
  0x21   : > { %742 = vst [vmem:[%s5942_s27 + $0x88] sm:$0xff] %v741_v17  ;;  %v779_v36 = vld [vmem:[%s5937_s26 + $0x240] sm:$0xff]  ;;  %v781_v37 = vld [vmem:[%s5937_s26 + $0x250] sm:$0xff] }
  0x22   : > { %744 = vst [vmem:[%s5942_s27 + $0x90] sm:$0xff] %v743_v18  ;;  %v783_v38 = vld [vmem:[%s5937_s26 + $0x260] sm:$0xff]  ;;  %v785_v39 = vld [vmem:[%s5937_s26 + $0x270] sm:$0xff] }
  0x23   : > { %746 = vst [vmem:[%s5942_s27 + $0x98] sm:$0xff] %v745_v19  ;;  %v787_v40 = vld [vmem:[%s5937_s26 + $0x280] sm:$0xff]  ;;  %v789_v41 = vld [vmem:[%s5937_s26 + $0x290] sm:$0xff] }
  0x24   : > { %748 = vst [vmem:[%s5942_s27 + $0xa0] sm:$0xff] %v747_v20  ;;  %v791_v42 = vld [vmem:[%s5937_s26 + $0x2a0] sm:$0xff]  ;;  %v793_v43 = vld [vmem:[%s5937_s26 + $0x2b0] sm:$0xff] }
  0x25   : > { %750 = vst [vmem:[%s5942_s27 + $0xa8] sm:$0xff] %v749_v21  ;;  %v795_v44 = vld [vmem:[%s5937_s26 + $0x2c0] sm:$0xff]  ;;  %v797_v45 = vld [vmem:[%s5937_s26 + $0x2d0] sm:$0xff] }
  0x26   : > { %752 = vst [vmem:[%s5942_s27 + $0xb0] sm:$0xff] %v751_v22  ;;  %v799_v46 = vld [vmem:[%s5937_s26 + $0x2e0] sm:$0xff]  ;;  %v801_v47 = vld [vmem:[%s5937_s26 + $0x2f0] sm:$0xff] }
  0x27   : > { %754 = vst [vmem:[%s5942_s27 + $0xb8] sm:$0xff] %v753_v23  ;;  %v803_v48 = vld [vmem:[%s5937_s26 + $0x300] sm:$0xff]  ;;  %v805_v49 = vld [vmem:[%s5937_s26 + $0x310] sm:$0xff] }
  0x28   : > { %756 = vst [vmem:[%s5942_s27 + $0xc0] sm:$0xff] %v755_v24  ;;  %v807_v50 = vld [vmem:[%s5937_s26 + $0x320] sm:$0xff]  ;;  %v809_v51 = vld [vmem:[%s5937_s26 + $0x330] sm:$0xff] }
  0x29   : > { %758 = vst [vmem:[%s5942_s27 + $0xc8] sm:$0xff] %v757_v25  ;;  %v811_v52 = vld [vmem:[%s5937_s26 + $0x340] sm:$0xff]  ;;  %v813_v53 = vld [vmem:[%s5937_s26 + $0x350] sm:$0xff] }
  0x2a   : > { %760 = vst [vmem:[%s5942_s27 + $0xd0] sm:$0xff] %v759_v26  ;;  %v815_v54 = vld [vmem:[%s5937_s26 + $0x360] sm:$0xff]  ;;  %v817_v55 = vld [vmem:[%s5937_s26 + $0x370] sm:$0xff] }
  0x2b   : > { %762 = vst [vmem:[%s5942_s27 + $0xd8] sm:$0xff] %v761_v27  ;;  %v819_v56 = vld [vmem:[%s5937_s26 + $0x380] sm:$0xff]  ;;  %v821_v57 = vld [vmem:[%s5937_s26 + $0x390] sm:$0xff] }
  0x2c   : > { %764 = vst [vmem:[%s5942_s27 + $0xe0] sm:$0xff] %v763_v28  ;;  %v823_v58 = vld [vmem:[%s5937_s26 + $0x3a0] sm:$0xff]  ;;  %v825_v59 = vld [vmem:[%s5937_s26 + $0x3b0] sm:$0xff] }
  0x2d   : > { %766 = vst [vmem:[%s5942_s27 + $0xe8] sm:$0xff] %v765_v29  ;;  %v827_v60 = vld [vmem:[%s5937_s26 + $0x3c0] sm:$0xff]  ;;  %v829_v61 = vld [vmem:[%s5937_s26 + $0x3d0] sm:$0xff] }
  0x2e   : > { %768 = vst [vmem:[%s5942_s27 + $0xf0] sm:$0xff] %v767_v30  ;;  %v831_v62 = vld [vmem:[%s5937_s26 + $0x3e0] sm:$0xff]  ;;  %v833_v63 = vld [vmem:[%s5937_s26 + $0x3f0] sm:$0xff] }
  0x2f   : > { %770 = vst [vmem:[%s5942_s27 + $0xf8] sm:$0xff] %v769_v31  ;;  %v835_v0 = vld [vmem:[%s5937_s26 + $0x400] sm:$0xff]  ;;  %v837_v1 = vld [vmem:[%s5937_s26 + $0x410] sm:$0xff] }
  0x30   : > { %772 = vst [vmem:[%s5942_s27 + $0x100] sm:$0xff] %v771_v32  ;;  %v839_v2 = vld [vmem:[%s5937_s26 + $0x420] sm:$0xff]  ;;  %v841_v3 = vld [vmem:[%s5937_s26 + $0x430] sm:$0xff] }
  0x31   : > { %774 = vst [vmem:[%s5942_s27 + $0x108] sm:$0xff] %v773_v33  ;;  %v843_v4 = vld [vmem:[%s5937_s26 + $0x440] sm:$0xff]  ;;  %v845_v5 = vld [vmem:[%s5937_s26 + $0x450] sm:$0xff] }
  0x32   : > { %776 = vst [vmem:[%s5942_s27 + $0x110] sm:$0xff] %v775_v34  ;;  %v847_v6 = vld [vmem:[%s5937_s26 + $0x460] sm:$0xff]  ;;  %v849_v7 = vld [vmem:[%s5937_s26 + $0x470] sm:$0xff] }
  0x33   : > { %778 = vst [vmem:[%s5942_s27 + $0x118] sm:$0xff] %v777_v35  ;;  %v851_v8 = vld [vmem:[%s5937_s26 + $0x480] sm:$0xff]  ;;  %v853_v9 = vld [vmem:[%s5937_s26 + $0x490] sm:$0xff] }
  0x34   : > { %780 = vst [vmem:[%s5942_s27 + $0x120] sm:$0xff] %v779_v36  ;;  %v855_v10 = vld [vmem:[%s5937_s26 + $0x4a0] sm:$0xff]  ;;  %v857_v11 = vld [vmem:[%s5937_s26 + $0x4b0] sm:$0xff] }
  0x35   : > { %782 = vst [vmem:[%s5942_s27 + $0x128] sm:$0xff] %v781_v37  ;;  %v859_v12 = vld [vmem:[%s5937_s26 + $0x4c0] sm:$0xff]  ;;  %v861_v13 = vld [vmem:[%s5937_s26 + $0x4d0] sm:$0xff] }
  0x36   : > { %784 = vst [vmem:[%s5942_s27 + $0x130] sm:$0xff] %v783_v38  ;;  %v863_v14 = vld [vmem:[%s5937_s26 + $0x4e0] sm:$0xff]  ;;  %v865_v15 = vld [vmem:[%s5937_s26 + $0x4f0] sm:$0xff] }
  0x37   : > { %786 = vst [vmem:[%s5942_s27 + $0x138] sm:$0xff] %v785_v39  ;;  %v867_v16 = vld [vmem:[%s5937_s26 + $0x500] sm:$0xff]  ;;  %v869_v17 = vld [vmem:[%s5937_s26 + $0x510] sm:$0xff] }
  0x38   : > { %788 = vst [vmem:[%s5942_s27 + $0x140] sm:$0xff] %v787_v40  ;;  %v871_v18 = vld [vmem:[%s5937_s26 + $0x520] sm:$0xff]  ;;  %v873_v19 = vld [vmem:[%s5937_s26 + $0x530] sm:$0xff] }
  0x39   : > { %790 = vst [vmem:[%s5942_s27 + $0x148] sm:$0xff] %v789_v41  ;;  %v875_v20 = vld [vmem:[%s5937_s26 + $0x540] sm:$0xff]  ;;  %v877_v21 = vld [vmem:[%s5937_s26 + $0x550] sm:$0xff] }
  0x3a   : > { %792 = vst [vmem:[%s5942_s27 + $0x150] sm:$0xff] %v791_v42  ;;  %v879_v22 = vld [vmem:[%s5937_s26 + $0x560] sm:$0xff]  ;;  %v881_v23 = vld [vmem:[%s5937_s26 + $0x570] sm:$0xff] }
  0x3b   : > { %794 = vst [vmem:[%s5942_s27 + $0x158] sm:$0xff] %v793_v43  ;;  %v883_v24 = vld [vmem:[%s5937_s26 + $0x580] sm:$0xff]  ;;  %v885_v25 = vld [vmem:[%s5937_s26 + $0x590] sm:$0xff] }
  0x3c   : > { %796 = vst [vmem:[%s5942_s27 + $0x160] sm:$0xff] %v795_v44  ;;  %v887_v26 = vld [vmem:[%s5937_s26 + $0x5a0] sm:$0xff]  ;;  %v889_v27 = vld [vmem:[%s5937_s26 + $0x5b0] sm:$0xff] }
  0x3d   : > { %798 = vst [vmem:[%s5942_s27 + $0x168] sm:$0xff] %v797_v45  ;;  %v891_v28 = vld [vmem:[%s5937_s26 + $0x5c0] sm:$0xff]  ;;  %v893_v29 = vld [vmem:[%s5937_s26 + $0x5d0] sm:$0xff] }
  0x3e   : > { %800 = vst [vmem:[%s5942_s27 + $0x170] sm:$0xff] %v799_v46  ;;  %v895_v30 = vld [vmem:[%s5937_s26 + $0x5e0] sm:$0xff]  ;;  %v897_v31 = vld [vmem:[%s5937_s26 + $0x5f0] sm:$0xff] }
  0x3f   : > { %802 = vst [vmem:[%s5942_s27 + $0x178] sm:$0xff] %v801_v47  ;;  %v899_v32 = vld [vmem:[%s5937_s26 + $0x600] sm:$0xff]  ;;  %v901_v33 = vld [vmem:[%s5937_s26 + $0x610] sm:$0xff] }
  0x40   : > { %804 = vst [vmem:[%s5942_s27 + $0x180] sm:$0xff] %v803_v48  ;;  %v903_v34 = vld [vmem:[%s5937_s26 + $0x620] sm:$0xff]  ;;  %v905_v35 = vld [vmem:[%s5937_s26 + $0x630] sm:$0xff] }
  0x41   : > { %806 = vst [vmem:[%s5942_s27 + $0x188] sm:$0xff] %v805_v49  ;;  %v907_v36 = vld [vmem:[%s5937_s26 + $0x640] sm:$0xff]  ;;  %v909_v37 = vld [vmem:[%s5937_s26 + $0x650] sm:$0xff] }
  0x42   : > { %808 = vst [vmem:[%s5942_s27 + $0x190] sm:$0xff] %v807_v50  ;;  %v911_v38 = vld [vmem:[%s5937_s26 + $0x660] sm:$0xff]  ;;  %v913_v39 = vld [vmem:[%s5937_s26 + $0x670] sm:$0xff] }
  0x43   : > { %810 = vst [vmem:[%s5942_s27 + $0x198] sm:$0xff] %v809_v51  ;;  %v915_v40 = vld [vmem:[%s5937_s26 + $0x680] sm:$0xff]  ;;  %v917_v41 = vld [vmem:[%s5937_s26 + $0x690] sm:$0xff] }
  0x44   : > { %812 = vst [vmem:[%s5942_s27 + $0x1a0] sm:$0xff] %v811_v52  ;;  %v919_v42 = vld [vmem:[%s5937_s26 + $0x6a0] sm:$0xff]  ;;  %v921_v43 = vld [vmem:[%s5937_s26 + $0x6b0] sm:$0xff] }
  0x45   : > { %814 = vst [vmem:[%s5942_s27 + $0x1a8] sm:$0xff] %v813_v53  ;;  %v923_v44 = vld [vmem:[%s5937_s26 + $0x6c0] sm:$0xff]  ;;  %v925_v45 = vld [vmem:[%s5937_s26 + $0x6d0] sm:$0xff] }
  0x46   : > { %816 = vst [vmem:[%s5942_s27 + $0x1b0] sm:$0xff] %v815_v54  ;;  %v927_v46 = vld [vmem:[%s5937_s26 + $0x6e0] sm:$0xff]  ;;  %v929_v47 = vld [vmem:[%s5937_s26 + $0x6f0] sm:$0xff] }
  0x47   : > { %818 = vst [vmem:[%s5942_s27 + $0x1b8] sm:$0xff] %v817_v55  ;;  %v931_v48 = vld [vmem:[%s5937_s26 + $0x700] sm:$0xff]  ;;  %v933_v49 = vld [vmem:[%s5937_s26 + $0x710] sm:$0xff] }
  0x48   : > { %820 = vst [vmem:[%s5942_s27 + $0x1c0] sm:$0xff] %v819_v56  ;;  %v935_v50 = vld [vmem:[%s5937_s26 + $0x720] sm:$0xff]  ;;  %v937_v51 = vld [vmem:[%s5937_s26 + $0x730] sm:$0xff] }
  0x49   : > { %822 = vst [vmem:[%s5942_s27 + $0x1c8] sm:$0xff] %v821_v57  ;;  %v939_v52 = vld [vmem:[%s5937_s26 + $0x740] sm:$0xff]  ;;  %v941_v53 = vld [vmem:[%s5937_s26 + $0x750] sm:$0xff] }
  0x4a   : > { %824 = vst [vmem:[%s5942_s27 + $0x1d0] sm:$0xff] %v823_v58  ;;  %v943_v54 = vld [vmem:[%s5937_s26 + $0x760] sm:$0xff]  ;;  %v945_v55 = vld [vmem:[%s5937_s26 + $0x770] sm:$0xff] }
  0x4b   : > { %826 = vst [vmem:[%s5942_s27 + $0x1d8] sm:$0xff] %v825_v59  ;;  %v947_v56 = vld [vmem:[%s5937_s26 + $0x780] sm:$0xff]  ;;  %v949_v57 = vld [vmem:[%s5937_s26 + $0x790] sm:$0xff] }
  0x4c   : > { %828 = vst [vmem:[%s5942_s27 + $0x1e0] sm:$0xff] %v827_v60  ;;  %v951_v58 = vld [vmem:[%s5937_s26 + $0x7a0] sm:$0xff]  ;;  %v953_v59 = vld [vmem:[%s5937_s26 + $0x7b0] sm:$0xff] }
  0x4d   : > { %830 = vst [vmem:[%s5942_s27 + $0x1e8] sm:$0xff] %v829_v61  ;;  %v955_v60 = vld [vmem:[%s5937_s26 + $0x7c0] sm:$0xff]  ;;  %v957_v61 = vld [vmem:[%s5937_s26 + $0x7d0] sm:$0xff] }
  0x4e   : > { %832 = vst [vmem:[%s5942_s27 + $0x1f0] sm:$0xff] %v831_v62  ;;  %v959_v62 = vld [vmem:[%s5937_s26 + $0x7e0] sm:$0xff] }
  0x4f   : > { %834 = vst [vmem:[%s5942_s27 + $0x1f8] sm:$0xff] %v833_v63  ;;  %v961_v63 = vld [vmem:[%s5937_s26 + $0x7f0] sm:$0xff] }
  0x50   : > { %836 = vst [vmem:[%s5942_s27 + $0x200] sm:$0xff] %v835_v0  ;;  %v963_v0 = vld [vmem:[%s5937_s26 + $0x800] sm:$0xff] }
  0x51   : > { %838 = vst [vmem:[%s5942_s27 + $0x208] sm:$0xff] %v837_v1  ;;  %v965_v1 = vld [vmem:[%s5937_s26 + $0x810] sm:$0xff] }
  0x52   : > { %840 = vst [vmem:[%s5942_s27 + $0x210] sm:$0xff] %v839_v2  ;;  %v967_v2 = vld [vmem:[%s5937_s26 + $0x820] sm:$0xff] }
  0x53   : > { %842 = vst [vmem:[%s5942_s27 + $0x218] sm:$0xff] %v841_v3  ;;  %v969_v3 = vld [vmem:[%s5937_s26 + $0x830] sm:$0xff] }
  0x54   : > { %844 = vst [vmem:[%s5942_s27 + $0x220] sm:$0xff] %v843_v4  ;;  %v971_v4 = vld [vmem:[%s5937_s26 + $0x840] sm:$0xff] }
  0x55   : > { %846 = vst [vmem:[%s5942_s27 + $0x228] sm:$0xff] %v845_v5  ;;  %v973_v5 = vld [vmem:[%s5937_s26 + $0x850] sm:$0xff] }
  0x56   : > { %848 = vst [vmem:[%s5942_s27 + $0x230] sm:$0xff] %v847_v6  ;;  %v975_v6 = vld [vmem:[%s5937_s26 + $0x860] sm:$0xff] }
  0x57   : > { %850 = vst [vmem:[%s5942_s27 + $0x238] sm:$0xff] %v849_v7  ;;  %v977_v7 = vld [vmem:[%s5937_s26 + $0x870] sm:$0xff] }
  0x58   : > { %852 = vst [vmem:[%s5942_s27 + $0x240] sm:$0xff] %v851_v8  ;;  %v979_v8 = vld [vmem:[%s5937_s26 + $0x880] sm:$0xff] }
  0x59   : > { %854 = vst [vmem:[%s5942_s27 + $0x248] sm:$0xff] %v853_v9  ;;  %v981_v9 = vld [vmem:[%s5937_s26 + $0x890] sm:$0xff] }
  0x5a   : > { %856 = vst [vmem:[%s5942_s27 + $0x250] sm:$0xff] %v855_v10  ;;  %v983_v10 = vld [vmem:[%s5937_s26 + $0x8a0] sm:$0xff] }
  0x5b   : > { %858 = vst [vmem:[%s5942_s27 + $0x258] sm:$0xff] %v857_v11  ;;  %v985_v11 = vld [vmem:[%s5937_s26 + $0x8b0] sm:$0xff] }
  0x5c   : > { %860 = vst [vmem:[%s5942_s27 + $0x260] sm:$0xff] %v859_v12  ;;  %v987_v12 = vld [vmem:[%s5937_s26 + $0x8c0] sm:$0xff] }
  0x5d   : > { %862 = vst [vmem:[%s5942_s27 + $0x268] sm:$0xff] %v861_v13  ;;  %v989_v13 = vld [vmem:[%s5937_s26 + $0x8d0] sm:$0xff] }
  0x5e   : > { %864 = vst [vmem:[%s5942_s27 + $0x270] sm:$0xff] %v863_v14  ;;  %v991_v14 = vld [vmem:[%s5937_s26 + $0x8e0] sm:$0xff] }
  0x5f   : > { %866 = vst [vmem:[%s5942_s27 + $0x278] sm:$0xff] %v865_v15  ;;  %v993_v15 = vld [vmem:[%s5937_s26 + $0x8f0] sm:$0xff] }
  0x60   : > { %868 = vst [vmem:[%s5942_s27 + $0x280] sm:$0xff] %v867_v16  ;;  %v995_v16 = vld [vmem:[%s5937_s26 + $0x900] sm:$0xff] }
  0x61   : > { %870 = vst [vmem:[%s5942_s27 + $0x288] sm:$0xff] %v869_v17  ;;  %v997_v17 = vld [vmem:[%s5937_s26 + $0x910] sm:$0xff] }
  0x62   : > { %872 = vst [vmem:[%s5942_s27 + $0x290] sm:$0xff] %v871_v18  ;;  %v999_v18 = vld [vmem:[%s5937_s26 + $0x920] sm:$0xff] }
  0x63   : > { %874 = vst [vmem:[%s5942_s27 + $0x298] sm:$0xff] %v873_v19  ;;  %v1001_v19 = vld [vmem:[%s5937_s26 + $0x930] sm:$0xff] }
  0x64   : > { %876 = vst [vmem:[%s5942_s27 + $0x2a0] sm:$0xff] %v875_v20  ;;  %v1003_v20 = vld [vmem:[%s5937_s26 + $0x940] sm:$0xff] }
  0x65   : > { %878 = vst [vmem:[%s5942_s27 + $0x2a8] sm:$0xff] %v877_v21  ;;  %v1005_v21 = vld [vmem:[%s5937_s26 + $0x950] sm:$0xff] }
  0x66   : > { %880 = vst [vmem:[%s5942_s27 + $0x2b0] sm:$0xff] %v879_v22  ;;  %v1007_v22 = vld [vmem:[%s5937_s26 + $0x960] sm:$0xff] }
  0x67   : > { %882 = vst [vmem:[%s5942_s27 + $0x2b8] sm:$0xff] %v881_v23  ;;  %v1009_v23 = vld [vmem:[%s5937_s26 + $0x970] sm:$0xff] }
  0x68   : > { %884 = vst [vmem:[%s5942_s27 + $0x2c0] sm:$0xff] %v883_v24  ;;  %v1011_v24 = vld [vmem:[%s5937_s26 + $0x980] sm:$0xff] }
  0x69   : > { %886 = vst [vmem:[%s5942_s27 + $0x2c8] sm:$0xff] %v885_v25  ;;  %v1013_v25 = vld [vmem:[%s5937_s26 + $0x990] sm:$0xff] }
  0x6a   : > { %888 = vst [vmem:[%s5942_s27 + $0x2d0] sm:$0xff] %v887_v26  ;;  %v1015_v26 = vld [vmem:[%s5937_s26 + $0x9a0] sm:$0xff] }
  0x6b   : > { %890 = vst [vmem:[%s5942_s27 + $0x2d8] sm:$0xff] %v889_v27  ;;  %v1017_v27 = vld [vmem:[%s5937_s26 + $0x9b0] sm:$0xff] }
  0x6c   : > { %892 = vst [vmem:[%s5942_s27 + $0x2e0] sm:$0xff] %v891_v28  ;;  %v1019_v28 = vld [vmem:[%s5937_s26 + $0x9c0] sm:$0xff] }
  0x6d   : > { %894 = vst [vmem:[%s5942_s27 + $0x2e8] sm:$0xff] %v893_v29  ;;  %v1021_v29 = vld [vmem:[%s5937_s26 + $0x9d0] sm:$0xff] }
  0x6e   : > { %896 = vst [vmem:[%s5942_s27 + $0x2f0] sm:$0xff] %v895_v30  ;;  %v1023_v30 = vld [vmem:[%s5937_s26 + $0x9e0] sm:$0xff] }
  0x6f   : > { %898 = vst [vmem:[%s5942_s27 + $0x2f8] sm:$0xff] %v897_v31  ;;  %v1025_v31 = vld [vmem:[%s5937_s26 + $0x9f0] sm:$0xff] }
  0x70   : > { %900 = vst [vmem:[%s5942_s27 + $0x300] sm:$0xff] %v899_v32  ;;  %v1027_v32 = vld [vmem:[%s5937_s26 + $0xa00] sm:$0xff] }
  0x71   : > { %902 = vst [vmem:[%s5942_s27 + $0x308] sm:$0xff] %v901_v33  ;;  %v1029_v33 = vld [vmem:[%s5937_s26 + $0xa10] sm:$0xff] }
  0x72   : > { %904 = vst [vmem:[%s5942_s27 + $0x310] sm:$0xff] %v903_v34  ;;  %v1031_v34 = vld [vmem:[%s5937_s26 + $0xa20] sm:$0xff] }
  0x73   : > { %906 = vst [vmem:[%s5942_s27 + $0x318] sm:$0xff] %v905_v35  ;;  %v1033_v35 = vld [vmem:[%s5937_s26 + $0xa30] sm:$0xff] }
  0x74   : > { %908 = vst [vmem:[%s5942_s27 + $0x320] sm:$0xff] %v907_v36  ;;  %v1035_v36 = vld [vmem:[%s5937_s26 + $0xa40] sm:$0xff] }
  0x75   : > { %910 = vst [vmem:[%s5942_s27 + $0x328] sm:$0xff] %v909_v37  ;;  %v1037_v37 = vld [vmem:[%s5937_s26 + $0xa50] sm:$0xff] }
  0x76   : > { %912 = vst [vmem:[%s5942_s27 + $0x330] sm:$0xff] %v911_v38  ;;  %v1039_v38 = vld [vmem:[%s5937_s26 + $0xa60] sm:$0xff] }
  0x77   : > { %914 = vst [vmem:[%s5942_s27 + $0x338] sm:$0xff] %v913_v39  ;;  %v1041_v39 = vld [vmem:[%s5937_s26 + $0xa70] sm:$0xff] }
  0x78   : > { %916 = vst [vmem:[%s5942_s27 + $0x340] sm:$0xff] %v915_v40  ;;  %v1043_v40 = vld [vmem:[%s5937_s26 + $0xa80] sm:$0xff] }
  0x79   : > { %918 = vst [vmem:[%s5942_s27 + $0x348] sm:$0xff] %v917_v41  ;;  %v1045_v41 = vld [vmem:[%s5937_s26 + $0xa90] sm:$0xff] }
  0x7a   : > { %920 = vst [vmem:[%s5942_s27 + $0x350] sm:$0xff] %v919_v42  ;;  %v1047_v42 = vld [vmem:[%s5937_s26 + $0xaa0] sm:$0xff] }
  0x7b   : > { %922 = vst [vmem:[%s5942_s27 + $0x358] sm:$0xff] %v921_v43  ;;  %v1049_v43 = vld [vmem:[%s5937_s26 + $0xab0] sm:$0xff] }
  0x7c   : > { %924 = vst [vmem:[%s5942_s27 + $0x360] sm:$0xff] %v923_v44  ;;  %v1051_v44 = vld [vmem:[%s5937_s26 + $0xac0] sm:$0xff] }
  0x7d   : > { %926 = vst [vmem:[%s5942_s27 + $0x368] sm:$0xff] %v925_v45  ;;  %v1053_v45 = vld [vmem:[%s5937_s26 + $0xad0] sm:$0xff] }
  0x7e   : > { %928 = vst [vmem:[%s5942_s27 + $0x370] sm:$0xff] %v927_v46  ;;  %v1055_v46 = vld [vmem:[%s5937_s26 + $0xae0] sm:$0xff] }
  0x7f   : > { %930 = vst [vmem:[%s5942_s27 + $0x378] sm:$0xff] %v929_v47  ;;  %v1057_v47 = vld [vmem:[%s5937_s26 + $0xaf0] sm:$0xff] }
  0x80   : > { %932 = vst [vmem:[%s5942_s27 + $0x380] sm:$0xff] %v931_v48  ;;  %v1059_v48 = vld [vmem:[%s5937_s26 + $0xb00] sm:$0xff] }
  0x81   : > { %934 = vst [vmem:[%s5942_s27 + $0x388] sm:$0xff] %v933_v49  ;;  %v1061_v49 = vld [vmem:[%s5937_s26 + $0xb10] sm:$0xff] }
  0x82   : > { %936 = vst [vmem:[%s5942_s27 + $0x390] sm:$0xff] %v935_v50  ;;  %v1063_v50 = vld [vmem:[%s5937_s26 + $0xb20] sm:$0xff] }
  0x83   : > { %938 = vst [vmem:[%s5942_s27 + $0x398] sm:$0xff] %v937_v51  ;;  %v1065_v51 = vld [vmem:[%s5937_s26 + $0xb30] sm:$0xff] }
  0x84   : > { %940 = vst [vmem:[%s5942_s27 + $0x3a0] sm:$0xff] %v939_v52  ;;  %v1067_v52 = vld [vmem:[%s5937_s26 + $0xb40] sm:$0xff] }
  0x85   : > { %942 = vst [vmem:[%s5942_s27 + $0x3a8] sm:$0xff] %v941_v53  ;;  %v1069_v53 = vld [vmem:[%s5937_s26 + $0xb50] sm:$0xff] }
  0x86   : > { %944 = vst [vmem:[%s5942_s27 + $0x3b0] sm:$0xff] %v943_v54  ;;  %v1071_v54 = vld [vmem:[%s5937_s26 + $0xb60] sm:$0xff] }
  0x87   : > { %946 = vst [vmem:[%s5942_s27 + $0x3b8] sm:$0xff] %v945_v55  ;;  %v1073_v55 = vld [vmem:[%s5937_s26 + $0xb70] sm:$0xff] }
  0x88   : > { %948 = vst [vmem:[%s5942_s27 + $0x3c0] sm:$0xff] %v947_v56  ;;  %v1075_v56 = vld [vmem:[%s5937_s26 + $0xb80] sm:$0xff] }
  0x89   : > { %950 = vst [vmem:[%s5942_s27 + $0x3c8] sm:$0xff] %v949_v57  ;;  %v1077_v57 = vld [vmem:[%s5937_s26 + $0xb90] sm:$0xff] }
  0x8a   : > { %952 = vst [vmem:[%s5942_s27 + $0x3d0] sm:$0xff] %v951_v58  ;;  %v1079_v58 = vld [vmem:[%s5937_s26 + $0xba0] sm:$0xff] }
  0x8b   : > { %954 = vst [vmem:[%s5942_s27 + $0x3d8] sm:$0xff] %v953_v59  ;;  %v1081_v59 = vld [vmem:[%s5937_s26 + $0xbb0] sm:$0xff] }
  0x8c   : > { %956 = vst [vmem:[%s5942_s27 + $0x3e0] sm:$0xff] %v955_v60  ;;  %v1083_v60 = vld [vmem:[%s5937_s26 + $0xbc0] sm:$0xff] }
  0x8d   : > { %958 = vst [vmem:[%s5942_s27 + $0x3e8] sm:$0xff] %v957_v61  ;;  %v1085_v61 = vld [vmem:[%s5937_s26 + $0xbd0] sm:$0xff] }
  0x8e   : > { %960 = vst [vmem:[%s5942_s27 + $0x3f0] sm:$0xff] %v959_v62  ;;  %v1087_v62 = vld [vmem:[%s5937_s26 + $0xbe0] sm:$0xff] }
  0x8f   : > { %962 = vst [vmem:[%s5942_s27 + $0x3f8] sm:$0xff] %v961_v63  ;;  %v1089_v63 = vld [vmem:[%s5937_s26 + $0xbf0] sm:$0xff] }
  0x90   : > { %964 = vst [vmem:[%s5942_s27 + $0x400] sm:$0xff] %v963_v0  ;;  %v1091_v0 = vld [vmem:[%s5937_s26 + $0xc00] sm:$0xff] }
  0x91   : > { %966 = vst [vmem:[%s5942_s27 + $0x408] sm:$0xff] %v965_v1  ;;  %v1093_v1 = vld [vmem:[%s5937_s26 + $0xc10] sm:$0xff] }
  0x92   : > { %968 = vst [vmem:[%s5942_s27 + $0x410] sm:$0xff] %v967_v2  ;;  %v1095_v2 = vld [vmem:[%s5937_s26 + $0xc20] sm:$0xff] }
  0x93   : > { %970 = vst [vmem:[%s5942_s27 + $0x418] sm:$0xff] %v969_v3  ;;  %v1097_v3 = vld [vmem:[%s5937_s26 + $0xc30] sm:$0xff] }
  0x94   : > { %972 = vst [vmem:[%s5942_s27 + $0x420] sm:$0xff] %v971_v4  ;;  %v1099_v4 = vld [vmem:[%s5937_s26 + $0xc40] sm:$0xff] }
  0x95   : > { %974 = vst [vmem:[%s5942_s27 + $0x428] sm:$0xff] %v973_v5  ;;  %v1101_v5 = vld [vmem:[%s5937_s26 + $0xc50] sm:$0xff] }
  0x96   : > { %976 = vst [vmem:[%s5942_s27 + $0x430] sm:$0xff] %v975_v6  ;;  %v1103_v6 = vld [vmem:[%s5937_s26 + $0xc60] sm:$0xff] }
  0x97   : > { %978 = vst [vmem:[%s5942_s27 + $0x438] sm:$0xff] %v977_v7  ;;  %v1105_v7 = vld [vmem:[%s5937_s26 + $0xc70] sm:$0xff] }
  0x98   : > { %980 = vst [vmem:[%s5942_s27 + $0x440] sm:$0xff] %v979_v8  ;;  %v1107_v8 = vld [vmem:[%s5937_s26 + $0xc80] sm:$0xff] }
  0x99   : > { %982 = vst [vmem:[%s5942_s27 + $0x448] sm:$0xff] %v981_v9  ;;  %v1109_v9 = vld [vmem:[%s5937_s26 + $0xc90] sm:$0xff] }
  0x9a   : > { %984 = vst [vmem:[%s5942_s27 + $0x450] sm:$0xff] %v983_v10  ;;  %v1111_v10 = vld [vmem:[%s5937_s26 + $0xca0] sm:$0xff] }
  0x9b   : > { %986 = vst [vmem:[%s5942_s27 + $0x458] sm:$0xff] %v985_v11  ;;  %v1113_v11 = vld [vmem:[%s5937_s26 + $0xcb0] sm:$0xff] }
  0x9c   : > { %988 = vst [vmem:[%s5942_s27 + $0x460] sm:$0xff] %v987_v12  ;;  %v1115_v12 = vld [vmem:[%s5937_s26 + $0xcc0] sm:$0xff] }
  0x9d   : > { %990 = vst [vmem:[%s5942_s27 + $0x468] sm:$0xff] %v989_v13  ;;  %v1117_v13 = vld [vmem:[%s5937_s26 + $0xcd0] sm:$0xff] }
  0x9e   : > { %992 = vst [vmem:[%s5942_s27 + $0x470] sm:$0xff] %v991_v14  ;;  %v1119_v14 = vld [vmem:[%s5937_s26 + $0xce0] sm:$0xff] }
  0x9f   : > { %994 = vst [vmem:[%s5942_s27 + $0x478] sm:$0xff] %v993_v15  ;;  %v1121_v15 = vld [vmem:[%s5937_s26 + $0xcf0] sm:$0xff] }
  0xa0   : > { %996 = vst [vmem:[%s5942_s27 + $0x480] sm:$0xff] %v995_v16  ;;  %v1123_v16 = vld [vmem:[%s5937_s26 + $0xd00] sm:$0xff] }
  0xa1   : > { %998 = vst [vmem:[%s5942_s27 + $0x488] sm:$0xff] %v997_v17  ;;  %v1125_v17 = vld [vmem:[%s5937_s26 + $0xd10] sm:$0xff] }
  0xa2   : > { %1000 = vst [vmem:[%s5942_s27 + $0x490] sm:$0xff] %v999_v18  ;;  %v1127_v18 = vld [vmem:[%s5937_s26 + $0xd20] sm:$0xff] }
  0xa3   : > { %1002 = vst [vmem:[%s5942_s27 + $0x498] sm:$0xff] %v1001_v19  ;;  %v1129_v19 = vld [vmem:[%s5937_s26 + $0xd30] sm:$0xff] }
  0xa4   : > { %1004 = vst [vmem:[%s5942_s27 + $0x4a0] sm:$0xff] %v1003_v20  ;;  %v1131_v20 = vld [vmem:[%s5937_s26 + $0xd40] sm:$0xff] }
  0xa5   : > { %1006 = vst [vmem:[%s5942_s27 + $0x4a8] sm:$0xff] %v1005_v21  ;;  %v1133_v21 = vld [vmem:[%s5937_s26 + $0xd50] sm:$0xff] }
  0xa6   : > { %1008 = vst [vmem:[%s5942_s27 + $0x4b0] sm:$0xff] %v1007_v22  ;;  %v1135_v22 = vld [vmem:[%s5937_s26 + $0xd60] sm:$0xff] }
  0xa7   : > { %1010 = vst [vmem:[%s5942_s27 + $0x4b8] sm:$0xff] %v1009_v23  ;;  %v1137_v23 = vld [vmem:[%s5937_s26 + $0xd70] sm:$0xff] }
  0xa8   : > { %1012 = vst [vmem:[%s5942_s27 + $0x4c0] sm:$0xff] %v1011_v24  ;;  %v1139_v24 = vld [vmem:[%s5937_s26 + $0xd80] sm:$0xff] }
  0xa9   : > { %1014 = vst [vmem:[%s5942_s27 + $0x4c8] sm:$0xff] %v1013_v25  ;;  %v1141_v25 = vld [vmem:[%s5937_s26 + $0xd90] sm:$0xff] }
  0xaa   : > { %1016 = vst [vmem:[%s5942_s27 + $0x4d0] sm:$0xff] %v1015_v26  ;;  %v1143_v26 = vld [vmem:[%s5937_s26 + $0xda0] sm:$0xff] }
  0xab   : > { %1018 = vst [vmem:[%s5942_s27 + $0x4d8] sm:$0xff] %v1017_v27  ;;  %v1145_v27 = vld [vmem:[%s5937_s26 + $0xdb0] sm:$0xff] }
  0xac   : > { %1020 = vst [vmem:[%s5942_s27 + $0x4e0] sm:$0xff] %v1019_v28  ;;  %v1147_v28 = vld [vmem:[%s5937_s26 + $0xdc0] sm:$0xff] }
  0xad   : > { %1022 = vst [vmem:[%s5942_s27 + $0x4e8] sm:$0xff] %v1021_v29  ;;  %v1149_v29 = vld [vmem:[%s5937_s26 + $0xdd0] sm:$0xff] }
  0xae   : > { %1024 = vst [vmem:[%s5942_s27 + $0x4f0] sm:$0xff] %v1023_v30  ;;  %v1151_v30 = vld [vmem:[%s5937_s26 + $0xde0] sm:$0xff] }
  0xaf   : > { %1026 = vst [vmem:[%s5942_s27 + $0x4f8] sm:$0xff] %v1025_v31  ;;  %v1153_v31 = vld [vmem:[%s5937_s26 + $0xdf0] sm:$0xff] }
  0xb0   : > { %1028 = vst [vmem:[%s5942_s27 + $0x500] sm:$0xff] %v1027_v32  ;;  %v1155_v32 = vld [vmem:[%s5937_s26 + $0xe00] sm:$0xff] }
  0xb1   : > { %1030 = vst [vmem:[%s5942_s27 + $0x508] sm:$0xff] %v1029_v33  ;;  %v1157_v33 = vld [vmem:[%s5937_s26 + $0xe10] sm:$0xff] }
  0xb2   : > { %1032 = vst [vmem:[%s5942_s27 + $0x510] sm:$0xff] %v1031_v34  ;;  %v1159_v34 = vld [vmem:[%s5937_s26 + $0xe20] sm:$0xff] }
  0xb3   : > { %1034 = vst [vmem:[%s5942_s27 + $0x518] sm:$0xff] %v1033_v35  ;;  %v1161_v35 = vld [vmem:[%s5937_s26 + $0xe30] sm:$0xff] }
  0xb4   : > { %1036 = vst [vmem:[%s5942_s27 + $0x520] sm:$0xff] %v1035_v36  ;;  %v1163_v36 = vld [vmem:[%s5937_s26 + $0xe40] sm:$0xff] }
  0xb5   : > { %1038 = vst [vmem:[%s5942_s27 + $0x528] sm:$0xff] %v1037_v37  ;;  %v1165_v37 = vld [vmem:[%s5937_s26 + $0xe50] sm:$0xff] }
  0xb6   : > { %1040 = vst [vmem:[%s5942_s27 + $0x530] sm:$0xff] %v1039_v38  ;;  %v1167_v38 = vld [vmem:[%s5937_s26 + $0xe60] sm:$0xff] }
  0xb7   : > { %1042 = vst [vmem:[%s5942_s27 + $0x538] sm:$0xff] %v1041_v39  ;;  %v1169_v39 = vld [vmem:[%s5937_s26 + $0xe70] sm:$0xff] }
  0xb8   : > { %1044 = vst [vmem:[%s5942_s27 + $0x540] sm:$0xff] %v1043_v40  ;;  %v1171_v40 = vld [vmem:[%s5937_s26 + $0xe80] sm:$0xff] }
  0xb9   : > { %1046 = vst [vmem:[%s5942_s27 + $0x548] sm:$0xff] %v1045_v41  ;;  %v1173_v41 = vld [vmem:[%s5937_s26 + $0xe90] sm:$0xff] }
  0xba   : > { %1048 = vst [vmem:[%s5942_s27 + $0x550] sm:$0xff] %v1047_v42  ;;  %v1175_v42 = vld [vmem:[%s5937_s26 + $0xea0] sm:$0xff] }
  0xbb   : > { %1050 = vst [vmem:[%s5942_s27 + $0x558] sm:$0xff] %v1049_v43  ;;  %v1177_v43 = vld [vmem:[%s5937_s26 + $0xeb0] sm:$0xff] }
  0xbc   : > { %1052 = vst [vmem:[%s5942_s27 + $0x560] sm:$0xff] %v1051_v44  ;;  %v1179_v44 = vld [vmem:[%s5937_s26 + $0xec0] sm:$0xff] }
  0xbd   : > { %1054 = vst [vmem:[%s5942_s27 + $0x568] sm:$0xff] %v1053_v45  ;;  %v1181_v45 = vld [vmem:[%s5937_s26 + $0xed0] sm:$0xff] }
  0xbe   : > { %1056 = vst [vmem:[%s5942_s27 + $0x570] sm:$0xff] %v1055_v46  ;;  %v1183_v46 = vld [vmem:[%s5937_s26 + $0xee0] sm:$0xff] }
  0xbf   : > { %1058 = vst [vmem:[%s5942_s27 + $0x578] sm:$0xff] %v1057_v47  ;;  %v1185_v47 = vld [vmem:[%s5937_s26 + $0xef0] sm:$0xff] }
  0xc0   : > { %1060 = vst [vmem:[%s5942_s27 + $0x580] sm:$0xff] %v1059_v48  ;;  %v1187_v48 = vld [vmem:[%s5937_s26 + $0xf00] sm:$0xff] }
  0xc1   : > { %1062 = vst [vmem:[%s5942_s27 + $0x588] sm:$0xff] %v1061_v49  ;;  %v1189_v49 = vld [vmem:[%s5937_s26 + $0xf10] sm:$0xff] }
  0xc2   : > { %1064 = vst [vmem:[%s5942_s27 + $0x590] sm:$0xff] %v1063_v50  ;;  %v1191_v50 = vld [vmem:[%s5937_s26 + $0xf20] sm:$0xff] }
  0xc3   : > { %1066 = vst [vmem:[%s5942_s27 + $0x598] sm:$0xff] %v1065_v51  ;;  %v1193_v51 = vld [vmem:[%s5937_s26 + $0xf30] sm:$0xff] }
  0xc4   : > { %1068 = vst [vmem:[%s5942_s27 + $0x5a0] sm:$0xff] %v1067_v52  ;;  %v1195_v52 = vld [vmem:[%s5937_s26 + $0xf40] sm:$0xff] }
  0xc5   : > { %1070 = vst [vmem:[%s5942_s27 + $0x5a8] sm:$0xff] %v1069_v53  ;;  %v1197_v53 = vld [vmem:[%s5937_s26 + $0xf50] sm:$0xff] }
  0xc6   : > { %1072 = vst [vmem:[%s5942_s27 + $0x5b0] sm:$0xff] %v1071_v54  ;;  %v1199_v54 = vld [vmem:[%s5937_s26 + $0xf60] sm:$0xff] }
  0xc7   : > { %1074 = vst [vmem:[%s5942_s27 + $0x5b8] sm:$0xff] %v1073_v55  ;;  %v1201_v55 = vld [vmem:[%s5937_s26 + $0xf70] sm:$0xff] }
  0xc8   : > { %1076 = vst [vmem:[%s5942_s27 + $0x5c0] sm:$0xff] %v1075_v56  ;;  %v1203_v56 = vld [vmem:[%s5937_s26 + $0xf80] sm:$0xff] }
  0xc9   : > { %1078 = vst [vmem:[%s5942_s27 + $0x5c8] sm:$0xff] %v1077_v57  ;;  %v1205_v57 = vld [vmem:[%s5937_s26 + $0xf90] sm:$0xff] }
  0xca   : > { %1080 = vst [vmem:[%s5942_s27 + $0x5d0] sm:$0xff] %v1079_v58  ;;  %v1207_v58 = vld [vmem:[%s5937_s26 + $0xfa0] sm:$0xff] }
  0xcb   : > { %1082 = vst [vmem:[%s5942_s27 + $0x5d8] sm:$0xff] %v1081_v59  ;;  %v1209_v59 = vld [vmem:[%s5937_s26 + $0xfb0] sm:$0xff] }
  0xcc   : > { %1084 = vst [vmem:[%s5942_s27 + $0x5e0] sm:$0xff] %v1083_v60  ;;  %v1211_v60 = vld [vmem:[%s5937_s26 + $0xfc0] sm:$0xff] }
  0xcd   : > { %1086 = vst [vmem:[%s5942_s27 + $0x5e8] sm:$0xff] %v1085_v61  ;;  %v1213_v61 = vld [vmem:[%s5937_s26 + $0xfd0] sm:$0xff] }
  0xce   : > { %1088 = vst [vmem:[%s5942_s27 + $0x5f0] sm:$0xff] %v1087_v62  ;;  %v1215_v62 = vld [vmem:[%s5937_s26 + $0xfe0] sm:$0xff] }
  0xcf   : > { %1090 = vst [vmem:[%s5942_s27 + $0x5f8] sm:$0xff] %v1089_v63  ;;  %v1217_v63 = vld [vmem:[%s5937_s26 + $0xff0] sm:$0xff] }
  0xd0   : > { %1092 = vst [vmem:[%s5942_s27 + $0x600] sm:$0xff] %v1091_v0 }
  0xd1   : > { %1094 = vst [vmem:[%s5942_s27 + $0x608] sm:$0xff] %v1093_v1 }
  0xd2   : > { %1096 = vst [vmem:[%s5942_s27 + $0x610] sm:$0xff] %v1095_v2 }
  0xd3   : > { %1098 = vst [vmem:[%s5942_s27 + $0x618] sm:$0xff] %v1097_v3 }
  0xd4   : > { %1100 = vst [vmem:[%s5942_s27 + $0x620] sm:$0xff] %v1099_v4 }
  0xd5   : > { %1102 = vst [vmem:[%s5942_s27 + $0x628] sm:$0xff] %v1101_v5 }
  0xd6   : > { %1104 = vst [vmem:[%s5942_s27 + $0x630] sm:$0xff] %v1103_v6 }
  0xd7   : > { %1106 = vst [vmem:[%s5942_s27 + $0x638] sm:$0xff] %v1105_v7 }
  0xd8   : > { %1108 = vst [vmem:[%s5942_s27 + $0x640] sm:$0xff] %v1107_v8 }
  0xd9   : > { %1110 = vst [vmem:[%s5942_s27 + $0x648] sm:$0xff] %v1109_v9 }
  0xda   : > { %1112 = vst [vmem:[%s5942_s27 + $0x650] sm:$0xff] %v1111_v10 }
  0xdb   : > { %1114 = vst [vmem:[%s5942_s27 + $0x658] sm:$0xff] %v1113_v11 }
  0xdc   : > { %1116 = vst [vmem:[%s5942_s27 + $0x660] sm:$0xff] %v1115_v12 }
  0xdd   : > { %1118 = vst [vmem:[%s5942_s27 + $0x668] sm:$0xff] %v1117_v13 }
  0xde   : > { %1120 = vst [vmem:[%s5942_s27 + $0x670] sm:$0xff] %v1119_v14 }
  0xdf   : > { %1122 = vst [vmem:[%s5942_s27 + $0x678] sm:$0xff] %v1121_v15 }
  0xe0   : > { %1124 = vst [vmem:[%s5942_s27 + $0x680] sm:$0xff] %v1123_v16 }
  0xe1   : > { %1126 = vst [vmem:[%s5942_s27 + $0x688] sm:$0xff] %v1125_v17 }
  0xe2   : > { %1128 = vst [vmem:[%s5942_s27 + $0x690] sm:$0xff] %v1127_v18 }
  0xe3   : > { %1130 = vst [vmem:[%s5942_s27 + $0x698] sm:$0xff] %v1129_v19 }
  0xe4   : > { %1132 = vst [vmem:[%s5942_s27 + $0x6a0] sm:$0xff] %v1131_v20 }
  0xe5   : > { %1134 = vst [vmem:[%s5942_s27 + $0x6a8] sm:$0xff] %v1133_v21 }
  0xe6   : > { %1136 = vst [vmem:[%s5942_s27 + $0x6b0] sm:$0xff] %v1135_v22 }
  0xe7   : > { %1138 = vst [vmem:[%s5942_s27 + $0x6b8] sm:$0xff] %v1137_v23 }
  0xe8   : > { %1140 = vst [vmem:[%s5942_s27 + $0x6c0] sm:$0xff] %v1139_v24 }
  0xe9   : > { %1142 = vst [vmem:[%s5942_s27 + $0x6c8] sm:$0xff] %v1141_v25 }
  0xea   : > { %1144 = vst [vmem:[%s5942_s27 + $0x6d0] sm:$0xff] %v1143_v26 }
  0xeb   : > { %1146 = vst [vmem:[%s5942_s27 + $0x6d8] sm:$0xff] %v1145_v27 }
  0xec   : > { %1148 = vst [vmem:[%s5942_s27 + $0x6e0] sm:$0xff] %v1147_v28 }
  0xed   : > { %1150 = vst [vmem:[%s5942_s27 + $0x6e8] sm:$0xff] %v1149_v29 }
  0xee   : > { %1152 = vst [vmem:[%s5942_s27 + $0x6f0] sm:$0xff] %v1151_v30 }
  0xef   : > { %1154 = vst [vmem:[%s5942_s27 + $0x6f8] sm:$0xff] %v1153_v31 }
  0xf0   : > { %1156 = vst [vmem:[%s5942_s27 + $0x700] sm:$0xff] %v1155_v32 }
  0xf1   : > { %1158 = vst [vmem:[%s5942_s27 + $0x708] sm:$0xff] %v1157_v33 }
  0xf2   : > { %1160 = vst [vmem:[%s5942_s27 + $0x710] sm:$0xff] %v1159_v34 }
  0xf3   : > { %1162 = vst [vmem:[%s5942_s27 + $0x718] sm:$0xff] %v1161_v35 }
  0xf4   : > { %1164 = vst [vmem:[%s5942_s27 + $0x720] sm:$0xff] %v1163_v36 }
  0xf5   : > { %1166 = vst [vmem:[%s5942_s27 + $0x728] sm:$0xff] %v1165_v37 }
  0xf6   : > { %1168 = vst [vmem:[%s5942_s27 + $0x730] sm:$0xff] %v1167_v38 }
  0xf7   : > { %1170 = vst [vmem:[%s5942_s27 + $0x738] sm:$0xff] %v1169_v39 }
  0xf8   : > { %1172 = vst [vmem:[%s5942_s27 + $0x740] sm:$0xff] %v1171_v40 }
  0xf9   : > { %1174 = vst [vmem:[%s5942_s27 + $0x748] sm:$0xff] %v1173_v41 }
  0xfa   : > { %1176 = vst [vmem:[%s5942_s27 + $0x750] sm:$0xff] %v1175_v42 }
  0xfb   : > { %1178 = vst [vmem:[%s5942_s27 + $0x758] sm:$0xff] %v1177_v43 }
  0xfc   : > { %1180 = vst [vmem:[%s5942_s27 + $0x760] sm:$0xff] %v1179_v44 }
  0xfd   : > { %1182 = vst [vmem:[%s5942_s27 + $0x768] sm:$0xff] %v1181_v45 }
  0xfe   : > { %1184 = vst [vmem:[%s5942_s27 + $0x770] sm:$0xff] %v1183_v46 }
  0xff   : > { %1186 = vst [vmem:[%s5942_s27 + $0x778] sm:$0xff] %v1185_v47 }
 0x100   : > { %1188 = vst [vmem:[%s5942_s27 + $0x780] sm:$0xff] %v1187_v48 }
 0x101   : > { %1190 = vst [vmem:[%s5942_s27 + $0x788] sm:$0xff] %v1189_v49 }
 0x102   : > { %1192 = vst [vmem:[%s5942_s27 + $0x790] sm:$0xff] %v1191_v50 }
 0x103   : > { %1194 = vst [vmem:[%s5942_s27 + $0x798] sm:$0xff] %v1193_v51 }
 0x104   : > { %1196 = vst [vmem:[%s5942_s27 + $0x7a0] sm:$0xff] %v1195_v52 }
 0x105   : > { %1198 = vst [vmem:[%s5942_s27 + $0x7a8] sm:$0xff] %v1197_v53 }
 0x106   : > { %1200 = vst [vmem:[%s5942_s27 + $0x7b0] sm:$0xff] %v1199_v54 }
 0x107   : > { %1202 = vst [vmem:[%s5942_s27 + $0x7b8] sm:$0xff] %v1201_v55 }
 0x108   : > { %1204 = vst [vmem:[%s5942_s27 + $0x7c0] sm:$0xff] %v1203_v56 }
 0x109   : > { %1206 = vst [vmem:[%s5942_s27 + $0x7c8] sm:$0xff] %v1205_v57 }
 0x10a   : > { %1208 = vst [vmem:[%s5942_s27 + $0x7d0] sm:$0xff] %v1207_v58 }
 0x10b   : > { %1210 = vst [vmem:[%s5942_s27 + $0x7d8] sm:$0xff] %v1209_v59 }
 0x10c   : > { %1212 = vst [vmem:[%s5942_s27 + $0x7e0] sm:$0xff] %v1211_v60 }
 0x10d   : > { %1214 = vst [vmem:[%s5942_s27 + $0x7e8] sm:$0xff] %v1213_v61 }
 0x10e   : > { %1216 = vst [vmem:[%s5942_s27 + $0x7f0] sm:$0xff] %v1215_v62 }
 0x10f   : > { %1218 = vst [vmem:[%s5942_s27 + $0x7f8] sm:$0xff] %v1217_v63 }
 0x110 PF: > { %p4506_p6 = scmp.ge.s32.totalorder %s5872_s16, 1  ;;  %p2290_p7 = scmp.lt.s32.totalorder %s5872_s16, 3 }
 0x112   : > { %p2291_p8 = pnand %p4506_p6, %p2290_p7 }
 0x113   : > { %s2297_s28 = sand.u32 (!%p2291_p8), 1, %s5856_s12   ;;  %s4508_s26 = sshll.u32 (!%p2291_p8), %s5864_s14, 1 }
 0x114   : > { %2294 = sbr.rel (%p2291_p8) target bundleno = 682 (0x2aa), region = 80  ;;  %s4507_s29 = sshll.u32 (!%p2291_p8), %s2297_s28, 11 }
 0x115   : > { %s6456_s30 = scalar_lea.vmem (!%p2291_p8), [#allocation3], %s4507_s29  ;;  %p2338_p9 = scmp.lt.s32.totalorder (!%p2291_p8), %s4508_s26, 3 }
 0x119   : > { %v4569_v0 = vld [vmem:[%s6456_s30 + $0x70] sm:$0xf]  ;;  %v5553_v1 = vld [vmem:[%s6456_s30 + $0x74] sm:$0xf0]  ;;  %v4561_v11 = vld [vmem:[%s6456_s30 + $0x60] sm:$0xf] }
 0x11a   : > { %v4633_v2 = vld [vmem:[%s6456_s30 + $0xf0] sm:$0xf]  ;;  %v4570_v3 = vor.u32 %v5553_v1, %v4569_v0  ;;  %v5569_v4 = vld [vmem:[%s6456_s30 + $0xf4] sm:$0xf0]  ;;  %v5551_v13 = vld [vmem:[%s6456_s30 + $0x64] sm:$0xf0] }
 0x11b   : > { %v4697_v5 = vld [vmem:[%s6456_s30 + $0x170] sm:$0xf]  ;;  %v5585_v6 = vld [vmem:[%s6456_s30 + $0x174] sm:$0xf0]  ;;  %v4634_v7 = vor.u32 %v5569_v4, %v4633_v2  ;;  %v4625_v14 = vld [vmem:[%s6456_s30 + $0xe0] sm:$0xf]  ;;  %v4562_v16 = vor.u32 %v5551_v13, %v4561_v11 }
 0x11c   : > { %v4698_v8 = vor.u32 %v5585_v6, %v4697_v5  ;;  %v4761_v9 = vld [vmem:[%s6456_s30 + $0x1f0] sm:$0xf]  ;;  %v5601_v10 = vld [vmem:[%s6456_s30 + $0x1f4] sm:$0xf0]  ;;  %3956 = vmatpush.bf16.msra.mxu0 %v4570_v3  ;;  %v5567_v15 = vld [vmem:[%s6456_s30 + $0xe4] sm:$0xf0] }
 0x11d   : > { %v4762_v12 = vor.u32 %v5601_v10, %v4761_v9  ;;  %3969 = vmatpush.bf16.msra.mxu1 %v4634_v7  ;;  %v4626_v17 = vor.u32 %v5567_v15, %v4625_v14  ;;  %v4689_v18 = vld [vmem:[%s6456_s30 + $0x160] sm:$0xf]  ;;  %v5583_v19 = vld [vmem:[%s6456_s30 + $0x164] sm:$0xf0]  ;;  %v4553_v23 = vld [vmem:[%s6456_s30 + $0x50] sm:$0xf] }
 0x11e   : > { %3982 = vmatpush.bf16.msra.mxu2 %v4698_v8  ;;  %v4753_v20 = vld [vmem:[%s6456_s30 + $0x1e0] sm:$0xf]  ;;  %v4690_v21 = vor.u32 %v5583_v19, %v4689_v18  ;;  %v5599_v22 = vld [vmem:[%s6456_s30 + $0x1e4] sm:$0xf0]  ;;  %v5549_v24 = vld [vmem:[%s6456_s30 + $0x54] sm:$0xf0] }
 0x11f   : > { %3995 = vmatpush.bf16.msra.mxu3 %v4762_v12  ;;  %v4754_v25 = vor.u32 %v5599_v22, %v4753_v20  ;;  %v4617_v26 = vld [vmem:[%s6456_s30 + $0xd0] sm:$0xf]  ;;  %v5565_v27 = vld [vmem:[%s6456_s30 + $0xd4] sm:$0xf0]  ;;  %v4554_v29 = vor.u32 %v5549_v24, %v4553_v23  ;;  %v4545_v35 = vld [vmem:[%s6456_s30 + $0x40] sm:$0xf] }
 0x120   : > { %v4681_v28 = vld [vmem:[%s6456_s30 + $0x150] sm:$0xf]  ;;  %3957 = vmatpush.bf16.msra.mxu0 %v4562_v16  ;;  %v5581_v30 = vld [vmem:[%s6456_s30 + $0x154] sm:$0xf0]  ;;  %v4618_v33 = vor.u32 %v5565_v27, %v4617_v26  ;;  %v5547_v36 = vld [vmem:[%s6456_s30 + $0x44] sm:$0xf0] }
 0x121   : > { %v4745_v31 = vld [vmem:[%s6456_s30 + $0x1d0] sm:$0xf]  ;;  %v5597_v32 = vld [vmem:[%s6456_s30 + $0x1d4] sm:$0xf0]  ;;  %3970 = vmatpush.bf16.msra.mxu1 %v4626_v17  ;;  %v4682_v34 = vor.u32 %v5581_v30, %v4681_v28  ;;  %v4609_v37 = vld [vmem:[%s6456_s30 + $0xc0] sm:$0xf]  ;;  %v4546_v44 = vor.u32 %v5547_v36, %v4545_v35 }
 0x122   : > { %3983 = vmatpush.bf16.msra.mxu2 %v4690_v21  ;;  %v4746_v38 = vor.u32 %v5597_v32, %v4745_v31  ;;  %v5563_v39 = vld [vmem:[%s6456_s30 + $0xc4] sm:$0xf0]  ;;  %v4673_v40 = vld [vmem:[%s6456_s30 + $0x140] sm:$0xf]  ;;  %v4537_v47 = vld [vmem:[%s6456_s30 + $0x30] sm:$0xf] }
 0x123   : > { %3996 = vmatpush.bf16.msra.mxu3 %v4754_v25  ;;  %v5579_v41 = vld [vmem:[%s6456_s30 + $0x144] sm:$0xf0]  ;;  %v4737_v42 = vld [vmem:[%s6456_s30 + $0x1c0] sm:$0xf]  ;;  %v4610_v45 = vor.u32 %v5563_v39, %v4609_v37  ;;  %v5545_v48 = vld [vmem:[%s6456_s30 + $0x34] sm:$0xf0] }
 0x124   : > { %v5595_v43 = vld [vmem:[%s6456_s30 + $0x1c4] sm:$0xf0]  ;;  %3958 = vmatpush.bf16.msra.mxu0 %v4554_v29  ;;  %v4674_v46 = vor.u32 %v5579_v41, %v4673_v40  ;;  %v4601_v49 = vld [vmem:[%s6456_s30 + $0xb0] sm:$0xf]  ;;  %v5561_v51 = vld [vmem:[%s6456_s30 + $0xb4] sm:$0xf0]  ;;  %v4538_v56 = vor.u32 %v5545_v48, %v4537_v47 }
 0x125   : > { %3971 = vmatpush.bf16.msra.mxu1 %v4618_v33  ;;  %v4738_v50 = vor.u32 %v5595_v43, %v4737_v42  ;;  %v4665_v52 = vld [vmem:[%s6456_s30 + $0x130] sm:$0xf]  ;;  %v5577_v53 = vld [vmem:[%s6456_s30 + $0x134] sm:$0xf0]  ;;  %v4602_v57 = vor.u32 %v5561_v51, %v4601_v49  ;;  %v4529_v59 = vld [vmem:[%s6456_s30 + $0x20] sm:$0xf] }
 0x126   : > { %3984 = vmatpush.bf16.msra.mxu2 %v4682_v34  ;;  %v4729_v54 = vld [vmem:[%s6456_s30 + $0x1b0] sm:$0xf]  ;;  %v5593_v55 = vld [vmem:[%s6456_s30 + $0x1b4] sm:$0xf0]  ;;  %v4666_v58 = vor.u32 %v5577_v53, %v4665_v52  ;;  %v5543_v60 = vld [vmem:[%s6456_s30 + $0x24] sm:$0xf0] }
 0x127   : > { %3997 = vmatpush.bf16.msra.mxu3 %v4746_v38  ;;  %v4593_v61 = vld [vmem:[%s6456_s30 + $0xa0] sm:$0xf]  ;;  %v4730_v62 = vor.u32 %v5593_v55, %v4729_v54  ;;  %v5559_v63 = vld [vmem:[%s6456_s30 + $0xa4] sm:$0xf0]  ;;  %v4530_v4 = vor.u32 %v5543_v60, %v4529_v59  ;;  %v4521_v7 = vld [vmem:[%s6456_s30 + $0x10] sm:$0xf] }
 0x128   : > { %3959 = vmatpush.bf16.msra.mxu0 %v4546_v44  ;;  %v4657_v0 = vld [vmem:[%s6456_s30 + $0x120] sm:$0xf]  ;;  %v5575_v1 = vld [vmem:[%s6456_s30 + $0x124] sm:$0xf0]  ;;  %v4594_v5 = vor.u32 %v5559_v63, %v4593_v61  ;;  %v5541_v8 = vld [vmem:[%s6456_s30 + $0x14] sm:$0xf0] }
 0x129   : > { %3972 = vmatpush.bf16.msra.mxu1 %v4610_v45  ;;  %v4721_v2 = vld [vmem:[%s6456_s30 + $0x1a0] sm:$0xf]  ;;  %v5591_v3 = vld [vmem:[%s6456_s30 + $0x1a4] sm:$0xf0]  ;;  %v4658_v6 = vor.u32 %v5575_v1, %v4657_v0  ;;  %v4585_v9 = vld [vmem:[%s6456_s30 + $0x90] sm:$0xf]  ;;  %v4522_v16 = vor.u32 %v5541_v8, %v4521_v7 }
 0x12a   : > { %3985 = vmatpush.bf16.msra.mxu2 %v4674_v46  ;;  %v4722_v10 = vor.u32 %v5591_v3, %v4721_v2  ;;  %v5557_v11 = vld [vmem:[%s6456_s30 + $0x94] sm:$0xf0]  ;;  %v4649_v12 = vld [vmem:[%s6456_s30 + $0x110] sm:$0xf]  ;;  %v4513_v17 = vld [vmem:[%s6456_s30] sm:$0xf] }
 0x12b   : > { %3998 = vmatpush.bf16.msra.mxu3 %v4738_v50  ;;  %v5573_v13 = vld [vmem:[%s6456_s30 + $0x114] sm:$0xf0]  ;;  %v4713_v14 = vld [vmem:[%s6456_s30 + $0x190] sm:$0xf]  ;;  %v5539_v18 = vld [vmem:[%s6456_s30 + $0x4] sm:$0xf0]  ;;  %v4586_v19 = vor.u32 %v5557_v11, %v4585_v9 }
 0x12c   : > { %3960 = vmatpush.bf16.msra.mxu0 %v4538_v56  ;;  %v5589_v15 = vld [vmem:[%s6456_s30 + $0x194] sm:$0xf0]  ;;  %v4650_v20 = vor.u32 %v5573_v13, %v4649_v12  ;;  %v4577_v21 = vld [vmem:[%s6456_s30 + $0x80] sm:$0xf]  ;;  %v5555_v22 = vld [vmem:[%s6456_s30 + $0x84] sm:$0xf0]  ;;  %v4514_v31 = vor.u32 %v5539_v18, %v4513_v17 }
 0x12d   : > { %3973 = vmatpush.bf16.msra.mxu1 %v4602_v57  ;;  %v4641_v23 = vld [vmem:[%s6456_s30 + $0x100] sm:$0xf]  ;;  %v4714_v24 = vor.u32 %v5589_v15, %v4713_v14  ;;  %v5571_v25 = vld [vmem:[%s6456_s30 + $0x104] sm:$0xf0]  ;;  %v4825_v28 = vld [vmem:[%s6456_s30 + $0x270] sm:$0xf]  ;;  %v4578_v35 = vor.u32 %v5555_v22, %v4577_v21 }
 0x12e   : > { %3986 = vmatpush.bf16.msra.mxu2 %v4666_v58  ;;  %v4705_v26 = vld [vmem:[%s6456_s30 + $0x180] sm:$0xf]  ;;  %v5587_v27 = vld [vmem:[%s6456_s30 + $0x184] sm:$0xf0]  ;;  %v5617_v29 = vld [vmem:[%s6456_s30 + $0x274] sm:$0xf0]  ;;  %v4642_v36 = vor.u32 %v5571_v25, %v4641_v23 }
 0x12f   : > { %3999 = vmatpush.bf16.msra.mxu3 %v4730_v62  ;;  %v4889_v30 = vld [vmem:[%s6456_s30 + $0x2f0] sm:$0xf]  ;;  %v5633_v32 = vld [vmem:[%s6456_s30 + $0x2f4] sm:$0xf0]  ;;  %v4706_v39 = vor.u32 %v5587_v27, %v4705_v26  ;;  %v4826_v40 = vor.u32 %v5617_v29, %v4825_v28  ;;  %v4817_v43 = vld [vmem:[%s6456_s30 + $0x260] sm:$0xf] }
 0x130   : > { %3961 = vmatpush.bf16.msra.mxu0 %v4530_v4  ;;  %v4953_v33 = vld [vmem:[%s6456_s30 + $0x370] sm:$0xf]  ;;  %v5649_v34 = vld [vmem:[%s6456_s30 + $0x374] sm:$0xf0]  ;;  %v4890_v41 = vor.u32 %v5633_v32, %v4889_v30  ;;  %v5615_v44 = vld [vmem:[%s6456_s30 + $0x264] sm:$0xf0] }
 0x131   : > { %3974 = vmatpush.bf16.msra.mxu1 %v4594_v5  ;;  %v5017_v37 = vld [vmem:[%s6456_s30 + $0x3f0] sm:$0xf]  ;;  %v5665_v38 = vld [vmem:[%s6456_s30 + $0x3f4] sm:$0xf0]  ;;  %v4954_v42 = vor.u32 %v5649_v34, %v4953_v33  ;;  %v4881_v45 = vld [vmem:[%s6456_s30 + $0x2e0] sm:$0xf]  ;;  %v4818_v52 = vor.u32 %v5615_v44, %v4817_v43 }
 0x132   : > { %3987 = vmatpush.bf16.msra.mxu2 %v4658_v6  ;;  %v5018_v46 = vor.u32 %v5665_v38, %v5017_v37  ;;  %v5631_v47 = vld [vmem:[%s6456_s30 + $0x2e4] sm:$0xf0]  ;;  %v4945_v48 = vld [vmem:[%s6456_s30 + $0x360] sm:$0xf]  ;;  %v4809_v53 = vld [vmem:[%s6456_s30 + $0x250] sm:$0xf] }
 0x133   : > { %4000 = vmatpush.bf16.msra.mxu3 %v4722_v10  ;;  %v5647_v49 = vld [vmem:[%s6456_s30 + $0x364] sm:$0xf0]  ;;  %v5009_v50 = vld [vmem:[%s6456_s30 + $0x3e0] sm:$0xf]  ;;  %v4882_v54 = vor.u32 %v5631_v47, %v4881_v45  ;;  %v5613_v56 = vld [vmem:[%s6456_s30 + $0x254] sm:$0xf0] }
 0x134   : > { %3962 = vmatpush.bf16.msra.mxu0 %v4522_v16  ;;  %v5663_v51 = vld [vmem:[%s6456_s30 + $0x3e4] sm:$0xf0]  ;;  %v4946_v55 = vor.u32 %v5647_v49, %v4945_v48  ;;  %v4873_v57 = vld [vmem:[%s6456_s30 + $0x2d0] sm:$0xf]  ;;  %v5629_v60 = vld [vmem:[%s6456_s30 + $0x2d4] sm:$0xf0]  ;;  %v4810_v3 = vor.u32 %v5613_v56, %v4809_v53 }
 0x135   : > { %3975 = vmatpush.bf16.msra.mxu1 %v4586_v19  ;;  %v2357_v58 = vld [vmem:[%s7120_s0 + $0x8] sm:$0xff]  ;;  %v5010_v59 = vor.u32 %v5663_v51, %v5009_v50  ;;  %v4937_v61 = vld [vmem:[%s6456_s30 + $0x350] sm:$0xf]  ;;  %v5645_v62 = vld [vmem:[%s6456_s30 + $0x354] sm:$0xf0]  ;;  %v4874_v7 = vor.u32 %v5629_v60, %v4873_v57  ;;  %s7131_s26 = smov (!%p2338_p9, %s4508_s26), 3 }
 0x136   : > { %3988 = vmatpush.bf16.msra.mxu2 %v4650_v20  ;;  %v2630_v63 = vunpack.c.l.b16 %v2357_v58  ;;  %v2631_v0 = vunpack.c.h.b16 %v2357_v58  ;;  %v5001_v1 = vld [vmem:[%s6456_s30 + $0x3d0] sm:$0xf]  ;;  %v5661_v2 = vld [vmem:[%s6456_s30 + $0x3d4] sm:$0xf0]  ;;  %v2356_v5 = vld [vmem:[%s7120_s0] sm:$0xff]  ;;  %v4938_v8 = vor.u32 %v5645_v62, %v4937_v61  ;;  %s2340_s28 = scalar_lea.vmem %s7122_s2, %s7131_s26  ;;  %s4510_s29 = sshll.u32 %s7131_s26, 3 }
 0x137   : > { %4001 = vmatpush.bf16.msra.mxu3 %v4714_v24  ;;  %v4801_v9 = vld [vmem:[%s6456_s30 + $0x240] sm:$0xf]  ;;  %v5611_v10 = vld [vmem:[%s6456_s30 + $0x244] sm:$0xf0]  ;;  %v2628_v12 = vunpack.c.l.b16 %v2356_v5  ;;  %v2629_v13 = vunpack.c.h.b16 %v2356_v5  ;;  %v5002_v14 = vor.u32 %v5661_v2, %v5001_v1  ;;  %v4793_v25 = vld [vmem:[%s6456_s30 + $0x230] sm:$0xf]  ;;  %s7101_s5 = scalar_lea.vmem %s7123_s3, %s4510_s29 }
 0x138   : > { %3963 = vmatpush.bf16.msra.mxu0 %v4514_v31  ;;  %v6549_v4 = vpack.c.b16 %v2630_v63, %v2630_v63  ;;  %v6554_v6 = vpack.c.b16 %v2631_v0, %v2631_v0  ;;  %v4865_v11 = vld [vmem:[%s6456_s30 + $0x2c0] sm:$0xf]  ;;  %v5627_v15 = vld [vmem:[%s6456_s30 + $0x2c4] sm:$0xf0]  ;;  %v4802_v22 = vor.u32 %v5611_v10, %v4801_v9  ;;  %v5609_v26 = vld [vmem:[%s6456_s30 + $0x234] sm:$0xf0] }
 0x139   : > { %3976 = vmatpush.bf16.msra.mxu1 %v4578_v35  ;;  %v4929_v16 = vld [vmem:[%s6456_s30 + $0x340] sm:$0xf]  ;;  %v5643_v17 = vld [vmem:[%s6456_s30 + $0x344] sm:$0xf0]  ;;  %v6565_v20 = vpack.c.b16 %v2628_v12, %v2628_v12  ;;  %v6568_v21 = vpack.c.b16 %v2629_v13, %v2629_v13  ;;  %v4866_v23 = vor.u32 %v5627_v15, %v4865_v11  ;;  %v4857_v27 = vld [vmem:[%s6456_s30 + $0x2b0] sm:$0xf]  ;;  %v4794_v34 = vor.u32 %v5609_v26, %v4793_v25 }
 0x13a   : > { %3989 = vmatpush.bf16.msra.mxu2 %v4642_v36  ;;  %v4993_v18 = vld [vmem:[%s6456_s30 + $0x3c0] sm:$0xf]  ;;  %v5659_v19 = vld [vmem:[%s6456_s30 + $0x3c4] sm:$0xf0]  ;;  %v4930_v24 = vor.u32 %v5643_v17, %v4929_v16  ;;  %v5625_v29 = vld [vmem:[%s6456_s30 + $0x2b4] sm:$0xf0] }
 0x13b   : > { %4002 = vmatpush.bf16.msra.mxu3 %v4706_v39  ;;  %v4994_v28 = vor.u32 %v5659_v19, %v4993_v18  ;;  %v4921_v30 = vld [vmem:[%s6456_s30 + $0x330] sm:$0xf]  ;;  %v5641_v31 = vld [vmem:[%s6456_s30 + $0x334] sm:$0xf0]  ;;  %3964 = vmatmul.bf16.vlgmr.msra.gmra.mxu0 %v6565_v20  ;;  %v4858_v35 = vor.u32 %v5625_v29, %v4857_v27  ;;  %v4785_v37 = vld [vmem:[%s6456_s30 + $0x220] sm:$0xf] }
 0x13c   : > { %4008 = vmatpush.bf16.msrb.mxu0 %v4826_v40  ;;  %v4985_v32 = vld [vmem:[%s6456_s30 + $0x3b0] sm:$0xf]  ;;  %v5657_v33 = vld [vmem:[%s6456_s30 + $0x3b4] sm:$0xf0]  ;;  %3977 = vmatmul.bf16.vlgmr.msra.gmra.mxu1 %v6568_v21  ;;  %v4922_v36 = vor.u32 %v5641_v31, %v4921_v30  ;;  %v5607_v38 = vld [vmem:[%s6456_s30 + $0x224] sm:$0xf0] }
 0x13d   : > { %4021 = vmatpush.bf16.msrb.mxu1 %v4890_v41  ;;  %3990 = vmatmul.bf16.vlgmr.msra.gmra.mxu2 %v6549_v4  ;;  %v4849_v39 = vld [vmem:[%s6456_s30 + $0x2a0] sm:$0xf]  ;;  %v4986_v40 = vor.u32 %v5657_v33, %v4985_v32  ;;  %v5623_v41 = vld [vmem:[%s6456_s30 + $0x2a4] sm:$0xf0]  ;;  %v4777_v49 = vld [vmem:[%s6456_s30 + $0x210] sm:$0xf] }
 0x13e   : > { %4034 = vmatpush.bf16.msrb.mxu2 %v4954_v42  ;;  %4003 = vmatmul.bf16.vlgmr.msra.gmra.mxu3 %v6554_v6  ;;  %v4913_v42 = vld [vmem:[%s6456_s30 + $0x320] sm:$0xf]  ;;  %v5639_v43 = vld [vmem:[%s6456_s30 + $0x324] sm:$0xf0]  ;;  %v4850_v47 = vor.u32 %v5623_v41, %v4849_v39  ;;  %v5605_v50 = vld [vmem:[%s6456_s30 + $0x214] sm:$0xf0] }
 0x13f   : > { %4047 = vmatpush.bf16.msrb.mxu3 %v5018_v46  ;;  %v4977_v44 = vld [vmem:[%s6456_s30 + $0x3a0] sm:$0xf]  ;;  %v5655_v45 = vld [vmem:[%s6456_s30 + $0x3a4] sm:$0xf0]  ;;  %v4786_v46 = vor.u32 %v5607_v38, %v4785_v37  ;;  %v4914_v48 = vor.u32 %v5639_v43, %v4913_v42  ;;  %v4841_v51 = vld [vmem:[%s6456_s30 + $0x290] sm:$0xf] }
 0x140   : > { %4009 = vmatpush.bf16.msrb.mxu0 %v4818_v52  ;;  %v4978_v52 = vor.u32 %v5655_v45, %v4977_v44  ;;  %v5621_v53 = vld [vmem:[%s6456_s30 + $0x294] sm:$0xf0]  ;;  %v4969_v56 = vld [vmem:[%s6456_s30 + $0x390] sm:$0xf]  ;;  %v4769_v58 = vld [vmem:[%s6456_s30 + $0x200] sm:$0xf] }
 0x141   : > { %4022 = vmatpush.bf16.msrb.mxu1 %v4882_v54  ;;  %v4905_v54 = vld [vmem:[%s6456_s30 + $0x310] sm:$0xf]  ;;  %v5653_v57 = vld [vmem:[%s6456_s30 + $0x394] sm:$0xf0]  ;;  %v5603_v60 = vld [vmem:[%s6456_s30 + $0x204] sm:$0xf0]  ;;  %v4842_v63 = vor.u32 %v5621_v53, %v4841_v51 }
 0x142   : > { %4035 = vmatpush.bf16.msrb.mxu2 %v4946_v55  ;;  %v5637_v55 = vld [vmem:[%s6456_s30 + $0x314] sm:$0xf0]  ;;  %v4833_v61 = vld [vmem:[%s6456_s30 + $0x280] sm:$0xf]  ;;  %v5619_v62 = vld [vmem:[%s6456_s30 + $0x284] sm:$0xf0]  ;;  %v4970_v5 = vor.u32 %v5653_v57, %v4969_v56  ;;  %v4770_v13 = vor.u32 %v5603_v60, %v4769_v58 }
 0x143   : > { %4048 = vmatpush.bf16.msrb.mxu3 %v5010_v59  ;;  %v4778_v59 = vor.u32 %v5605_v50, %v4777_v49  ;;  %v4906_v0 = vor.u32 %v5637_v55, %v4905_v54  ;;  %v4897_v1 = vld [vmem:[%s6456_s30 + $0x300] sm:$0xf]  ;;  %v5635_v2 = vld [vmem:[%s6456_s30 + $0x304] sm:$0xf0]  ;;  %v2358_v9 = vld [vmem:[%s7120_s0 + $0x10] sm:$0xff]  ;;  %v4834_v18 = vor.u32 %v5619_v62, %v4833_v61 }
 0x144   : > { %4010 = vmatpush.bf16.msrb.mxu0 %v4810_v3  ;;  %v2359_v3 = vld [vmem:[%s7120_s0 + $0x18] sm:$0xff]  ;;  %v5081_v10 = vld [vmem:[%s6456_s30 + $0x470] sm:$0xf]  ;;  %v4898_v19 = vor.u32 %v5635_v2, %v4897_v1  ;;  %v5073_v31 = vld [vmem:[%s6456_s30 + $0x460] sm:$0xf] }
 0x145   : > { %4023 = vmatpush.bf16.msrb.mxu1 %v4874_v7  ;;  %v4961_v7 = vld [vmem:[%s6456_s30 + $0x380] sm:$0xf]  ;;  %v5681_v11 = vld [vmem:[%s6456_s30 + $0x474] sm:$0xf0]  ;;  %v5145_v12 = vld [vmem:[%s6456_s30 + $0x4f0] sm:$0xf]  ;;  %v2634_v17 = vunpack.c.l.b16 %v2359_v3  ;;  %v2635_v25 = vunpack.c.h.b16 %v2359_v3 }
 0x146   : > { %4036 = vmatpush.bf16.msrb.mxu2 %v4938_v8  ;;  %v5651_v8 = vld [vmem:[%s6456_s30 + $0x384] sm:$0xf0]  ;;  %v5209_v15 = vld [vmem:[%s6456_s30 + $0x570] sm:$0xf]  ;;  %v5713_v16 = vld [vmem:[%s6456_s30 + $0x574] sm:$0xf0]  ;;  %v5082_v27 = vor.u32 %v5681_v11, %v5081_v10 }
 0x147   : > { %4049 = vmatpush.bf16.msrb.mxu3 %v5002_v14  ;;  %v5697_v14 = vld [vmem:[%s6456_s30 + $0x4f4] sm:$0xf0]  ;;  %v4962_v26 = vor.u32 %v5651_v8, %v4961_v7  ;;  %v5210_v30 = vor.u32 %v5713_v16, %v5209_v15  ;;  %v5679_v32 = vld [vmem:[%s6456_s30 + $0x464] sm:$0xf0]  ;;  %v5137_v33 = vld [vmem:[%s6456_s30 + $0x4e0] sm:$0xf]  ;;  %v6624_v38 = vpack.c.b16 %v2634_v17, %v2634_v17  ;;  %v6630_v42 = vpack.c.b16 %v2635_v25, %v2635_v25 }
 0x148   : > { %4011 = vmatpush.bf16.msrb.mxu0 %v4802_v22  ;;  %v5273_v22 = vld [vmem:[%s6456_s30 + $0x5f0] sm:$0xf]  ;;  %v5146_v29 = vor.u32 %v5697_v14, %v5145_v12  ;;  %v5711_v37 = vld [vmem:[%s6456_s30 + $0x564] sm:$0xf0]  ;;  %v5265_v39 = vld [vmem:[%s6456_s30 + $0x5e0] sm:$0xf]  ;;  %v5074_v43 = vor.u32 %v5679_v32, %v5073_v31 }
 0x149   : > { %4024 = vmatpush.bf16.msrb.mxu1 %v4866_v23  ;;  %v5729_v23 = vld [vmem:[%s6456_s30 + $0x5f4] sm:$0xf0]  ;;  %v5129_v49 = vld [vmem:[%s6456_s30 + $0x4d0] sm:$0xf]  ;;  %v5675_v60 = vld [vmem:[%s6456_s30 + $0x444] sm:$0xf0] }
 0x14a   : > { %4037 = vmatpush.bf16.msrb.mxu2 %v4930_v24  ;;  %v2632_v24 = vunpack.c.l.b16 %v2358_v9  ;;  %v5693_v51 = vld [vmem:[%s6456_s30 + $0x4d4] sm:$0xf0]  ;;  %v5257_v54 = vld [vmem:[%s6456_s30 + $0x5d0] sm:$0xf]  ;;  %v5121_v61 = vld [vmem:[%s6456_s30 + $0x4c0] sm:$0xf] }
 0x14b   : > { %4050 = vmatpush.bf16.msrb.mxu3 %v4994_v28  ;;  %v2633_v28 = vunpack.c.h.b16 %v2358_v9  ;;  %v5709_v53 = vld [vmem:[%s6456_s30 + $0x554] sm:$0xf0]  ;;  %v5130_v57 = vor.u32 %v5693_v51, %v5129_v49  ;;  %v5707_v1 = vld [vmem:[%s6456_s30 + $0x544] sm:$0xf0]  ;;  %v5249_v2 = vld [vmem:[%s6456_s30 + $0x5c0] sm:$0xf] }
 0x14c   : > { %4012 = vmatpush.bf16.msrb.mxu0 %v4794_v34  ;;  %v5274_v34 = vor.u32 %v5729_v23, %v5273_v22  ;;  %v6628_v41 = vpack.c.b16 %v2632_v24, %v2632_v24  ;;  %v5725_v55 = vld [vmem:[%s6456_s30 + $0x5d4] sm:$0xf0]  ;;  %v5723_v3 = vld [vmem:[%s6456_s30 + $0x5c4] sm:$0xf0]  ;;  %v5049_v9 = vld [vmem:[%s6456_s30 + $0x430] sm:$0xf] }
 0x14d   : > { %4025 = vmatpush.bf16.msrb.mxu1 %v4858_v35  ;;  %v5695_v35 = vld [vmem:[%s6456_s30 + $0x4e4] sm:$0xf0]  ;;  %v6632_v44 = vpack.c.b16 %v2633_v28, %v2633_v28  ;;  %v5258_v62 = vor.u32 %v5725_v55, %v5257_v54  ;;  %v5673_v10 = vld [vmem:[%s6456_s30 + $0x434] sm:$0xf0]  ;;  %v5113_v11 = vld [vmem:[%s6456_s30 + $0x4b0] sm:$0xf]  ;;  %v5250_v12 = vor.u32 %v5723_v3, %v5249_v2 }
 0x14e   : > { %4038 = vmatpush.bf16.msrb.mxu2 %v4922_v36  ;;  %v5201_v36 = vld [vmem:[%s6456_s30 + $0x560] sm:$0xf]  ;;  %v5138_v45 = vor.u32 %v5695_v35, %v5137_v33  ;;  %v5177_v14 = vld [vmem:[%s6456_s30 + $0x530] sm:$0xf]  ;;  %v5705_v15 = vld [vmem:[%s6456_s30 + $0x534] sm:$0xf0] }
 0x14f   : > { %4051 = vmatpush.bf16.msrb.mxu3 %v4986_v40  ;;  %v5727_v40 = vld [vmem:[%s6456_s30 + $0x5e4] sm:$0xf0]  ;;  %v5241_v16 = vld [vmem:[%s6456_s30 + $0x5b0] sm:$0xf]  ;;  %v5721_v17 = vld [vmem:[%s6456_s30 + $0x5b4] sm:$0xf0]  ;;  %v5178_v22 = vor.u32 %v5705_v15, %v5177_v14 }
 0x150   : > { %4013 = vmatpush.bf16.msrb.mxu0 %v4786_v46  ;;  %v5202_v46 = vor.u32 %v5711_v37, %v5201_v36  ;;  %v5266_v50 = vor.u32 %v5727_v40, %v5265_v39  ;;  %v5041_v23 = vld [vmem:[%s6456_s30 + $0x420] sm:$0xf]  ;;  %v5671_v24 = vld [vmem:[%s6456_s30 + $0x424] sm:$0xf0]  ;;  %v5033_v35 = vld [vmem:[%s6456_s30 + $0x410] sm:$0xf] }
 0x151   : > { %4026 = vmatpush.bf16.msrb.mxu1 %v4850_v47  ;;  %v5065_v47 = vld [vmem:[%s6456_s30 + $0x450] sm:$0xf]  ;;  %v5105_v25 = vld [vmem:[%s6456_s30 + $0x4a0] sm:$0xf]  ;;  %v5719_v31 = vld [vmem:[%s6456_s30 + $0x5a4] sm:$0xf0]  ;;  %v5042_v32 = vor.u32 %v5671_v24, %v5041_v23 }
 0x152   : > { %4039 = vmatpush.bf16.msrb.mxu2 %v4914_v48  ;;  %v5677_v48 = vld [vmem:[%s6456_s30 + $0x454] sm:$0xf0]  ;;  %v5169_v28 = vld [vmem:[%s6456_s30 + $0x520] sm:$0xf]  ;;  %v5097_v37 = vld [vmem:[%s6456_s30 + $0x490] sm:$0xf] }
 0x153   : > { %4052 = vmatpush.bf16.msrb.mxu3 %v4978_v52  ;;  %v5193_v52 = vld [vmem:[%s6456_s30 + $0x550] sm:$0xf]  ;;  %v5066_v56 = vor.u32 %v5677_v48, %v5065_v47  ;;  %v5669_v36 = vld [vmem:[%s6456_s30 + $0x414] sm:$0xf0]  ;;  %v5025_v48 = vld [vmem:[%s6456_s30 + $0x400] sm:$0xf] }
 0x154   : > { %4014 = vmatpush.bf16.msrb.mxu0 %v4778_v59  ;;  %v5194_v58 = vor.u32 %v5709_v53, %v5193_v52  ;;  %v5057_v59 = vld [vmem:[%s6456_s30 + $0x440] sm:$0xf]  ;;  %v5685_v40 = vld [vmem:[%s6456_s30 + $0x494] sm:$0xf0]  ;;  %v5034_v49 = vor.u32 %v5669_v36, %v5033_v35  ;;  %v5683_v52 = vld [vmem:[%s6456_s30 + $0x484] sm:$0xf0] }
 0x155   : > { %4027 = vmatpush.bf16.msrb.mxu1 %v4842_v63  ;;  %v5691_v63 = vld [vmem:[%s6456_s30 + $0x4c4] sm:$0xf0]  ;;  %v5717_v47 = vld [vmem:[%s6456_s30 + $0x594] sm:$0xf0]  ;;  %v5089_v51 = vld [vmem:[%s6456_s30 + $0x480] sm:$0xf]  ;;  %v5098_v53 = vor.u32 %v5685_v40, %v5097_v37 }
 0x156   : > { %4040 = vmatpush.bf16.msrb.mxu2 %v4906_v0  ;;  %v5185_v0 = vld [vmem:[%s6456_s30 + $0x540] sm:$0xf]  ;;  %v5122_v7 = vor.u32 %v5691_v63, %v5121_v61  ;;  %v2361_v61 = vld [vmem:[%s7120_s0 + $0x28] sm:$0xff]  ;;  %v5745_v63 = vld [vmem:[%s6456_s30 + $0x674] sm:$0xf0] }
 0x157   : > { %4053 = vmatpush.bf16.msrb.mxu3 %v4970_v5  ;;  %v5058_v5 = vor.u32 %v5675_v60, %v5057_v59  ;;  %v5186_v8 = vor.u32 %v5707_v1, %v5185_v0  ;;  %v5153_v55 = vld [vmem:[%s6456_s30 + $0x500] sm:$0xf]  ;;  %v5715_v60 = vld [vmem:[%s6456_s30 + $0x584] sm:$0xf0]  ;;  %v5401_v0 = vld [vmem:[%s6456_s30 + $0x6f0] sm:$0xf] }
 0x158   : > { %4015 = vmatpush.bf16.msrb.mxu0 %v4770_v13  ;;  %v5689_v13 = vld [vmem:[%s6456_s30 + $0x4b4] sm:$0xf0]  ;;  %v5217_v59 = vld [vmem:[%s6456_s30 + $0x580] sm:$0xf]  ;;  %v5465_v3 = vld [vmem:[%s6456_s30 + $0x770] sm:$0xf] }
 0x159   : > { %4028 = vmatpush.bf16.msrb.mxu1 %v4834_v18  ;;  %v5050_v18 = vor.u32 %v5673_v10, %v5049_v9  ;;  %v5761_v2 = vld [vmem:[%s6456_s30 + $0x6f4] sm:$0xf0]  ;;  %v5529_v10 = vld [vmem:[%s6456_s30 + $0x7f0] sm:$0xf]  ;;  %v5218_v14 = vor.u32 %v5715_v60, %v5217_v59  ;;  %v5393_v23 = vld [vmem:[%s6456_s30 + $0x6e0] sm:$0xf] }
 0x15a   : > { %4041 = vmatpush.bf16.msrb.mxu2 %v4898_v19  ;;  %v5114_v19 = vor.u32 %v5689_v13, %v5113_v11  ;;  %v5793_v11 = vld [vmem:[%s6456_s30 + $0x7f4] sm:$0xf0]  ;;  %v5321_v37 = vld [vmem:[%s6456_s30 + $0x650] sm:$0xf]  ;;  %v5771_v59 = vld [vmem:[%s6456_s30 + $0x744] sm:$0xf0] }
 0x15b   : > { %4054 = vmatpush.bf16.msrb.mxu3 %v4962_v26  ;;  %4016 = vmatmul.bf16.vlgmr.msrb.gmra.mxu0 %v6628_v41  ;;  %v5242_v26 = vor.u32 %v5721_v17, %v5241_v16  ;;  %v2639_v16 = vunpack.c.h.b16 %v2361_v61  ;;  %v5402_v17 = vor.u32 %v5761_v2, %v5401_v0  ;;  %v5530_v24 = vor.u32 %v5793_v11, %v5529_v10  ;;  %v5385_v40 = vld [vmem:[%s6456_s30 + $0x6d0] sm:$0xf]  ;;  %v5505_v60 = vld [vmem:[%s6456_s30 + $0x7c0] sm:$0xf]  ;;  %v5737_v2 = vld [vmem:[%s6456_s30 + $0x634] sm:$0xf0] }
 0x15c   : > { %4060 = vmatpush.bf16.msra.mxu0 %v5082_v27  ;;  %4029 = vmatmul.bf16.vlgmr.msrb.gmra.mxu1 %v6632_v44  ;;  %v5687_v27 = vld [vmem:[%s6456_s30 + $0x4a4] sm:$0xf0]  ;;  %v5497_v10 = vld [vmem:[%s6456_s30 + $0x7b0] sm:$0xf]  ;;  %v5785_v11 = vld [vmem:[%s6456_s30 + $0x7b4] sm:$0xf0] }
 0x15d   : > { %4073 = vmatpush.bf16.msra.mxu1 %v5146_v29  ;;  %4042 = vmatmul.bf16.vlgmr.msrb.gmra.mxu2 %v6624_v38  ;;  %v5703_v29 = vld [vmem:[%s6456_s30 + $0x524] sm:$0xf0]  ;;  %v5106_v33 = vor.u32 %v5687_v27, %v5105_v25  ;;  %v5457_v27 = vld [vmem:[%s6456_s30 + $0x760] sm:$0xf] }
 0x15e   : > { %4086 = vmatpush.bf16.msra.mxu2 %v5210_v30  ;;  %4055 = vmatmul.bf16.vlgmr.msrb.gmra.mxu3 %v6630_v42  ;;  %v5233_v30 = vld [vmem:[%s6456_s30 + $0x5a0] sm:$0xf] }
 0x15f   : > { %4099 = vmatpush.bf16.msra.mxu3 %v5274_v34  ;;  %v5170_v34 = vor.u32 %v5703_v29, %v5169_v28  ;;  %v5234_v39 = vor.u32 %v5719_v31, %v5233_v30  ;;  %v5775_v28 = vld [vmem:[%s6456_s30 + $0x764] sm:$0xf0]  ;;  %v5521_v31 = vld [vmem:[%s6456_s30 + $0x7e0] sm:$0xf] }
 0x160   : > { %4061 = vmatpush.bf16.msra.mxu0 %v5074_v43  ;;  %v5161_v43 = vld [vmem:[%s6456_s30 + $0x510] sm:$0xf]  ;;  %v5458_v36 = vor.u32 %v5775_v28, %v5457_v27 }
 0x161   : > { %4074 = vmatpush.bf16.msra.mxu1 %v5138_v45  ;;  %v5701_v45 = vld [vmem:[%s6456_s30 + $0x514] sm:$0xf0] }
 0x162   : > { %4087 = vmatpush.bf16.msra.mxu2 %v5202_v46  ;;  %v5225_v46 = vld [vmem:[%s6456_s30 + $0x590] sm:$0xf]  ;;  %v5162_v54 = vor.u32 %v5701_v45, %v5161_v43  ;;  %v5757_v45 = vld [vmem:[%s6456_s30 + $0x6d4] sm:$0xf0] }
 0x163   : > { %4100 = vmatpush.bf16.msra.mxu3 %v5266_v50  ;;  %v5667_v50 = vld [vmem:[%s6456_s30 + $0x404] sm:$0xf0] }
 0x164   : > { %4062 = vmatpush.bf16.msra.mxu0 %v5066_v56  ;;  %v5699_v56 = vld [vmem:[%s6456_s30 + $0x504] sm:$0xf0]  ;;  %v5026_v1 = vor.u32 %v5667_v50, %v5025_v48  ;;  %v5513_v48 = vld [vmem:[%s6456_s30 + $0x7d0] sm:$0xf] }
 0x165   : > { %4075 = vmatpush.bf16.msra.mxu1 %v5130_v57  ;;  %v2360_v57 = vld [vmem:[%s7120_s0 + $0x20] sm:$0xff]  ;;  %v5154_v9 = vor.u32 %v5699_v56, %v5153_v55 }
 0x166   : > { %4088 = vmatpush.bf16.msra.mxu2 %v5194_v58  ;;  %v5226_v58 = vor.u32 %v5717_v47, %v5225_v46  ;;  %v2637_v13 = vunpack.c.h.b16 %v2360_v57  ;;  %v5449_v46 = vld [vmem:[%s6456_s30 + $0x750] sm:$0xf]  ;;  %v5773_v47 = vld [vmem:[%s6456_s30 + $0x754] sm:$0xf0]  ;;  %v5377_v55 = vld [vmem:[%s6456_s30 + $0x6c0] sm:$0xf] }
 0x167   : > { %4101 = vmatpush.bf16.msra.mxu3 %v5258_v62  ;;  %v5337_v62 = vld [vmem:[%s6456_s30 + $0x670] sm:$0xf] }
 0x168   : > { %4063 = vmatpush.bf16.msra.mxu0 %v5058_v5  ;;  %v5777_v5 = vld [vmem:[%s6456_s30 + $0x774] sm:$0xf0]  ;;  %v5338_v15 = vor.u32 %v5745_v63, %v5337_v62  ;;  %v6710_v30 = vpack.c.b16 %v2637_v13, %v2637_v13 }
 0x169   : > { %4076 = vmatpush.bf16.msra.mxu1 %v5122_v7  ;;  %v2636_v7 = vunpack.c.l.b16 %v2360_v57  ;;  %v5755_v57 = vld [vmem:[%s6456_s30 + $0x6c4] sm:$0xf0] }
 0x16a   : > { %4089 = vmatpush.bf16.msra.mxu2 %v5186_v8  ;;  %v5090_v8 = vor.u32 %v5683_v52, %v5089_v51  ;;  %v5386_v51 = vor.u32 %v5757_v45, %v5385_v40  ;;  %v5450_v52 = vor.u32 %v5773_v47, %v5449_v46  ;;  %v5378_v63 = vor.u32 %v5755_v57, %v5377_v55  ;;  %v5765_v40 = vld [vmem:[%s6456_s30 + $0x714] sm:$0xf0]  ;;  %v5281_v46 = vld [vmem:[%s6456_s30 + $0x600] sm:$0xf]  ;;  %v2362_v55 = vld [vmem:[%s7120_s0 + $0x30] sm:$0xff] }
 0x16b   : > { %4102 = vmatpush.bf16.msra.mxu3 %v5250_v12  ;;  %v2638_v12 = vunpack.c.l.b16 %v2361_v61  ;;  %v6703_v25 = vpack.c.b16 %v2636_v7, %v2636_v7  ;;  %v5787_v61 = vld [vmem:[%s6456_s30 + $0x7c4] sm:$0xf0]  ;;  %v5753_v7 = vld [vmem:[%s6456_s30 + $0x6b4] sm:$0xf0]  ;;  %v5473_v57 = vld [vmem:[%s6456_s30 + $0x780] sm:$0xf] }
 0x16c   : > { %4064 = vmatpush.bf16.msra.mxu0 %v5050_v18  ;;  %v5466_v18 = vor.u32 %v5777_v5, %v5465_v3  ;;  %v5369_v3 = vld [vmem:[%s6456_s30 + $0x6b0] sm:$0xf]  ;;  %v5506_v5 = vor.u32 %v5787_v61, %v5505_v60  ;;  %v5781_v45 = vld [vmem:[%s6456_s30 + $0x794] sm:$0xf0]  ;;  %v5552_v60 = vld [vmem:[%s6456_s30 + $0x74] sm:$0xf] }
 0x16d   : > { %4077 = vmatpush.bf16.msra.mxu1 %v5114_v19  ;;  %v5329_v19 = vld [vmem:[%s6456_s30 + $0x660] sm:$0xf]  ;;  %v6708_v29 = vpack.c.b16 %v2638_v12, %v2638_v12  ;;  %v5370_v13 = vor.u32 %v5753_v7, %v5369_v3  ;;  %v4571_v61 = vld [vmem:[%s6456_s30 + $0x78] sm:$0xf0]  ;;  %v2640_v3 = vunpack.c.l.b16 %v2362_v55 }
 0x16e   : > { %4090 = vmatpush.bf16.msra.mxu2 %v5178_v22  ;;  %v5743_v22 = vld [vmem:[%s6456_s30 + $0x664] sm:$0xf0] }
 0x16f   : > { %4103 = vmatpush.bf16.msra.mxu3 %v5242_v26  ;;  %v5759_v26 = vld [vmem:[%s6456_s30 + $0x6e4] sm:$0xf0] }
 0x170   : > { %4065 = vmatpush.bf16.msra.mxu0 %v5042_v32  ;;  %v5791_v32 = vld [vmem:[%s6456_s30 + $0x7e4] sm:$0xf0]  ;;  %v5394_v35 = vor.u32 %v5759_v26, %v5393_v23 }
 0x171   : > { %4078 = vmatpush.bf16.msra.mxu1 %v5106_v33  ;;  %v6714_v33 = vpack.c.b16 %v2639_v16, %v2639_v16  ;;  %v5522_v43 = vor.u32 %v5791_v32, %v5521_v31  ;;  %v5735_v16 = vld [vmem:[%s6456_s30 + $0x624] sm:$0xf0]  ;;  %v5289_v32 = vld [vmem:[%s6456_s30 + $0x610] sm:$0xf] }
 0x172   : > { %4091 = vmatpush.bf16.msra.mxu2 %v5170_v34  ;;  %v5330_v34 = vor.u32 %v5743_v22, %v5329_v19  ;;  %v5751_v19 = vld [vmem:[%s6456_s30 + $0x6a4] sm:$0xf0]  ;;  %v5425_v22 = vld [vmem:[%s6456_s30 + $0x720] sm:$0xf] }
 0x173   : > { %4104 = vmatpush.bf16.msra.mxu3 %v5234_v39  ;;  %v5741_v39 = vld [vmem:[%s6456_s30 + $0x654] sm:$0xf0]  ;;  %v5767_v23 = vld [vmem:[%s6456_s30 + $0x724] sm:$0xf0] }
 0x174   : > { %4066 = vmatpush.bf16.msra.mxu0 %v5034_v49  ;;  %v5789_v49 = vld [vmem:[%s6456_s30 + $0x7d4] sm:$0xf0]  ;;  %v5322_v50 = vor.u32 %v5741_v39, %v5321_v37  ;;  %v5783_v26 = vld [vmem:[%s6456_s30 + $0x7a4] sm:$0xf0]  ;;  %v5426_v31 = vor.u32 %v5767_v23, %v5425_v22  ;;  %v5417_v39 = vld [vmem:[%s6456_s30 + $0x710] sm:$0xf]  ;;  %v6785_v23 = vpack.c.b16 %v2640_v3, %v2640_v3 }
 0x175   : > { %4079 = vmatpush.bf16.msra.mxu1 %v5098_v53  ;;  %v5313_v53 = vld [vmem:[%s6456_s30 + $0x640] sm:$0xf]  ;;  %v5514_v56 = vor.u32 %v5789_v49, %v5513_v48  ;;  %v5749_v37 = vld [vmem:[%s6456_s30 + $0x694] sm:$0xf0]  ;;  %v5731_v48 = vld [vmem:[%s6456_s30 + $0x604] sm:$0xf0] }
 0x176   : > { %4092 = vmatpush.bf16.msra.mxu2 %v5162_v54  ;;  %v5739_v54 = vld [vmem:[%s6456_s30 + $0x644] sm:$0xf0]  ;;  %v5345_v49 = vld [vmem:[%s6456_s30 + $0x680] sm:$0xf]  ;;  %v5544_v3 = vld [vmem:[%s6456_s30 + $0x34] sm:$0xf] }
 0x177   : > { %4105 = vmatpush.bf16.msra.mxu3 %v5226_v58  ;;  %v5441_v58 = vld [vmem:[%s6456_s30 + $0x740] sm:$0xf]  ;;  %v5314_v62 = vor.u32 %v5739_v54, %v5313_v53  ;;  %v5763_v54 = vld [vmem:[%s6456_s30 + $0x704] sm:$0xf0] }
 0x178   : > { %4067 = vmatpush.bf16.msra.mxu0 %v5026_v1  ;;  %v5442_v0 = vor.u32 %v5771_v59, %v5441_v58  ;;  %v5305_v1 = vld [vmem:[%s6456_s30 + $0x630] sm:$0xf]  ;;  %v5409_v53 = vld [vmem:[%s6456_s30 + $0x700] sm:$0xf]  ;;  %v5779_v58 = vld [vmem:[%s6456_s30 + $0x784] sm:$0xf0] }
 0x179   : > { %4080 = vmatpush.bf16.msra.mxu1 %v5090_v8  ;;  %v5433_v8 = vld [vmem:[%s6456_s30 + $0x730] sm:$0xf]  ;;  %v5306_v12 = vor.u32 %v5737_v2, %v5305_v1  ;;  %v2363_v59 = vld [vmem:[%s7120_s0 + $0x38] sm:$0xff]  ;;  %v5584_v1 = vld [vmem:[%s6456_s30 + $0x174] sm:$0xf]  ;;  %v5410_v7 = vor.u32 %v5763_v54, %v5409_v53 }
 0x17a   : > { %4093 = vmatpush.bf16.msra.mxu2 %v5154_v9  ;;  %v5769_v9 = vld [vmem:[%s6456_s30 + $0x734] sm:$0xf0]  ;;  %v4699_v2 = vld [vmem:[%s6456_s30 + $0x178] sm:$0xf0] }
 0x17b   : > { %4106 = vmatpush.bf16.msra.mxu3 %v5218_v14  ;;  %4068 = vmatmul.bf16.vlgmr.msra.gmra.mxu0 %v6703_v25  ;;  %v5434_v14 = vor.u32 %v5769_v9, %v5433_v8  ;;  %v5600_v8 = vld [vmem:[%s6456_s30 + $0x1f4] sm:$0xf]  ;;  %v4763_v9 = vld [vmem:[%s6456_s30 + $0x1f8] sm:$0xf0] }
 0x17c   : > { %4112 = vmatpush.bf16.msrb.mxu0 %v5338_v15  ;;  %4081 = vmatmul.bf16.vlgmr.msra.gmra.mxu1 %v6710_v30  ;;  %v5297_v15 = vld [vmem:[%s6456_s30 + $0x620] sm:$0xf]  ;;  %v4766_v22 = vor.u32 %v5600_v8, %v4763_v9  ;;  %v4603_v9 = vld [vmem:[%s6456_s30 + $0xb8] sm:$0xf0] }
 0x17d   : > { %4125 = vmatpush.bf16.msrb.mxu1 %v5402_v17  ;;  %4094 = vmatmul.bf16.vlgmr.msra.gmra.mxu2 %v6708_v29  ;;  %v5361_v17 = vld [vmem:[%s6456_s30 + $0x6a0] sm:$0xf]  ;;  %v5298_v27 = vor.u32 %v5735_v16, %v5297_v15  ;;  %v4702_v16 = vor.u32 %v5584_v1, %v4699_v2 }
 0x17e   : > { %4138 = vmatpush.bf16.msrb.mxu2 %v5466_v18  ;;  %4107 = vmatmul.bf16.vlgmr.msra.gmra.mxu3 %v6714_v33  ;;  %v5498_v18 = vor.u32 %v5785_v11, %v5497_v10  ;;  %v5362_v28 = vor.u32 %v5751_v19, %v5361_v17  ;;  %v2642_v10 = vunpack.c.l.b16 %v2363_v59  ;;  %v2641_v11 = vunpack.c.h.b16 %v2362_v55  ;;  %v5550_v17 = vld [vmem:[%s6456_s30 + $0x64] sm:$0xf] }
 0x17f   : > { %4151 = vmatpush.bf16.msrb.mxu3 %v5530_v24  ;;  %v5489_v24 = vld [vmem:[%s6456_s30 + $0x7a0] sm:$0xf]  ;;  %v5566_v19 = vld [vmem:[%s6456_s30 + $0xe4] sm:$0xf] }
 0x180   : > { %4113 = vmatpush.bf16.msrb.mxu0 %v5330_v34  ;;  %v5733_v34 = vld [vmem:[%s6456_s30 + $0x614] sm:$0xf0]  ;;  %v5546_v55 = vld [vmem:[%s6456_s30 + $0x44] sm:$0xf] }
 0x181   : > { %4126 = vmatpush.bf16.msrb.mxu1 %v5394_v35  ;;  %v5353_v35 = vld [vmem:[%s6456_s30 + $0x690] sm:$0xf]  ;;  %v5290_v47 = vor.u32 %v5733_v34, %v5289_v32  ;;  %v5598_v32 = vld [vmem:[%s6456_s30 + $0x1e4] sm:$0xf]  ;;  %v4755_v34 = vld [vmem:[%s6456_s30 + $0x1e8] sm:$0xf0] }
 0x182   : > { %4139 = vmatpush.bf16.msrb.mxu2 %v5458_v36  ;;  %v5490_v36 = vor.u32 %v5783_v26, %v5489_v24  ;;  %v4627_v24 = vld [vmem:[%s6456_s30 + $0xe8] sm:$0xf0]  ;;  %v5582_v26 = vld [vmem:[%s6456_s30 + $0x164] sm:$0xf] }
 0x183   : > { %4152 = vmatpush.bf16.msrb.mxu3 %v5522_v43  ;;  %v5481_v43 = vld [vmem:[%s6456_s30 + $0x790] sm:$0xf] }
 0x184   : > { %4114 = vmatpush.bf16.msrb.mxu0 %v5322_v50  ;;  %v5747_v50 = vld [vmem:[%s6456_s30 + $0x684] sm:$0xf0] }
 0x185   : > { %4127 = vmatpush.bf16.msrb.mxu1 %v5386_v51  ;;  %v5354_v51 = vor.u32 %v5749_v37, %v5353_v35  ;;  %v4630_v37 = vor.u32 %v5566_v19, %v4627_v24  ;;  %v5558_v19 = vld [vmem:[%s6456_s30 + $0xa4] sm:$0xf]  ;;  %v4595_v24 = vld [vmem:[%s6456_s30 + $0xa8] sm:$0xf0] }
 0x186   : > { %4140 = vmatpush.bf16.msrb.mxu2 %v5450_v52  ;;  %v5418_v52 = vor.u32 %v5765_v40, %v5417_v39  ;;  %v5548_v40 = vld [vmem:[%s6456_s30 + $0x54] sm:$0xf] }
 0x187   : > { %4153 = vmatpush.bf16.msrb.mxu3 %v5514_v56  ;;  %v5482_v56 = vor.u32 %v5781_v45, %v5481_v43  ;;  %v4555_v43 = vld [vmem:[%s6456_s30 + $0x58] sm:$0xf0]  ;;  %v5564_v45 = vld [vmem:[%s6456_s30 + $0xd4] sm:$0xf] }
 0x188   : > { %4115 = vmatpush.bf16.msrb.mxu0 %v5314_v62  ;;  %v5568_v62 = vld [vmem:[%s6456_s30 + $0xf4] sm:$0xf] }
 0x189   : > { %4128 = vmatpush.bf16.msrb.mxu1 %v5378_v63  ;;  %v5282_v63 = vor.u32 %v5731_v48, %v5281_v46  ;;  %v4758_v46 = vor.u32 %v5598_v32, %v4755_v34  ;;  %v5580_v48 = vld [vmem:[%s6456_s30 + $0x154] sm:$0xf]  ;;  %v5590_v32 = vld [vmem:[%s6456_s30 + $0x1a4] sm:$0xf]  ;;  %v4723_v34 = vld [vmem:[%s6456_s30 + $0x1a8] sm:$0xf0] }
 0x18a   : > { %4141 = vmatpush.bf16.msrb.mxu2 %v5442_v0  ;;  %v4635_v0 = vld [vmem:[%s6456_s30 + $0xf8] sm:$0xf0] }
 0x18b   : > { %4154 = vmatpush.bf16.msrb.mxu3 %v5506_v5  ;;  %v5346_v5 = vor.u32 %v5747_v50, %v5345_v49  ;;  %v4638_v15 = vor.u32 %v5568_v62, %v4635_v0  ;;  %v4683_v49 = vld [vmem:[%s6456_s30 + $0x158] sm:$0xf0]  ;;  %v5596_v50 = vld [vmem:[%s6456_s30 + $0x1d4] sm:$0xf]  ;;  %v5594_v62 = vld [vmem:[%s6456_s30 + $0x1c4] sm:$0xf] }
 0x18c   : > { %4116 = vmatpush.bf16.msrb.mxu0 %v5306_v12  ;;  %v5474_v12 = vor.u32 %v5779_v58, %v5473_v57  ;;  %v4686_v54 = vor.u32 %v5580_v48, %v4683_v49  ;;  %v5562_v57 = vld [vmem:[%s6456_s30 + $0xc4] sm:$0xf]  ;;  %v5572_v48 = vld [vmem:[%s6456_s30 + $0x114] sm:$0xf]  ;;  %v4651_v49 = vld [vmem:[%s6456_s30 + $0x118] sm:$0xf0] }
 0x18d   : > { %4129 = vmatpush.bf16.msrb.mxu1 %v5370_v13  ;;  %v4574_v13 = vor.u32 %v5552_v60, %v4571_v61  ;;  %v5578_v60 = vld [vmem:[%s6456_s30 + $0x144] sm:$0xf]  ;;  %v4675_v61 = vld [vmem:[%s6456_s30 + $0x148] sm:$0xf0] }
 0x18e   : > { %4142 = vmatpush.bf16.msrb.mxu2 %v5434_v14  ;;  %v2643_v14 = vunpack.c.h.b16 %v2363_v59  ;;  %v4611_v59 = vld [vmem:[%s6456_s30 + $0xc8] sm:$0xf0]  ;;  %v4678_v2 = vor.u32 %v5578_v60, %v4675_v61 }
 0x18f   : > { %4155 = vmatpush.bf16.msrb.mxu3 %v5498_v18  ;;  %v4563_v18 = vld [vmem:[%s6456_s30 + $0x68] sm:$0xf0]  ;;  %v4614_v1 = vor.u32 %v5562_v57, %v4611_v59  ;;  %v5554_v57 = vld [vmem:[%s6456_s30 + $0x84] sm:$0xf] }
 0x190   : > { %4117 = vmatpush.bf16.msrb.mxu0 %v5298_v27  ;;  %v4691_v27 = vld [vmem:[%s6456_s30 + $0x168] sm:$0xf0]  ;;  %v6796_v35 = vpack.c.b16 %v2643_v14, %v2643_v14  ;;  %v5570_v59 = vld [vmem:[%s6456_s30 + $0x104] sm:$0xf] }
 0x191   : > { %4130 = vmatpush.bf16.msrb.mxu1 %v5362_v28  ;;  %v6790_v28 = vpack.c.b16 %v2642_v10, %v2642_v10  ;;  %v4694_v39 = vor.u32 %v5582_v26, %v4691_v27  ;;  %v5576_v10 = vld [vmem:[%s6456_s30 + $0x134] sm:$0xf]  ;;  %v5574_v26 = vld [vmem:[%s6456_s30 + $0x124] sm:$0xf]  ;;  %v4659_v27 = vld [vmem:[%s6456_s30 + $0x128] sm:$0xf0] }
 0x192   : > { %4143 = vmatpush.bf16.msrb.mxu2 %v5426_v31  ;;  %v6792_v31 = vpack.c.b16 %v2641_v11, %v2641_v11  ;;  %v4667_v11 = vld [vmem:[%s6456_s30 + $0x138] sm:$0xf0]  ;;  %v4643_v61 = vld [vmem:[%s6456_s30 + $0x108] sm:$0xf0] }
 0x193   : > { %4156 = vmatpush.bf16.msrb.mxu3 %v5490_v36  ;;  %v4566_v36 = vor.u32 %v5550_v17, %v4563_v18  ;;  %v5542_v17 = vld [vmem:[%s6456_s30 + $0x24] sm:$0xf]  ;;  %v4531_v18 = vld [vmem:[%s6456_s30 + $0x28] sm:$0xf0] }
 0x194   : > { %4118 = vmatpush.bf16.msrb.mxu0 %v5290_v47  ;;  %v4619_v47 = vld [vmem:[%s6456_s30 + $0xd8] sm:$0xf0] }
 0x195   : > { %4131 = vmatpush.bf16.msrb.mxu1 %v5354_v51  ;;  %v4747_v51 = vld [vmem:[%s6456_s30 + $0x1d8] sm:$0xf0]  ;;  %v4622_v53 = vor.u32 %v5564_v45, %v4619_v47  ;;  %v5556_v45 = vld [vmem:[%s6456_s30 + $0x94] sm:$0xf] }
 0x196   : > { %4144 = vmatpush.bf16.msrb.mxu2 %v5418_v52  ;;  %v4558_v52 = vor.u32 %v5548_v40, %v4555_v43  ;;  %v4750_v58 = vor.u32 %v5596_v50, %v4747_v51  ;;  %v5540_v40 = vld [vmem:[%s6456_s30 + $0x14] sm:$0xf]  ;;  %v4523_v43 = vld [vmem:[%s6456_s30 + $0x18] sm:$0xf0] }
 0x197   : > { %4157 = vmatpush.bf16.msrb.mxu3 %v5482_v56  ;;  %v4547_v56 = vld [vmem:[%s6456_s30 + $0x48] sm:$0xf0]  ;;  %v4587_v47 = vld [vmem:[%s6456_s30 + $0x98] sm:$0xf0]  ;;  %v5588_v50 = vld [vmem:[%s6456_s30 + $0x194] sm:$0xf] }
 0x198   : > { %4119 = vmatpush.bf16.msrb.mxu0 %v5282_v63  ;;  %v4739_v63 = vld [vmem:[%s6456_s30 + $0x1c8] sm:$0xf0]  ;;  %v4550_v0 = vor.u32 %v5546_v55, %v4547_v56  ;;  %v4715_v51 = vld [vmem:[%s6456_s30 + $0x198] sm:$0xf0]  ;;  %v4590_v55 = vor.u32 %v5556_v45, %v4587_v47  ;;  %v4654_v56 = vor.u32 %v5572_v48, %v4651_v49  ;;  %v5628_v45 = vld [vmem:[%s6456_s30 + $0x2d4] sm:$0xf] }
 0x199   : > { %4132 = vmatpush.bf16.msrb.mxu1 %v5346_v5  ;;  %v4539_v5 = vld [vmem:[%s6456_s30 + $0x38] sm:$0xf0]  ;;  %v4742_v8 = vor.u32 %v5594_v62, %v4739_v63  ;;  %v4718_v60 = vor.u32 %v5588_v50, %v4715_v51  ;;  %v5586_v62 = vld [vmem:[%s6456_s30 + $0x184] sm:$0xf]  ;;  %v4707_v63 = vld [vmem:[%s6456_s30 + $0x188] sm:$0xf0] }
 0x19a   : > { %4145 = vmatpush.bf16.msrb.mxu2 %v5410_v7  ;;  %v5560_v7 = vld [vmem:[%s6456_s30 + $0xb4] sm:$0xf]  ;;  %v4542_v14 = vor.u32 %v5544_v3, %v4539_v5  ;;  %v4891_v5 = vld [vmem:[%s6456_s30 + $0x2f8] sm:$0xf0] }
 0x19b   : > { %4158 = vmatpush.bf16.msrb.mxu3 %v5474_v12  ;;  %4120 = vmatmul.bf16.vlgmr.msrb.gmra.mxu0 %v6785_v23  ;;  %v5592_v12 = vld [vmem:[%s6456_s30 + $0x1b4] sm:$0xf]  ;;  %v4875_v47 = vld [vmem:[%s6456_s30 + $0x2d8] sm:$0xf0] }
 0x19c   : > { %4164 = vmatpush.bf16.msra.mxu0 %v4574_v13  ;;  %4133 = vmatmul.bf16.vlgmr.msrb.gmra.mxu1 %v6792_v31  ;;  %v4731_v13 = vld [vmem:[%s6456_s30 + $0x1b8] sm:$0xf0]  ;;  %v5644_v48 = vld [vmem:[%s6456_s30 + $0x354] sm:$0xf] }
 0x19d   : > { %4177 = vmatpush.bf16.msra.mxu1 %v4638_v15  ;;  %4146 = vmatmul.bf16.vlgmr.msrb.gmra.mxu2 %v6790_v28  ;;  %v4606_v15 = vor.u32 %v5560_v7, %v4603_v9  ;;  %v5648_v7 = vld [vmem:[%s6456_s30 + $0x374] sm:$0xf]  ;;  %v4939_v49 = vld [vmem:[%s6456_s30 + $0x358] sm:$0xf0] }
 0x19e   : > { %4190 = vmatpush.bf16.msra.mxu2 %v4702_v16  ;;  %4159 = vmatmul.bf16.vlgmr.msrb.gmra.mxu3 %v6796_v35  ;;  %v4670_v16 = vor.u32 %v5576_v10, %v4667_v11  ;;  %v4646_v10 = vor.u32 %v5570_v59, %v4643_v61  ;;  %v5664_v11 = vld [vmem:[%s6456_s30 + $0x3f4] sm:$0xf]  ;;  %v5003_v51 = vld [vmem:[%s6456_s30 + $0x3d8] sm:$0xf0]  ;;  %v5658_v59 = vld [vmem:[%s6456_s30 + $0x3c4] sm:$0xf] }
 0x19f   : > { %4203 = vmatpush.bf16.msra.mxu3 %v4766_v22  ;;  %v4734_v22 = vor.u32 %v5592_v12, %v4731_v13  ;;  %v5019_v12 = vld [vmem:[%s6456_s30 + $0x3f8] sm:$0xf0]  ;;  %v4710_v13 = vor.u32 %v5586_v62, %v4707_v63  ;;  %v5660_v50 = vld [vmem:[%s6456_s30 + $0x3d4] sm:$0xf] }
 0x1a0   : > { %4165 = vmatpush.bf16.msra.mxu0 %v4566_v36  ;;  %v4534_v36 = vor.u32 %v5542_v17, %v4531_v18  ;;  %v5614_v17 = vld [vmem:[%s6456_s30 + $0x264] sm:$0xf]  ;;  %v4819_v18 = vld [vmem:[%s6456_s30 + $0x268] sm:$0xf0]  ;;  %v5608_v63 = vld [vmem:[%s6456_s30 + $0x234] sm:$0xf] }
 0x1a1   : > { %4178 = vmatpush.bf16.msra.mxu1 %v4630_v37  ;;  %v4598_v37 = vor.u32 %v5558_v19, %v4595_v24  ;;  %v5630_v19 = vld [vmem:[%s6456_s30 + $0x2e4] sm:$0xf]  ;;  %v4883_v24 = vld [vmem:[%s6456_s30 + $0x2e8] sm:$0xf0] }
 0x1a2   : > { %4191 = vmatpush.bf16.msra.mxu2 %v4694_v39  ;;  %v4662_v39 = vor.u32 %v5574_v26, %v4659_v27  ;;  %v5646_v26 = vld [vmem:[%s6456_s30 + $0x364] sm:$0xf]  ;;  %v4947_v27 = vld [vmem:[%s6456_s30 + $0x368] sm:$0xf0] }
 0x1a3   : > { %4204 = vmatpush.bf16.msra.mxu3 %v4758_v46  ;;  %v4726_v46 = vor.u32 %v5590_v32, %v4723_v34  ;;  %v5662_v32 = vld [vmem:[%s6456_s30 + $0x3e4] sm:$0xf]  ;;  %v5011_v34 = vld [vmem:[%s6456_s30 + $0x3e8] sm:$0xf0] }
 0x1a4   : > { %4166 = vmatpush.bf16.msra.mxu0 %v4558_v52  ;;  %v4526_v52 = vor.u32 %v5540_v40, %v4523_v43  ;;  %v5612_v40 = vld [vmem:[%s6456_s30 + $0x254] sm:$0xf]  ;;  %v4811_v43 = vld [vmem:[%s6456_s30 + $0x258] sm:$0xf0] }
 0x1a5   : > { %4179 = vmatpush.bf16.msra.mxu1 %v4622_v53  ;;  %v5538_v53 = vld [vmem:[%s6456_s30 + $0x4] sm:$0xf] }
 0x1a6   : > { %4192 = vmatpush.bf16.msra.mxu2 %v4686_v54  ;;  %v4515_v54 = vld [vmem:[%s6456_s30 + $0x8] sm:$0xf0] }
 0x1a7   : > { %4205 = vmatpush.bf16.msra.mxu3 %v4750_v58  ;;  %v4579_v58 = vld [vmem:[%s6456_s30 + $0x88] sm:$0xf0]  ;;  %v4518_v3 = vor.u32 %v5538_v53, %v4515_v54  ;;  %v4878_v53 = vor.u32 %v5628_v45, %v4875_v47  ;;  %v4942_v54 = vor.u32 %v5644_v48, %v4939_v49  ;;  %v5636_v47 = vld [vmem:[%s6456_s30 + $0x314] sm:$0xf]  ;;  %v4907_v48 = vld [vmem:[%s6456_s30 + $0x318] sm:$0xf0] }
 0x1a8   : > { %4167 = vmatpush.bf16.msra.mxu0 %v4550_v0  ;;  %v5616_v0 = vld [vmem:[%s6456_s30 + $0x274] sm:$0xf]  ;;  %v4582_v9 = vor.u32 %v5554_v57, %v4579_v58  ;;  %v4867_v57 = vld [vmem:[%s6456_s30 + $0x2c8] sm:$0xf0] }
 0x1a9   : > { %4180 = vmatpush.bf16.msra.mxu1 %v4614_v1  ;;  %v4827_v1 = vld [vmem:[%s6456_s30 + $0x278] sm:$0xf0]  ;;  %v4931_v58 = vld [vmem:[%s6456_s30 + $0x348] sm:$0xf0] }
 0x1aa   : > { %4193 = vmatpush.bf16.msra.mxu2 %v4678_v2  ;;  %v5632_v2 = vld [vmem:[%s6456_s30 + $0x2f4] sm:$0xf] }
 0x1ab   : > { %4206 = vmatpush.bf16.msra.mxu3 %v4742_v8  ;;  %v4955_v8 = vld [vmem:[%s6456_s30 + $0x378] sm:$0xf0] }
 0x1ac   : > { %4168 = vmatpush.bf16.msra.mxu0 %v4542_v14  ;;  %v4830_v14 = vor.u32 %v5616_v0, %v4827_v1  ;;  %v4795_v0 = vld [vmem:[%s6456_s30 + $0x238] sm:$0xf0]  ;;  %v5624_v1 = vld [vmem:[%s6456_s30 + $0x2b4] sm:$0xf] }
 0x1ad   : > { %4181 = vmatpush.bf16.msra.mxu1 %v4606_v15  ;;  %v4894_v15 = vor.u32 %v5632_v2, %v4891_v5  ;;  %v5640_v5 = vld [vmem:[%s6456_s30 + $0x334] sm:$0xf] }
 0x1ae   : > { %4194 = vmatpush.bf16.msra.mxu2 %v4670_v16  ;;  %v4958_v16 = vor.u32 %v5648_v7, %v4955_v8  ;;  %v4923_v7 = vld [vmem:[%s6456_s30 + $0x338] sm:$0xf0]  ;;  %v5656_v8 = vld [vmem:[%s6456_s30 + $0x3b4] sm:$0xf] }
 0x1af   : > { %4207 = vmatpush.bf16.msra.mxu3 %v4734_v22  ;;  %v5022_v22 = vor.u32 %v5664_v11, %v5019_v12  ;;  %v4926_v12 = vor.u32 %v5640_v5, %v4923_v7 }
 0x1b0   : > { %4169 = vmatpush.bf16.msra.mxu0 %v4534_v36  ;;  %v4822_v36 = vor.u32 %v5614_v17, %v4819_v18  ;;  %v4851_v17 = vld [vmem:[%s6456_s30 + $0x2a8] sm:$0xf0]  ;;  %v5638_v18 = vld [vmem:[%s6456_s30 + $0x324] sm:$0xf] }
 0x1b1   : > { %4182 = vmatpush.bf16.msra.mxu1 %v4598_v37  ;;  %v4886_v37 = vor.u32 %v5630_v19, %v4883_v24  ;;  %v4915_v19 = vld [vmem:[%s6456_s30 + $0x328] sm:$0xf0] }
 0x1b2   : > { %4195 = vmatpush.bf16.msra.mxu2 %v4662_v39  ;;  %v4950_v39 = vor.u32 %v5646_v26, %v4947_v27  ;;  %v4979_v24 = vld [vmem:[%s6456_s30 + $0x3a8] sm:$0xf0] }
 0x1b3   : > { %4208 = vmatpush.bf16.msra.mxu3 %v4726_v46  ;;  %v5014_v46 = vor.u32 %v5662_v32, %v5011_v34 }
 0x1b4   : > { %4170 = vmatpush.bf16.msra.mxu0 %v4526_v52  ;;  %v4814_v52 = vor.u32 %v5612_v40, %v4811_v43  ;;  %v5620_v40 = vld [vmem:[%s6456_s30 + $0x294] sm:$0xf] }
 0x1b5   : > { %4183 = vmatpush.bf16.msra.mxu1 %v4590_v55  ;;  %v4803_v55 = vld [vmem:[%s6456_s30 + $0x248] sm:$0xf0] }
 0x1b6   : > { %4196 = vmatpush.bf16.msra.mxu2 %v4654_v56  ;;  %v5626_v56 = vld [vmem:[%s6456_s30 + $0x2c4] sm:$0xf] }
 0x1b7   : > { %4209 = vmatpush.bf16.msra.mxu3 %v4718_v60  ;;  %v4870_v61 = vor.u32 %v5626_v56, %v4867_v57  ;;  %v5618_v56 = vld [vmem:[%s6456_s30 + $0x284] sm:$0xf] }
 0x1b8   : > { %4171 = vmatpush.bf16.msra.mxu0 %v4518_v3  ;;  %v4859_v3 = vld [vmem:[%s6456_s30 + $0x2b8] sm:$0xf0]  ;;  %v6902_v26 = vpop.f32.mrf.mxu0  ;;  %v5634_v57 = vld [vmem:[%s6456_s30 + $0x304] sm:$0xf] }
 0x1b9   : > { %4184 = vmatpush.bf16.msra.mxu1 %v4582_v9  ;;  %v4987_v9 = vld [vmem:[%s6456_s30 + $0x3b8] sm:$0xf0]  ;;  %v4862_v11 = vor.u32 %v5624_v1, %v4859_v3  ;;  %v6904_v32 = vpop.f32.mrf.mxu1 }
 0x1ba   : > { %4197 = vmatpush.bf16.msra.mxu2 %v4646_v10  ;;  %v4798_v10 = vor.u32 %v5608_v63, %v4795_v0  ;;  %v5147_v1 = vld [vmem:[%s6456_s30 + $0x4f8] sm:$0xf0] }
 0x1bb   : > { %4210 = vmatpush.bf16.msra.mxu3 %v4710_v13  ;;  %4172 = vmatmul.bf16.vlgmr.msra.gmra.mxu0 %v6565_v20  ;;  %v5006_v20 = vor.u32 %v5660_v50, %v5003_v51  ;;  %v5606_v13 = vld [vmem:[%s6456_s30 + $0x224] sm:$0xf]  ;;  %v5652_v50 = vld [vmem:[%s6456_s30 + $0x394] sm:$0xf]  ;;  %v4971_v51 = vld [vmem:[%s6456_s30 + $0x398] sm:$0xf0] }
 0x1bc   : > { %4216 = vmatpush.bf16.msrb.mxu0 %v4830_v14  ;;  %4185 = vmatmul.bf16.vlgmr.msra.gmra.mxu1 %v6568_v21  ;;  %v4995_v21 = vld [vmem:[%s6456_s30 + $0x3c8] sm:$0xf0]  ;;  %v5211_v3 = vld [vmem:[%s6456_s30 + $0x578] sm:$0xf0] }
 0x1bd   : > { %4229 = vmatpush.bf16.msrb.mxu1 %v4894_v15  ;;  %4198 = vmatmul.bf16.vlgmr.msra.gmra.mxu2 %v6549_v4  ;;  %v5610_v4 = vld [vmem:[%s6456_s30 + $0x244] sm:$0xf]  ;;  %v4998_v2 = vor.u32 %v5658_v59, %v4995_v21  ;;  %v4787_v14 = vld [vmem:[%s6456_s30 + $0x228] sm:$0xf0] }
 0x1be   : > { %4242 = vmatpush.bf16.msrb.mxu2 %v4958_v16  ;;  %4211 = vmatmul.bf16.vlgmr.msra.gmra.mxu3 %v6554_v6  ;;  %v5642_v6 = vld [vmem:[%s6456_s30 + $0x344] sm:$0xf]  ;;  %v4806_v60 = vor.u32 %v5610_v4, %v4803_v55  ;;  %v4990_v16 = vor.u32 %v5656_v8, %v4987_v9  ;;  %v4790_v27 = vor.u32 %v5606_v13, %v4787_v14  ;;  %v4963_v21 = vld [vmem:[%s6456_s30 + $0x388] sm:$0xf0]  ;;  %v5728_v9 = vld [vmem:[%s6456_s30 + $0x5f4] sm:$0xf] }
 0x1bf   : > { %4255 = vmatpush.bf16.msrb.mxu3 %v5022_v22  ;;  %v4934_v62 = vor.u32 %v5642_v6, %v4931_v58  ;;  %v5622_v15 = vld [vmem:[%s6456_s30 + $0x2a4] sm:$0xf]  ;;  %v4910_v55 = vor.u32 %v5636_v47, %v4907_v48  ;;  %v4974_v6 = vor.u32 %v5652_v50, %v4971_v51  ;;  %v4899_v58 = vld [vmem:[%s6456_s30 + $0x308] sm:$0xf0]  ;;  %v5067_v47 = vld [vmem:[%s6456_s30 + $0x458] sm:$0xf0] }
 0x1c0   : > { %4217 = vmatpush.bf16.msrb.mxu0 %v4822_v36  ;;  %v5654_v22 = vld [vmem:[%s6456_s30 + $0x3a4] sm:$0xf]  ;;  %v4854_v34 = vor.u32 %v5622_v15, %v4851_v17  ;;  %v4918_v36 = vor.u32 %v5638_v18, %v4915_v19  ;;  %v6909_v43 = vpop.f32.mrf.mxu2  ;;  %v3967_v63 = vpop.f32.mrf.mxu0  ;;  %v4902_v8 = vor.u32 %v5634_v57, %v4899_v58  ;;  %v5075_v18 = vld [vmem:[%s6456_s30 + $0x468] sm:$0xf0]  ;;  %v5692_v48 = vld [vmem:[%s6456_s30 + $0x4d4] sm:$0xf] }
 0x1c1   : > { %4230 = vmatpush.bf16.msrb.mxu1 %v4886_v37  ;;  %v5604_v37 = vld [vmem:[%s6456_s30 + $0x214] sm:$0xf]  ;;  %v4982_v45 = vor.u32 %v5654_v22, %v4979_v24  ;;  %v6914_v49 = vpop.f32.mrf.mxu3  ;;  %v5650_v59 = vld [vmem:[%s6456_s30 + $0x384] sm:$0xf]  ;;  %v3980_v5 = vpop.f32.mrf.mxu1  ;;  %v5139_v24 = vld [vmem:[%s6456_s30 + $0x4e8] sm:$0xf0] }
 0x1c2   : > { %4243 = vmatpush.bf16.msrb.mxu2 %v4950_v39  ;;  %v4779_v39 = vld [vmem:[%s6456_s30 + $0x218] sm:$0xf0]  ;;  %v5678_v17 = vld [vmem:[%s6456_s30 + $0x464] sm:$0xf]  ;;  %v5059_v57 = vld [vmem:[%s6456_s30 + $0x448] sm:$0xf0] }
 0x1c3   : > { %4256 = vmatpush.bf16.msrb.mxu3 %v5014_v46  ;;  %v4843_v46 = vld [vmem:[%s6456_s30 + $0x298] sm:$0xf0]  ;;  %v5694_v19 = vld [vmem:[%s6456_s30 + $0x4e4] sm:$0xf] }
 0x1c4   : > { %4218 = vmatpush.bf16.msrb.mxu0 %v4814_v52  ;;  %v4782_v52 = vor.u32 %v5604_v37, %v4779_v39  ;;  %v4846_v4 = vor.u32 %v5620_v40, %v4843_v46  ;;  %v5267_v37 = vld [vmem:[%s6456_s30 + $0x5e8] sm:$0xf0]  ;;  %v5078_v39 = vor.u32 %v5678_v17, %v5075_v18  ;;  %v5142_v40 = vor.u32 %v5694_v19, %v5139_v24  ;;  %v5676_v46 = vld [vmem:[%s6456_s30 + $0x454] sm:$0xf]  ;;  %v5131_v51 = vld [vmem:[%s6456_s30 + $0x4d8] sm:$0xf0] }
 0x1c5   : > { %4231 = vmatpush.bf16.msrb.mxu1 %v4878_v53  ;;  %v5602_v53 = vld [vmem:[%s6456_s30 + $0x204] sm:$0xf] }
 0x1c6   : > { %4244 = vmatpush.bf16.msrb.mxu2 %v4942_v54  ;;  %v4771_v54 = vld [vmem:[%s6456_s30 + $0x208] sm:$0xf0]  ;;  %v5706_v58 = vld [vmem:[%s6456_s30 + $0x544] sm:$0xf] }
 0x1c7   : > { %4257 = vmatpush.bf16.msrb.mxu3 %v5006_v20  ;;  %v4835_v20 = vld [vmem:[%s6456_s30 + $0x288] sm:$0xf0]  ;;  %v4774_v0 = vor.u32 %v5602_v53, %v4771_v54  ;;  %v5195_v53 = vld [vmem:[%s6456_s30 + $0x558] sm:$0xf0]  ;;  %v5724_v54 = vld [vmem:[%s6456_s30 + $0x5d4] sm:$0xf] }
 0x1c8   : > { %4219 = vmatpush.bf16.msrb.mxu0 %v4806_v60  ;;  %v5680_v60 = vld [vmem:[%s6456_s30 + $0x474] sm:$0xf]  ;;  %v4838_v7 = vor.u32 %v5618_v56, %v4835_v20  ;;  %v5674_v20 = vld [vmem:[%s6456_s30 + $0x444] sm:$0xf] }
 0x1c9   : > { %4232 = vmatpush.bf16.msrb.mxu1 %v4870_v61  ;;  %v5083_v61 = vld [vmem:[%s6456_s30 + $0x478] sm:$0xf0]  ;;  %v4006_v14 = vpop.f32.mrf.mxu3  ;;  %v5686_v17 = vld [vmem:[%s6456_s30 + $0x4a4] sm:$0xf] }
 0x1ca   : > { %4245 = vmatpush.bf16.msrb.mxu2 %v4934_v62  ;;  %v5696_v62 = vld [vmem:[%s6456_s30 + $0x4f4] sm:$0xf]  ;;  %v5086_v13 = vor.u32 %v5680_v60, %v5083_v61  ;;  %v5251_v60 = vld [vmem:[%s6456_s30 + $0x5c8] sm:$0xf0]  ;;  %v5702_v24 = vld [vmem:[%s6456_s30 + $0x524] sm:$0xf] }
 0x1cb   : > { %4258 = vmatpush.bf16.msrb.mxu3 %v4998_v2  ;;  %v5712_v2 = vld [vmem:[%s6456_s30 + $0x574] sm:$0xf]  ;;  %v5150_v15 = vor.u32 %v5696_v62, %v5147_v1  ;;  %v5051_v1 = vld [vmem:[%s6456_s30 + $0x438] sm:$0xf0] }
 0x1cc   : > { %4220 = vmatpush.bf16.msrb.mxu0 %v4798_v10  ;;  %v5275_v10 = vld [vmem:[%s6456_s30 + $0x5f8] sm:$0xf0] }
 0x1cd   : > { %4233 = vmatpush.bf16.msrb.mxu1 %v4862_v11  ;;  %v3993_v11 = vpop.f32.mrf.mxu2  ;;  %v5278_v22 = vor.u32 %v5728_v9, %v5275_v10  ;;  %v5179_v9 = vld [vmem:[%s6456_s30 + $0x538] sm:$0xf0]  ;;  %v5720_v10 = vld [vmem:[%s6456_s30 + $0x5b4] sm:$0xf] }
 0x1ce   : > { %4246 = vmatpush.bf16.msrb.mxu2 %v4926_v12  ;;  %v4966_v12 = vor.u32 %v5650_v59, %v4963_v21  ;;  %v5187_v59 = vld [vmem:[%s6456_s30 + $0x548] sm:$0xf0]  ;;  %v5722_v21 = vld [vmem:[%s6456_s30 + $0x5c4] sm:$0xf]  ;;  %v5243_v11 = vld [vmem:[%s6456_s30 + $0x5b8] sm:$0xf0] }
 0x1cf   : > { %4259 = vmatpush.bf16.msrb.mxu3 %v4990_v16  ;;  %v5214_v16 = vor.u32 %v5712_v2, %v5211_v3  ;;  %v5190_v63 = vor.u32 %v5706_v58, %v5187_v59  ;;  %v5688_v2 = vld [vmem:[%s6456_s30 + $0x4b4] sm:$0xf]  ;;  %v5254_v5 = vor.u32 %v5722_v21, %v5251_v60  ;;  %v5246_v19 = vor.u32 %v5720_v10, %v5243_v11  ;;  %v5091_v58 = vld [vmem:[%s6456_s30 + $0x488] sm:$0xf0]  ;;  %v5698_v59 = vld [vmem:[%s6456_s30 + $0x504] sm:$0xf] }
 0x1d0   : > { %4221 = vmatpush.bf16.msrb.mxu0 %v4790_v27  ;;  %v5710_v27 = vld [vmem:[%s6456_s30 + $0x564] sm:$0xf]  ;;  %v5467_v10 = vld [vmem:[%s6456_s30 + $0x778] sm:$0xf0] }
 0x1d1   : > { %4234 = vmatpush.bf16.msrb.mxu1 %v4854_v34  ;;  %v5203_v34 = vld [vmem:[%s6456_s30 + $0x568] sm:$0xf0] }
 0x1d2   : > { %4247 = vmatpush.bf16.msrb.mxu2 %v4918_v36  ;;  %v5726_v36 = vld [vmem:[%s6456_s30 + $0x5e4] sm:$0xf] }
 0x1d3   : > { %4260 = vmatpush.bf16.msrb.mxu3 %v4982_v45  ;;  %v5206_v45 = vor.u32 %v5710_v27, %v5203_v34  ;;  %v5270_v50 = vor.u32 %v5726_v36, %v5267_v37  ;;  %v5171_v27 = vld [vmem:[%s6456_s30 + $0x528] sm:$0xf0]  ;;  %v5718_v36 = vld [vmem:[%s6456_s30 + $0x5a4] sm:$0xf] }
 0x1d4   : > { %4222 = vmatpush.bf16.msrb.mxu0 %v4782_v52  ;;  %v5708_v52 = vld [vmem:[%s6456_s30 + $0x554] sm:$0xf]  ;;  %v5235_v37 = vld [vmem:[%s6456_s30 + $0x5a8] sm:$0xf0] }
 0x1d5   : > { %4235 = vmatpush.bf16.msrb.mxu1 %v4846_v4  ;;  %v5259_v4 = vld [vmem:[%s6456_s30 + $0x5d8] sm:$0xf0]  ;;  %v5198_v56 = vor.u32 %v5708_v52, %v5195_v53  ;;  %v5238_v52 = vor.u32 %v5718_v36, %v5235_v37  ;;  %v5395_v37 = vld [vmem:[%s6456_s30 + $0x6e8] sm:$0xf0] }
 0x1d6   : > { %4248 = vmatpush.bf16.msrb.mxu2 %v4910_v55  ;;  %v5070_v55 = vor.u32 %v5676_v46, %v5067_v47  ;;  %v5174_v46 = vor.u32 %v5702_v24, %v5171_v27  ;;  %v5668_v47 = vld [vmem:[%s6456_s30 + $0x414] sm:$0xf]  ;;  %v5099_v53 = vld [vmem:[%s6456_s30 + $0x498] sm:$0xf0]  ;;  %v5331_v24 = vld [vmem:[%s6456_s30 + $0x668] sm:$0xf0] }
 0x1d7   : > { %4261 = vmatpush.bf16.msrb.mxu3 %v4974_v6  ;;  %v5123_v6 = vld [vmem:[%s6456_s30 + $0x4c8] sm:$0xf0]  ;;  %v5758_v27 = vld [vmem:[%s6456_s30 + $0x6e4] sm:$0xf] }
 0x1d8   : > { %4223 = vmatpush.bf16.msrb.mxu0 %v4774_v0  ;;  %v6962_v61 = vpop.f32.mrf.mxu0  ;;  %v5672_v0 = vld [vmem:[%s6456_s30 + $0x434] sm:$0xf] }
 0x1d9   : > { %4236 = vmatpush.bf16.msrb.mxu1 %v4838_v7  ;;  %v6967_v3 = vpop.f32.mrf.mxu1  ;;  %v5115_v7 = vld [vmem:[%s6456_s30 + $0x4b8] sm:$0xf0] }
 0x1da   : > { %4249 = vmatpush.bf16.msrb.mxu2 %v4902_v8  ;;  %v5704_v8 = vld [vmem:[%s6456_s30 + $0x534] sm:$0xf] }
 0x1db   : > { %4262 = vmatpush.bf16.msrb.mxu3 %v4966_v12  ;;  %4224 = vmatmul.bf16.vlgmr.msrb.gmra.mxu0 %v6628_v41  ;;  %v5690_v41 = vld [vmem:[%s6456_s30 + $0x4c4] sm:$0xf]  ;;  %v5054_v12 = vor.u32 %v5672_v0, %v5051_v1  ;;  %v5182_v14 = vor.u32 %v5704_v8, %v5179_v9  ;;  %v5744_v1 = vld [vmem:[%s6456_s30 + $0x674] sm:$0xf]  ;;  %v5403_v8 = vld [vmem:[%s6456_s30 + $0x6f8] sm:$0xf0] }
 0x1dc   : > { %4268 = vmatpush.bf16.msra.mxu0 %v5086_v13  ;;  %4237 = vmatmul.bf16.vlgmr.msrb.gmra.mxu1 %v6632_v44  ;;  %v5062_v44 = vor.u32 %v5674_v20, %v5059_v57  ;;  %v5126_v62 = vor.u32 %v5690_v41, %v5123_v6  ;;  %v5118_v13 = vor.u32 %v5688_v2, %v5115_v7  ;;  %v5666_v20 = vld [vmem:[%s6456_s30 + $0x404] sm:$0xf]  ;;  %v5027_v57 = vld [vmem:[%s6456_s30 + $0x408] sm:$0xf0]  ;;  %v5339_v2 = vld [vmem:[%s6456_s30 + $0x678] sm:$0xf0] }
 0x1dd   : > { %4281 = vmatpush.bf16.msra.mxu1 %v5150_v15  ;;  %4250 = vmatmul.bf16.vlgmr.msrb.gmra.mxu2 %v6624_v38  ;;  %v5134_v38 = vor.u32 %v5692_v48, %v5131_v51  ;;  %v5670_v15 = vld [vmem:[%s6456_s30 + $0x424] sm:$0xf]  ;;  %v5035_v48 = vld [vmem:[%s6456_s30 + $0x418] sm:$0xf0]  ;;  %v5030_v7 = vor.u32 %v5666_v20, %v5027_v57  ;;  %v5776_v9 = vld [vmem:[%s6456_s30 + $0x774] sm:$0xf] }
 0x1de   : > { %4294 = vmatpush.bf16.msra.mxu2 %v5214_v16  ;;  %4263 = vmatmul.bf16.vlgmr.msrb.gmra.mxu3 %v6630_v42  ;;  %v5262_v42 = vor.u32 %v5724_v54, %v5259_v4  ;;  %v5043_v16 = vld [vmem:[%s6456_s30 + $0x428] sm:$0xf0]  ;;  %v5700_v54 = vld [vmem:[%s6456_s30 + $0x514] sm:$0xf]  ;;  %v5163_v4 = vld [vmem:[%s6456_s30 + $0x518] sm:$0xf0] }
 0x1df   : > { %4307 = vmatpush.bf16.msra.mxu3 %v5278_v22  ;;  %v5107_v22 = vld [vmem:[%s6456_s30 + $0x4a8] sm:$0xf0]  ;;  %v5682_v6 = vld [vmem:[%s6456_s30 + $0x484] sm:$0xf] }
 0x1e0   : > { %4269 = vmatpush.bf16.msra.mxu0 %v5078_v39  ;;  %v6977_v18 = vpop.f32.mrf.mxu2  ;;  %v5046_v39 = vor.u32 %v5670_v15, %v5043_v16  ;;  %v5094_v11 = vor.u32 %v5682_v6, %v5091_v58  ;;  %v5342_v16 = vor.u32 %v5744_v1, %v5339_v2  ;;  %v5379_v58 = vld [vmem:[%s6456_s30 + $0x6c8] sm:$0xf0]  ;;  %v5736_v2 = vld [vmem:[%s6456_s30 + $0x634] sm:$0xf] }
 0x1e1   : > { %4282 = vmatpush.bf16.msra.mxu1 %v5142_v40  ;;  %v6982_v34 = vpop.f32.mrf.mxu3  ;;  %v4019_v40 = vpop.f32.mrf.mxu0 }
 0x1e2   : > { %4295 = vmatpush.bf16.msra.mxu2 %v5206_v45  ;;  %v5110_v45 = vor.u32 %v5686_v17, %v5107_v22  ;;  %v4032_v51 = vpop.f32.mrf.mxu1  ;;  %v5742_v22 = vld [vmem:[%s6456_s30 + $0x664] sm:$0xf]  ;;  %v5459_v40 = vld [vmem:[%s6456_s30 + $0x768] sm:$0xf0] }
 0x1e3   : > { %4308 = vmatpush.bf16.msra.mxu3 %v5270_v50  ;;  %v5684_v50 = vld [vmem:[%s6456_s30 + $0x494] sm:$0xf] }
 0x1e4   : > { %4270 = vmatpush.bf16.msra.mxu0 %v5070_v55  ;;  %v5716_v55 = vld [vmem:[%s6456_s30 + $0x594] sm:$0xf]  ;;  %v5102_v41 = vor.u32 %v5684_v50, %v5099_v53  ;;  %v5398_v50 = vor.u32 %v5758_v27, %v5395_v37  ;;  %v5323_v53 = vld [vmem:[%s6456_s30 + $0x658] sm:$0xf0]  ;;  %v5766_v37 = vld [vmem:[%s6456_s30 + $0x724] sm:$0xf] }
 0x1e5   : > { %4283 = vmatpush.bf16.msra.mxu1 %v5134_v38  ;;  %v5227_v38 = vld [vmem:[%s6456_s30 + $0x598] sm:$0xf0] }
 0x1e6   : > { %4296 = vmatpush.bf16.msra.mxu2 %v5198_v56  ;;  %v5038_v56 = vor.u32 %v5668_v47, %v5035_v48  ;;  %v5230_v60 = vor.u32 %v5716_v55, %v5227_v38  ;;  %v5334_v47 = vor.u32 %v5742_v22, %v5331_v24  ;;  %v3979_v48 = vadd.f32 %v6904_v32, %v6902_v26  ;;  %v5387_v55 = vld [vmem:[%s6456_s30 + $0x6d8] sm:$0xf0]  ;;  %v5772_v38 = vld [vmem:[%s6456_s30 + $0x754] sm:$0xf]  ;;  %v5750_v22 = vld [vmem:[%s6456_s30 + $0x6a4] sm:$0xf] }
 0x1e7   : > { %4309 = vmatpush.bf16.msra.mxu3 %v5262_v42  ;;  %v5166_v42 = vor.u32 %v5700_v54, %v5163_v4  ;;  %v5756_v54 = vld [vmem:[%s6456_s30 + $0x6d4] sm:$0xf]  ;;  %v5515_v32 = vld [vmem:[%s6456_s30 + $0x7d8] sm:$0xf0] }
 0x1e8   : > { %4271 = vmatpush.bf16.msra.mxu0 %v5062_v44  ;;  %v4045_v21 = vpop.f32.mrf.mxu2  ;;  %v5155_v44 = vld [vmem:[%s6456_s30 + $0x508] sm:$0xf0]  ;;  %v5788_v26 = vld [vmem:[%s6456_s30 + $0x7d4] sm:$0xf]  ;;  %v3992_v20 = vadd.f32 %v6909_v43, %v3979_v48  ;;  %v5390_v57 = vor.u32 %v5756_v54, %v5387_v55  ;;  %v5291_v54 = vld [vmem:[%s6456_s30 + $0x618] sm:$0xf0] }
 0x1e9   : > { %4284 = vmatpush.bf16.msra.mxu1 %v5126_v62  ;;  %v5714_v62 = vld [vmem:[%s6456_s30 + $0x584] sm:$0xf]  ;;  %v4058_v0 = vpop.f32.mrf.mxu3  ;;  %v5518_v6 = vor.u32 %v5788_v26, %v5515_v32  ;;  %v5507_v43 = vld [vmem:[%s6456_s30 + $0x7c8] sm:$0xf0]  ;;  %v5419_v26 = vld [vmem:[%s6456_s30 + $0x718] sm:$0xf0] }
 0x1ea   : > { %4297 = vmatpush.bf16.msra.mxu2 %v5190_v63  ;;  %v5219_v63 = vld [vmem:[%s6456_s30 + $0x588] sm:$0xf0]  ;;  %v5780_v32 = vld [vmem:[%s6456_s30 + $0x794] sm:$0xf] }
 0x1eb   : > { %4310 = vmatpush.bf16.msra.mxu3 %v5254_v5  ;;  %v5760_v5 = vld [vmem:[%s6456_s30 + $0x6f4] sm:$0xf]  ;;  %v5222_v15 = vor.u32 %v5714_v62, %v5219_v63  ;;  %v4005_v63 = vadd.f32 %v6914_v49, %v3992_v20 }
 0x1ec   : > { %4272 = vmatpush.bf16.msra.mxu0 %v5054_v12  ;;  %v5158_v12 = vor.u32 %v5698_v59, %v5155_v44  ;;  %v5406_v17 = vor.u32 %v5760_v5, %v5403_v8  ;;  %v5443_v59 = vld [vmem:[%s6456_s30 + $0x748] sm:$0xf0]  ;;  %v5307_v5 = vld [vmem:[%s6456_s30 + $0x638] sm:$0xf0] }
 0x1ed   : > { %4285 = vmatpush.bf16.msra.mxu1 %v5118_v13  ;;  %v5792_v13 = vld [vmem:[%s6456_s30 + $0x7f4] sm:$0xf]  ;;  %v5310_v49 = vor.u32 %v5736_v2, %v5307_v5 }
 0x1ee   : > { %4298 = vmatpush.bf16.msra.mxu2 %v5182_v14  ;;  %v5531_v14 = vld [vmem:[%s6456_s30 + $0x7f8] sm:$0xf0] }
 0x1ef   : > { %4311 = vmatpush.bf16.msra.mxu3 %v5246_v19  ;;  %v5470_v19 = vor.u32 %v5776_v9, %v5467_v10  ;;  %v5534_v36 = vor.u32 %v5792_v13, %v5531_v14  ;;  %v5371_v9 = vld [vmem:[%s6456_s30 + $0x6b8] sm:$0xf0]  ;;  %v5768_v10 = vld [vmem:[%s6456_s30 + $0x734] sm:$0xf]  ;;  %v4018_v14 = vadd.f32 %v6962_v61, %v4005_v63  ;;  %v5782_v61 = vld [vmem:[%s6456_s30 + $0x7a4] sm:$0xf] }
 0x1f0   : > { %4273 = vmatpush.bf16.msra.mxu0 %v5046_v39  ;;  %v5774_v39 = vld [vmem:[%s6456_s30 + $0x764] sm:$0xf]  ;;  %v5499_v13 = vld [vmem:[%s6456_s30 + $0x7b8] sm:$0xf0] }
 0x1f1   : > { %4286 = vmatpush.bf16.msra.mxu1 %v5110_v45  ;;  %v5790_v45 = vld [vmem:[%s6456_s30 + $0x7e4] sm:$0xf]  ;;  %v5462_v51 = vor.u32 %v5774_v39, %v5459_v40  ;;  %v5427_v39 = vld [vmem:[%s6456_s30 + $0x728] sm:$0xf0] }
 0x1f2   : > { %4299 = vmatpush.bf16.msra.mxu2 %v5174_v46  ;;  %v5523_v46 = vld [vmem:[%s6456_s30 + $0x7e8] sm:$0xf0] }
 0x1f3   : > { %4312 = vmatpush.bf16.msra.mxu3 %v5238_v52  ;;  %v5740_v52 = vld [vmem:[%s6456_s30 + $0x654] sm:$0xf]  ;;  %v5526_v4 = vor.u32 %v5790_v45, %v5523_v46  ;;  %v5491_v45 = vld [vmem:[%s6456_s30 + $0x7a8] sm:$0xf0] }
 0x1f4   : > { %4274 = vmatpush.bf16.msra.mxu0 %v5038_v56  ;;  %v5451_v56 = vld [vmem:[%s6456_s30 + $0x758] sm:$0xf0]  ;;  %v5494_v55 = vor.u32 %v5782_v61, %v5491_v45 }
 0x1f5   : > { %4287 = vmatpush.bf16.msra.mxu1 %v5102_v41  ;;  %v5454_v41 = vor.u32 %v5772_v38, %v5451_v56  ;;  %v5355_v38 = vld [vmem:[%s6456_s30 + $0x698] sm:$0xf0]  ;;  %v5764_v56 = vld [vmem:[%s6456_s30 + $0x714] sm:$0xf] }
 0x1f6   : > { %4300 = vmatpush.bf16.msra.mxu2 %v5166_v42  ;;  %v5315_v42 = vld [vmem:[%s6456_s30 + $0x648] sm:$0xf0] }
 0x1f7   : > { %4313 = vmatpush.bf16.msra.mxu3 %v5230_v60  ;;  %v5786_v60 = vld [vmem:[%s6456_s30 + $0x7c4] sm:$0xf] }
 0x1f8   : > { %4275 = vmatpush.bf16.msra.mxu0 %v5030_v7  ;;  %v7039_v21 = vpop.f32.mrf.mxu0  ;;  %v5752_v7 = vld [vmem:[%s6456_s30 + $0x6b4] sm:$0xf]  ;;  %v5510_v8 = vor.u32 %v5786_v60, %v5507_v43  ;;  %v5778_v43 = vld [vmem:[%s6456_s30 + $0x784] sm:$0xf] }
 0x1f9   : > { %4288 = vmatpush.bf16.msra.mxu1 %v5094_v11  ;;  %v7043_v62 = vpop.f32.mrf.mxu1  ;;  %v5435_v11 = vld [vmem:[%s6456_s30 + $0x738] sm:$0xf0] }
 0x1fa   : > { %4301 = vmatpush.bf16.msra.mxu2 %v5158_v12  ;;  %v5784_v12 = vld [vmem:[%s6456_s30 + $0x7b4] sm:$0xf] }
 0x1fb   : > { %4314 = vmatpush.bf16.msra.mxu3 %v5222_v15  ;;  %4276 = vmatmul.bf16.vlgmr.msra.gmra.mxu0 %v6703_v25  ;;  %v5326_v25 = vor.u32 %v5740_v52, %v5323_v53  ;;  %v5374_v15 = vor.u32 %v5752_v7, %v5371_v9  ;;  %v5502_v24 = vor.u32 %v5784_v12, %v5499_v13  ;;  %v5732_v53 = vld [vmem:[%s6456_s30 + $0x614] sm:$0xf] }
 0x1fc   : > { %4320 = vmatpush.bf16.msrb.mxu0 %v5342_v16  ;;  %4289 = vmatmul.bf16.vlgmr.msra.gmra.mxu1 %v6710_v30  ;;  %v5754_v30 = vld [vmem:[%s6456_s30 + $0x6c4] sm:$0xf]  ;;  %v5438_v16 = vor.u32 %v5768_v10, %v5435_v11  ;;  %v5430_v52 = vor.u32 %v5766_v37, %v5427_v39 }
 0x1fd   : > { %4333 = vmatpush.bf16.msrb.mxu1 %v5406_v17  ;;  %4302 = vmatmul.bf16.vlgmr.msra.gmra.mxu2 %v6708_v29  ;;  %v5738_v29 = vld [vmem:[%s6456_s30 + $0x644] sm:$0xf]  ;;  %v5382_v0 = vor.u32 %v5754_v30, %v5379_v58  ;;  %v5347_v58 = vld [vmem:[%s6456_s30 + $0x688] sm:$0xf0] }
 0x1fe   : > { %4346 = vmatpush.bf16.msrb.mxu2 %v5470_v19  ;;  %4315 = vmatmul.bf16.vlgmr.msra.gmra.mxu3 %v6714_v33  ;;  %v5770_v33 = vld [vmem:[%s6456_s30 + $0x744] sm:$0xf]  ;;  %v5318_v44 = vor.u32 %v5738_v29, %v5315_v42  ;;  %v5299_v19 = vld [vmem:[%s6456_s30 + $0x628] sm:$0xf0] }
 0x1ff   : > { %4359 = vmatpush.bf16.msrb.mxu3 %v5534_v36  ;;  %v5446_v1 = vor.u32 %v5770_v33, %v5443_v59  ;;  %v5734_v17 = vld [vmem:[%s6456_s30 + $0x624] sm:$0xf]  ;;  %v5363_v36 = vld [vmem:[%s6456_s30 + $0x6a8] sm:$0xf0] }
 0x200   : > { %4321 = vmatpush.bf16.msrb.mxu0 %v5334_v47  ;;  %v7058_v27 = vpop.f32.mrf.mxu2  ;;  %v4071_v46 = vpop.f32.mrf.mxu0  ;;  %v5302_v47 = vor.u32 %v5734_v17, %v5299_v19  ;;  %v5730_v29 = vld [vmem:[%s6456_s30 + $0x604] sm:$0xf]  ;;  %v5283_v42 = vld [vmem:[%s6456_s30 + $0x608] sm:$0xf0] }
 0x201   : > { %4334 = vmatpush.bf16.msrb.mxu1 %v5398_v50  ;;  %v7063_v40 = vpop.f32.mrf.mxu3  ;;  %v4084_v48 = vpop.f32.mrf.mxu1  ;;  %v4031_v50 = vadd.f32 %v6967_v3, %v4018_v14  ;;  %v5483_v3 = vld [vmem:[%s6456_s30 + $0x798] sm:$0xf0]  ;;  %v5746_v30 = vld [vmem:[%s6456_s30 + $0x684] sm:$0xf]  ;;  %v5411_v59 = vld [vmem:[%s6456_s30 + $0x708] sm:$0xf0] }
 0x202   : > { %4347 = vmatpush.bf16.msrb.mxu2 %v5462_v51  ;;  %v5366_v51 = vor.u32 %v5750_v22, %v5363_v36  ;;  %v5762_v33 = vld [vmem:[%s6456_s30 + $0x704] sm:$0xf] }
 0x203   : > { %4360 = vmatpush.bf16.msrb.mxu3 %v5526_v4  ;;  %v5748_v4 = vld [vmem:[%s6456_s30 + $0x694] sm:$0xf]  ;;  %v4044_v20 = vadd.f32 %v6977_v18, %v4031_v50  ;;  %v5414_v2 = vor.u32 %v5762_v33, %v5411_v59 }
 0x204   : > { %4322 = vmatpush.bf16.msrb.mxu0 %v5326_v25  ;;  %v5294_v25 = vor.u32 %v5732_v53, %v5291_v54 }
 0x205   : > { %4335 = vmatpush.bf16.msrb.mxu1 %v5390_v57  ;;  %v5358_v57 = vor.u32 %v5748_v4, %v5355_v38  ;;  %v4057_v18 = vadd.f32 %v6982_v34, %v4044_v20 }
 0x206   : > { %4348 = vmatpush.bf16.msrb.mxu2 %v5454_v41  ;;  %v5422_v41 = vor.u32 %v5764_v56, %v5419_v26 }
 0x207   : > { %4361 = vmatpush.bf16.msrb.mxu3 %v5518_v6  ;;  %v5486_v6 = vor.u32 %v5780_v32, %v5483_v3  ;;  %v4070_v7 = vadd.f32 %v7039_v21, %v4057_v18 }
 0x208   : > { %4323 = vmatpush.bf16.msrb.mxu0 %v5318_v44  ;;  %v4097_v60 = vpop.f32.mrf.mxu2  ;;  %v5475_v44 = vld [vmem:[%s6456_s30 + $0x788] sm:$0xf0] }
 0x209   : > { %4336 = vmatpush.bf16.msrb.mxu1 %v5382_v0  ;;  %v4110_v63 = vpop.f32.mrf.mxu3  ;;  %v5286_v0 = vor.u32 %v5730_v29, %v5283_v42  ;;  %v5478_v5 = vor.u32 %v5778_v43, %v5475_v44 }
 0x20a   : > { %4349 = vmatpush.bf16.msrb.mxu2 %v5446_v1  ;;  %v5350_v1 = vor.u32 %v5746_v30, %v5347_v58 }
 0x20b   : > { %4362 = vmatpush.bf16.msrb.mxu3 %v5510_v8  ;;  %v4083_v8 = vadd.f32 %v7043_v62, %v4070_v7 }
 0x20c   : > { %4324 = vmatpush.bf16.msrb.mxu0 %v5310_v49 }
 0x20d   : > { %4337 = vmatpush.bf16.msrb.mxu1 %v5374_v15  ;;  %v4096_v34 = vadd.f32 %v7058_v27, %v4083_v8 }
 0x20e   : > { %4350 = vmatpush.bf16.msrb.mxu2 %v5438_v16 }
 0x20f   : > { %4363 = vmatpush.bf16.msrb.mxu3 %v5502_v24  ;;  %v4109_v21 = vadd.f32 %v7063_v40, %v4096_v34 }
 0x210   : > { %4325 = vmatpush.bf16.msrb.mxu0 %v5302_v47 }
 0x211   : > { %4338 = vmatpush.bf16.msrb.mxu1 %v5366_v51 }
 0x212   : > { %4351 = vmatpush.bf16.msrb.mxu2 %v5430_v52 }
 0x213   : > { %4364 = vmatpush.bf16.msrb.mxu3 %v5494_v55 }
 0x214   : > { %4326 = vmatpush.bf16.msrb.mxu0 %v5294_v25 }
 0x215   : > { %4339 = vmatpush.bf16.msrb.mxu1 %v5358_v57 }
 0x216   : > { %4352 = vmatpush.bf16.msrb.mxu2 %v5422_v41 }
 0x217   : > { %4365 = vmatpush.bf16.msrb.mxu3 %v5486_v6 }
 0x218   : > { %4327 = vmatpush.bf16.msrb.mxu0 %v5286_v0  ;;  %v4121_v9 = vpop.f32.mrf.mxu0 }
 0x219   : > { %4340 = vmatpush.bf16.msrb.mxu1 %v5350_v1  ;;  %v4134_v10 = vpop.f32.mrf.mxu1  ;;  %v4122_v11 = vadd.f32 %v4121_v9, %v4109_v21 }
 0x21a   : > { %4353 = vmatpush.bf16.msrb.mxu2 %v5414_v2 }
 0x21b   : > { %4366 = vmatpush.bf16.msrb.mxu3 %v5478_v5  ;;  %4328 = vmatmul.bf16.vlgmr.msrb.gmra.mxu0 %v6785_v23  ;;  %v4381_v23 = vld [vmem:[%s2340_s28] sm:$0x3]  ;;  %v4135_v62 = vadd.f32 %v4134_v10, %v4122_v11 }
 0x21c   : > { %4341 = vmatmul.bf16.vlgmr.msrb.gmra.mxu1 %v6792_v31  ;;  %v4383_v13 = vperm.slane %v4381_v23, 0  ;;  %v4384_v1 = vperm.slane %v4381_v23, 1 }
 0x21d   : > { %4354 = vmatmul.bf16.vlgmr.msrb.gmra.mxu2 %v6790_v28 }
 0x21e   : > { %4367 = vmatmul.bf16.vlgmr.msrb.gmra.mxu3 %v6796_v35 }
 0x220   : > { %v4147_v12 = vpop.f32.mrf.mxu2  ;;  %v4123_v49 = vpop.f32.mrf.mxu0 }
 0x221   : > { %v4148_v31 = vadd.f32 %v4147_v12, %v4135_v62  ;;  %v4160_v28 = vpop.f32.mrf.mxu3  ;;  %v4136_v14 = vpop.f32.mrf.mxu1 }
 0x223   : > { %v4161_v35 = vadd.f32 %v4160_v28, %v4148_v31 }
 0x225   : > { %v4387_v15 = vadd.f32 %v4383_v13, %v4161_v35 }
 0x227   : > { %4389 = vst [vmem:[%s7101_s5] sm:$0xff] %v4387_v15 }
 0x228   : > { %v4149_v16 = vpop.f32.mrf.mxu2 }
 0x229   : > { %v4162_v17 = vpop.f32.mrf.mxu3 }
 0x238   : > { %v4173_v19 = vpop.f32.mrf.mxu0 }
 0x239   : > { %v4186_v22 = vpop.f32.mrf.mxu1 }
 0x23a   : > { %v4187_v24 = vadd.f32 %v4186_v22, %v4173_v19 }
 0x240   : > { %v4199_v27 = vpop.f32.mrf.mxu2  ;;  %v4175_v40 = vpop.f32.mrf.mxu0 }
 0x241   : > { %v4200_v36 = vadd.f32 %v4199_v27, %v4187_v24  ;;  %v4212_v37 = vpop.f32.mrf.mxu3  ;;  %v4188_v61 = vpop.f32.mrf.mxu1 }
 0x243   : > { %v4213_v39 = vadd.f32 %v4212_v37, %v4200_v36 }
 0x248   : > { %v4201_v45 = vpop.f32.mrf.mxu2 }
 0x249   : > { %v4214_v46 = vpop.f32.mrf.mxu3 }
 0x258   : > { %v4225_v47 = vpop.f32.mrf.mxu0 }
 0x259   : > { %v4238_v48 = vpop.f32.mrf.mxu1  ;;  %v4226_v56 = vadd.f32 %v4225_v47, %v4213_v39 }
 0x25b   : > { %v4239_v25 = vadd.f32 %v4238_v48, %v4226_v56 }
 0x260   : > { %v4251_v50 = vpop.f32.mrf.mxu2  ;;  %v4227_v52 = vpop.f32.mrf.mxu0 }
 0x261   : > { %v4264_v51 = vpop.f32.mrf.mxu3  ;;  %v4240_v53 = vpop.f32.mrf.mxu1  ;;  %v4252_v57 = vadd.f32 %v4251_v50, %v4239_v25 }
 0x263   : > { %v4265_v42 = vadd.f32 %v4264_v51, %v4252_v57 }
 0x268   : > { %v4253_v54 = vpop.f32.mrf.mxu2 }
 0x269   : > { %v4266_v4 = vpop.f32.mrf.mxu3 }
 0x278   : > { %v4277_v55 = vpop.f32.mrf.mxu0 }
 0x279   : > { %v4290_v38 = vpop.f32.mrf.mxu1  ;;  %v4278_v30 = vadd.f32 %v4277_v55, %v4265_v42 }
 0x27b   : > { %v4291_v6 = vadd.f32 %v4290_v38, %v4278_v30 }
 0x280   : > { %v4303_v26 = vpop.f32.mrf.mxu2  ;;  %v4279_v3 = vpop.f32.mrf.mxu0 }
 0x281   : > { %v4316_v32 = vpop.f32.mrf.mxu3  ;;  %v4292_v20 = vpop.f32.mrf.mxu1  ;;  %v4304_v58 = vadd.f32 %v4303_v26, %v4291_v6 }
 0x283   : > { %v4317_v33 = vadd.f32 %v4316_v32, %v4304_v58 }
 0x288   : > { %v4305_v41 = vpop.f32.mrf.mxu2 }
 0x289   : > { %v4318_v29 = vpop.f32.mrf.mxu3 }
 0x298   : > { %v4329_v59 = vpop.f32.mrf.mxu0 }
 0x299   : > { %v4342_v60 = vpop.f32.mrf.mxu1  ;;  %v4330_v43 = vadd.f32 %v4329_v59, %v4317_v33 }
 0x29b   : > { %v4343_v44 = vadd.f32 %v4342_v60, %v4330_v43 }
 0x2a0   : > { %v4355_v63 = vpop.f32.mrf.mxu2  ;;  %v4331_v2 = vpop.f32.mrf.mxu0 }
 0x2a1   : > { %v4356_v0 = vadd.f32 %v4355_v63, %v4343_v44  ;;  %v4368_v18 = vpop.f32.mrf.mxu3  ;;  %v4344_v5 = vpop.f32.mrf.mxu1 }
 0x2a3   : > { %v4369_v7 = vadd.f32 %v4368_v18, %v4356_v0 }
 0x2a5   : > { %v4388_v8 = vadd.f32 %v4384_v1, %v4369_v7 }
 0x2a7   : > { %4390 = vst [vmem:[%s7101_s5 + $0x8] sm:$0xff] %v4388_v8 }
 0x2a8   : > { %v4357_v34 = vpop.f32.mrf.mxu2 }
 0x2a9   : > { %v4370_v21 = vpop.f32.mrf.mxu3 }
 0x2aa PF: > { %s13_s16 = sadd.s32 1, %s5872_s16   ;;  %s7124_s12 = smov %s5860_s13 }
 0x2ab   : > { %p10_p10 = scmp.ge.s32.totalorder %s13_s16, 4   ;;  %s7125_s13 = smov %s5929_s20 }
 0x2ac   : > { %s7126_s14 = smov %s5868_s15  ;;  %s7127_s15 = smov %s7129_s17 }
 0x2ad   :  { %12 = sbr.rel (!%p10_p10) target bundleno = 3 (0x3), region = 139 }

</bundles_post_ra>
